<compile_context>
chip_gen: v6e
topology: v6e:2x2x1
jax: 0.10.0
libtpu: 0.0.40
codegen_flags: <defaults>
</compile_context>

<pallas_src>
import functools
import math

import jax
import jax.numpy as jnp
from jax.experimental import pallas as pl
from jax.experimental.pallas import tpu as pltpu

EPS = 1e-6
NEG_INF = -1e9


# ----------------------------------------------------------------------------
# In-kernel helpers (traced inside the fused layer kernel)
# ----------------------------------------------------------------------------
def _layernorm(x, a, b):
    """x: (N, D) f32; a, b: (1, D) f32.  torch.std semantics (unbiased, +eps)."""
    d = x.shape[-1]
    mean = jnp.mean(x, axis=-1, keepdims=True)
    diff = x - mean
    var = jnp.sum(diff * diff, axis=-1, keepdims=True) * (1.0 / (d - 1))
    inv = 1.0 / (jnp.sqrt(var) + EPS)
    return a * (diff * inv) + b


def _dense(x, w, b):
    """x: (M, Din) f32, w: (Din, Dout) bf16, b: (1, Dout) f32 -> f32."""
    return jnp.dot(x.astype(w.dtype), w, preferred_element_type=jnp.float32) + b


def _mha(q, k, v, mask_add, num_heads):
    """q: (T, D), k/v: (S, D), mask_add: (T, S) additive (0 / -1e9). All f32.

    Heads are split with static lane slices; all heads are processed in one
    kernel invocation (unrolled python loop) and the result is written back
    lane-dense as (T, D)."""
    t, d = q.shape
    dk = d // num_heads
    q = q * (1.0 / math.sqrt(dk))          # fold scale into Q (T*dk, not T*S)
    outs = []
    for h in range(num_heads):
        lo, hi = h * dk, (h + 1) * dk
        s = jnp.dot(q[:, lo:hi], k[:, lo:hi].T,
                    preferred_element_type=jnp.float32) + mask_add
        m = jnp.max(s, axis=-1, keepdims=True)
        e = jnp.exp(s - m)
        p = e * pl.reciprocal(jnp.sum(e, axis=-1, keepdims=True), approx=True)
        # dropout(p) -> identity at inference
        outs.append(jnp.dot(p, v[:, lo:hi], preferred_element_type=jnp.float32))
    return jnp.concatenate(outs, axis=-1)   # (T, D) lane-dense


# ----------------------------------------------------------------------------
# Fused decoder-layer kernel (one pallas_call per layer, grid over batch)
# ----------------------------------------------------------------------------
def _decoder_layer_kernel(
    x_ref, mem_ref, tmask_ref, smask_ref,
    ln0_a_ref, ln0_b_ref, sa_wqkv_ref, sa_bqkv_ref, sa_wo_ref, sa_bo_ref,
    ln1_a_ref, ln1_b_ref, ca_wq_ref, ca_bq_ref, ca_wkv_ref, ca_bkv_ref,
    ca_wo_ref, ca_bo_ref,
    ln2_a_ref, ln2_b_ref, ff_w1_ref, ff_b1_ref, ff_w2_ref, ff_b2_ref,
    o_ref, *, num_heads):
    x = x_ref[0].astype(jnp.float32)        # (T, D)
    mem = mem_ref[0].astype(jnp.float32)    # (S, D)
    d = x.shape[-1]

    # ---- sublayer 0: self-attention (fused QKV projection) ----------------
    h = _layernorm(x, ln0_a_ref[...], ln0_b_ref[...])
    qkv = _dense(h, sa_wqkv_ref[...], sa_bqkv_ref[...])          # (T, 3D)
    a = _mha(qkv[:, :d], qkv[:, d:2 * d], qkv[:, 2 * d:],
             tmask_ref[0], num_heads)                             # (T, D)
    x = x + _dense(a, sa_wo_ref[...], sa_bo_ref[...])

    # ---- sublayer 1: source (cross) attention (fused KV over memory) ------
    h = _layernorm(x, ln1_a_ref[...], ln1_b_ref[...])
    q = _dense(h, ca_wq_ref[...], ca_bq_ref[...])                 # (T, D)
    kv = _dense(mem, ca_wkv_ref[...], ca_bkv_ref[...])            # (S, 2D)
    a = _mha(q, kv[:, :d], kv[:, d:], smask_ref[0], num_heads)
    x = x + _dense(a, ca_wo_ref[...], ca_bo_ref[...])

    # ---- sublayer 2: feed-forward (reference has NO activation) -----------
    h = _layernorm(x, ln2_a_ref[...], ln2_b_ref[...])
    hidden = _dense(h, ff_w1_ref[...], ff_b1_ref[...])            # (T, FF)
    x = x + _dense(hidden, ff_w2_ref[...], ff_b2_ref[...])        # (T, D)

    o_ref[0] = x.astype(o_ref.dtype)


def _final_ln_kernel(x_ref, a_ref, b_ref, o_ref):
    x = x_ref[0].astype(jnp.float32)
    o_ref[0] = _layernorm(x, a_ref[...], b_ref[...]).astype(o_ref.dtype)


# ----------------------------------------------------------------------------
# Wrappers
# ----------------------------------------------------------------------------
def decoder_layer(p, x, memory, tmask_add, smask_add, num_heads):
    B, T, D = x.shape
    S = memory.shape[1]

    # Order must match the kernel signature.
    weights = [
        p["ln0_a"], p["ln0_b"], p["sa_wqkv"], p["sa_bqkv"], p["sa_wo"], p["sa_bo"],
        p["ln1_a"], p["ln1_b"], p["ca_wq"], p["ca_bq"], p["ca_wkv"], p["ca_bkv"],
        p["ca_wo"], p["ca_bo"],
        p["ln2_a"], p["ln2_b"], p["ff_w1"], p["ff_b1"], p["ff_w2"], p["ff_b2"],
    ]

    def bcast_spec(arr):
        nd = arr.ndim
        return pl.BlockSpec(arr.shape, lambda b, _nd=nd: (0,) * _nd)

    in_specs = [
        pl.BlockSpec((1, T, D), lambda b: (b, 0, 0)),   # x
        pl.BlockSpec((1, S, D), lambda b: (b, 0, 0)),   # memory
        pl.BlockSpec((1, T, T), lambda b: (0, 0, 0)),   # additive target mask
        pl.BlockSpec((1, T, S), lambda b: (0, 0, 0)),   # additive src mask
    ] + [bcast_spec(w) for w in weights]

    kernel = functools.partial(_decoder_layer_kernel, num_heads=num_heads)
    return pl.pallas_call(
        kernel,
        out_shape=jax.ShapeDtypeStruct((B, T, D), jnp.float32),
        grid=(B,),
        in_specs=in_specs,
        out_specs=pl.BlockSpec((1, T, D), lambda b: (b, 0, 0)),
        compiler_params=pltpu.CompilerParams(
            dimension_semantics=("parallel",)),   # shards over 2 TCs on v7x
    )(x, memory, tmask_add, smask_add, *weights)


def final_layernorm(x, a, b):
    B, T, D = x.shape
    return pl.pallas_call(
        _final_ln_kernel,
        out_shape=jax.ShapeDtypeStruct((B, T, D), jnp.float32),
        grid=(B,),
        in_specs=[
            pl.BlockSpec((1, T, D), lambda i: (i, 0, 0)),
            pl.BlockSpec((1, D), lambda i: (0, 0)),
            pl.BlockSpec((1, D), lambda i: (0, 0)),
        ],
        out_specs=pl.BlockSpec((1, T, D), lambda i: (i, 0, 0)),
        compiler_params=pltpu.CompilerParams(dimension_semantics=("parallel",)),
    )(x, a.reshape(1, D), b.reshape(1, D))


def decoder_forward(params, x, memory, src_mask, target_mask, num_heads):
    # Additive masks precomputed once (0 where attended, -1e9 where masked);
    # they broadcast over batch and heads inside the kernel.
    tmask_add = jnp.where(target_mask == 0, NEG_INF, 0.0).astype(jnp.float32)
    smask_add = jnp.where(src_mask == 0, NEG_INF, 0.0).astype(jnp.float32)
    for layer_p in params["layers"]:
        x = decoder_layer(layer_p, x, memory, tmask_add, smask_add, num_heads)
    return final_layernorm(x, params["final_ln_a"], params["final_ln_b"])


# ----------------------------------------------------------------------------
# Deterministic parameter construction (weights stored in fused / kernel
# layout: (D_in, D_out) so the kernel computes x @ W + b, matching torch's
# x @ W.T + b).  Matmul weights are stored bf16; biases / LN params stay f32.
# ----------------------------------------------------------------------------
def _linear_params(key, d_in, d_out):
    kw, kb = jax.random.split(key)
    w = jax.random.normal(kw, (d_in, d_out), jnp.float32) * 0.05
    b = jax.random.normal(kb, (d_out,), jnp.float32) * 0.05
    return w, b


def make_decoder_params(key, d_model, ff_dim, n_layers):
    layers = []
    keys = jax.random.split(key, n_layers + 1)
    for li in range(n_layers):
        k_self, k_src, k_ff = jax.random.split(keys[li], 3)

        # self-attention: fused QKV projection
        ks = jax.random.split(k_self, 4)
        wq, bq = _linear_params(ks[0], d_model, d_model)
        wk, bk = _linear_params(ks[1], d_model, d_model)
        wv, bv = _linear_params(ks[2], d_model, d_model)
        wo, bo = _linear_params(ks[3], d_model, d_model)
        sa = dict(
            sa_wqkv=jnp.concatenate([wq, wk, wv], axis=1).astype(jnp.bfloat16),
            sa_bqkv=jnp.concatenate([bq, bk, bv]).reshape(1, 3 * d_model),
            sa_wo=wo.astype(jnp.bfloat16),
            sa_bo=bo.reshape(1, d_model),
        )

        # cross-attention: Q over x, fused KV over memory
        ks = jax.random.split(k_src, 4)
        wq, bq = _linear_params(ks[0], d_model, d_model)
        wk, bk = _linear_params(ks[1], d_model, d_model)
        wv, bv = _linear_params(ks[2], d_model, d_model)
        wo, bo = _linear_params(ks[3], d_model, d_model)
        ca = dict(
            ca_wq=wq.astype(jnp.bfloat16),
            ca_bq=bq.reshape(1, d_model),
            ca_wkv=jnp.concatenate([wk, wv], axis=1).astype(jnp.bfloat16),
            ca_bkv=jnp.concatenate([bk, bv]).reshape(1, 2 * d_model),
            ca_wo=wo.astype(jnp.bfloat16),
            ca_bo=bo.reshape(1, d_model),
        )

        # feed-forward
        w1, b1 = _linear_params(k_ff, d_model, ff_dim)
        w2, b2 = _linear_params(jax.random.fold_in(k_ff, 1), ff_dim, d_model)
        ff = dict(
            ff_w1=w1.astype(jnp.bfloat16), ff_b1=b1.reshape(1, ff_dim),
            ff_w2=w2.astype(jnp.bfloat16), ff_b2=b2.reshape(1, d_model),
        )

        lns = dict(
            ln0_a=jnp.ones((1, d_model), jnp.float32),
            ln0_b=jnp.zeros((1, d_model), jnp.float32),
            ln1_a=jnp.ones((1, d_model), jnp.float32),
            ln1_b=jnp.zeros((1, d_model), jnp.float32),
            ln2_a=jnp.ones((1, d_model), jnp.float32),
            ln2_b=jnp.zeros((1, d_model), jnp.float32),
        )
        layers.append({**sa, **ca, **ff, **lns})

    return dict(
        layers=layers,
        final_ln_a=jnp.ones((d_model,), jnp.float32),
        final_ln_b=jnp.zeros((d_model,), jnp.float32),
    )


# ----------------------------------------------------------------------------
if __name__ == "__main__":
    B, T, S, D, H, FF, N_LAYERS = 2, 8, 8, 32, 4, 64, 2

    root = jax.random.PRNGKey(0)
    k_x, k_mem, k_params = jax.random.split(root, 3)

    x = jax.random.normal(k_x, (B, T, D), jnp.float32)
    memory = jax.random.normal(k_mem, (B, S, D), jnp.float32)

    # target mask: causal lower-triangular (1, T, T); src mask: all ones (1, T, S)
    target_mask = jnp.tril(jnp.ones((1, T, T), jnp.float32))
    src_mask = jnp.ones((1, T, S), jnp.float32)

    params = make_decoder_params(k_params, D, FF, N_LAYERS)

    fwd = jax.jit(functools.partial(decoder_forward, num_heads=H))
    out = fwd(params, x, memory, src_mask, target_mask)
    jax.block_until_ready(out)

    assert out.shape == (B, T, D)
    assert bool(jnp.all(jnp.isfinite(out)))
    print("KERNEL_OK")
</pallas_src>

<mosaic_0001>
module attributes {stable_mosaic.version = 11 : i64} {
  func.func @_decoder_layer_kernel(%arg0: i32, %arg1: memref<1x8x32xf32, #tpu.memory_space<vmem>>, %arg2: memref<1x8x32xf32, #tpu.memory_space<vmem>>, %arg3: memref<1x8x8xf32, #tpu.memory_space<vmem>>, %arg4: memref<1x8x8xf32, #tpu.memory_space<vmem>>, %arg5: memref<1x32xf32, #tpu.memory_space<vmem>>, %arg6: memref<1x32xf32, #tpu.memory_space<vmem>>, %arg7: memref<32x96xbf16, #tpu.memory_space<vmem>>, %arg8: memref<1x96xf32, #tpu.memory_space<vmem>>, %arg9: memref<32x32xbf16, #tpu.memory_space<vmem>>, %arg10: memref<1x32xf32, #tpu.memory_space<vmem>>, %arg11: memref<1x32xf32, #tpu.memory_space<vmem>>, %arg12: memref<1x32xf32, #tpu.memory_space<vmem>>, %arg13: memref<32x32xbf16, #tpu.memory_space<vmem>>, %arg14: memref<1x32xf32, #tpu.memory_space<vmem>>, %arg15: memref<32x64xbf16, #tpu.memory_space<vmem>>, %arg16: memref<1x64xf32, #tpu.memory_space<vmem>>, %arg17: memref<32x32xbf16, #tpu.memory_space<vmem>>, %arg18: memref<1x32xf32, #tpu.memory_space<vmem>>, %arg19: memref<1x32xf32, #tpu.memory_space<vmem>>, %arg20: memref<1x32xf32, #tpu.memory_space<vmem>>, %arg21: memref<32x64xbf16, #tpu.memory_space<vmem>>, %arg22: memref<1x64xf32, #tpu.memory_space<vmem>>, %arg23: memref<64x32xbf16, #tpu.memory_space<vmem>>, %arg24: memref<1x32xf32, #tpu.memory_space<vmem>>, %arg25: memref<1x8x32xf32, #tpu.memory_space<vmem>>) attributes {dimension_semantics = [#tpu.dimension_semantics<parallel>], iteration_bounds = array<i64: 2>, scalar_prefetch = 0 : i64, scratch_operands = 0 : i64, tpu.core_type = #tpu.core_type<tc>, window_params = [{transform_indices = @transform_0, window_bounds = array<i64: 1, 8, 32>}, {transform_indices = @transform_1, window_bounds = array<i64: 1, 8, 32>}, {pipeline_mode = #tpu.pipeline_mode<synchronous>, transform_indices = @transform_2, window_bounds = array<i64: 1, 8, 8>}, {pipeline_mode = #tpu.pipeline_mode<synchronous>, transform_indices = @transform_3, window_bounds = array<i64: 1, 8, 8>}, {pipeline_mode = #tpu.pipeline_mode<synchronous>, transform_indices = @transform_4, window_bounds = array<i64: 1, 32>}, {pipeline_mode = #tpu.pipeline_mode<synchronous>, transform_indices = @transform_5, window_bounds = array<i64: 1, 32>}, {pipeline_mode = #tpu.pipeline_mode<synchronous>, transform_indices = @transform_6, window_bounds = array<i64: 32, 96>}, {pipeline_mode = #tpu.pipeline_mode<synchronous>, transform_indices = @transform_7, window_bounds = array<i64: 1, 96>}, {pipeline_mode = #tpu.pipeline_mode<synchronous>, transform_indices = @transform_8, window_bounds = array<i64: 32, 32>}, {pipeline_mode = #tpu.pipeline_mode<synchronous>, transform_indices = @transform_9, window_bounds = array<i64: 1, 32>}, {pipeline_mode = #tpu.pipeline_mode<synchronous>, transform_indices = @transform_10, window_bounds = array<i64: 1, 32>}, {pipeline_mode = #tpu.pipeline_mode<synchronous>, transform_indices = @transform_11, window_bounds = array<i64: 1, 32>}, {pipeline_mode = #tpu.pipeline_mode<synchronous>, transform_indices = @transform_12, window_bounds = array<i64: 32, 32>}, {pipeline_mode = #tpu.pipeline_mode<synchronous>, transform_indices = @transform_13, window_bounds = array<i64: 1, 32>}, {pipeline_mode = #tpu.pipeline_mode<synchronous>, transform_indices = @transform_14, window_bounds = array<i64: 32, 64>}, {pipeline_mode = #tpu.pipeline_mode<synchronous>, transform_indices = @transform_15, window_bounds = array<i64: 1, 64>}, {pipeline_mode = #tpu.pipeline_mode<synchronous>, transform_indices = @transform_16, window_bounds = array<i64: 32, 32>}, {pipeline_mode = #tpu.pipeline_mode<synchronous>, transform_indices = @transform_17, window_bounds = array<i64: 1, 32>}, {pipeline_mode = #tpu.pipeline_mode<synchronous>, transform_indices = @transform_18, window_bounds = array<i64: 1, 32>}, {pipeline_mode = #tpu.pipeline_mode<synchronous>, transform_indices = @transform_19, window_bounds = array<i64: 1, 32>}, {pipeline_mode = #tpu.pipeline_mode<synchronous>, transform_indices = @transform_20, window_bounds = array<i64: 32, 64>}, {pipeline_mode = #tpu.pipeline_mode<synchronous>, transform_indices = @transform_21, window_bounds = array<i64: 1, 64>}, {pipeline_mode = #tpu.pipeline_mode<synchronous>, transform_indices = @transform_22, window_bounds = array<i64: 64, 32>}, {pipeline_mode = #tpu.pipeline_mode<synchronous>, transform_indices = @transform_23, window_bounds = array<i64: 1, 32>}, {transform_indices = @transform_24, window_bounds = array<i64: 1, 8, 32>}]} {
    %c0 = arith.constant 0 : index
    %c0_0 = arith.constant 0 : index
    %c0_1 = arith.constant 0 : index
    %0 = vector.load %arg1[%c0, %c0_0, %c0_1] : memref<1x8x32xf32, #tpu.memory_space<vmem>>, vector<1x8x32xf32>
    %1 = vector.shape_cast %0 : vector<1x8x32xf32> to vector<8x32xf32>
    %c0_2 = arith.constant 0 : index
    %c0_3 = arith.constant 0 : index
    %c0_4 = arith.constant 0 : index
    %2 = vector.load %arg2[%c0_2, %c0_3, %c0_4] : memref<1x8x32xf32, #tpu.memory_space<vmem>>, vector<1x8x32xf32>
    %3 = vector.shape_cast %2 : vector<1x8x32xf32> to vector<8x32xf32>
    %c0_5 = arith.constant 0 : index
    %c0_6 = arith.constant 0 : index
    %4 = vector.load %arg5[%c0_5, %c0_6] : memref<1x32xf32, #tpu.memory_space<vmem>>, vector<1x32xf32>
    %c0_7 = arith.constant 0 : index
    %c0_8 = arith.constant 0 : index
    %5 = vector.load %arg6[%c0_7, %c0_8] : memref<1x32xf32, #tpu.memory_space<vmem>>, vector<1x32xf32>
    %cst = arith.constant dense<0.000000e+00> : vector<8xf32>
    %6 = vector.multi_reduction <add>, %1, %cst [1] : vector<8x32xf32> to vector<8xf32>
    %7 = vector.shape_cast %6 : vector<8xf32> to vector<8x1xf32>
    %cst_9 = arith.constant 3.200000e+01 : f32
    %8 = vector.broadcast %cst_9 : f32 to vector<8x1xf32>
    %9 = arith.divf %7, %8 : vector<8x1xf32>
    %10 = vector.broadcast %9 : vector<8x1xf32> to vector<8x32xf32>
    %11 = arith.subf %1, %10 : vector<8x32xf32>
    %12 = arith.mulf %11, %11 : vector<8x32xf32>
    %cst_10 = arith.constant dense<0.000000e+00> : vector<8xf32>
    %13 = vector.multi_reduction <add>, %12, %cst_10 [1] : vector<8x32xf32> to vector<8xf32>
    %14 = vector.shape_cast %13 : vector<8xf32> to vector<8x1xf32>
    %cst_11 = arith.constant 0.0322580636 : f32
    %15 = vector.broadcast %cst_11 : f32 to vector<8x1xf32>
    %16 = arith.mulf %14, %15 : vector<8x1xf32>
    %17 = math.sqrt %16 : vector<8x1xf32>
    %cst_12 = arith.constant 9.99999997E-7 : f32
    %18 = vector.broadcast %cst_12 : f32 to vector<8x1xf32>
    %19 = arith.addf %17, %18 : vector<8x1xf32>
    %cst_13 = arith.constant 1.000000e+00 : f32
    %20 = vector.broadcast %cst_13 : f32 to vector<8x1xf32>
    %21 = arith.divf %20, %19 : vector<8x1xf32>
    %22 = vector.broadcast %21 : vector<8x1xf32> to vector<8x32xf32>
    %23 = arith.mulf %11, %22 : vector<8x32xf32>
    %24 = vector.broadcast %4 : vector<1x32xf32> to vector<8x32xf32>
    %25 = arith.mulf %24, %23 : vector<8x32xf32>
    %26 = vector.broadcast %5 : vector<1x32xf32> to vector<8x32xf32>
    %27 = arith.addf %25, %26 : vector<8x32xf32>
    %c0_14 = arith.constant 0 : index
    %c0_15 = arith.constant 0 : index
    %28 = vector.load %arg7[%c0_14, %c0_15] : memref<32x96xbf16, #tpu.memory_space<vmem>>, vector<32x96xbf16>
    %c0_16 = arith.constant 0 : index
    %c0_17 = arith.constant 0 : index
    %29 = vector.load %arg8[%c0_16, %c0_17] : memref<1x96xf32, #tpu.memory_space<vmem>>, vector<1x96xf32>
    %30 = arith.truncf %27 : vector<8x32xf32> to vector<8x32xbf16>
    %cst_18 = arith.constant dense<0.000000e+00> : vector<8x96xf32>
    %31 = tpu.matmul %30, %28, %cst_18 {dimension_numbers = #tpu.dot_dimension_numbers<[1], [0], [0], [1], [0, 0, 1, 1], [], []>} : vector<8x32xbf16>, vector<32x96xbf16>, vector<8x96xf32> -> vector<8x96xf32>
    %32 = vector.broadcast %29 : vector<1x96xf32> to vector<8x96xf32>
    %33 = arith.addf %31, %32 : vector<8x96xf32>
    %34 = vector.extract_strided_slice %33 {offsets = [0, 0], sizes = [8, 32], strides = [1, 1]} : vector<8x96xf32> to vector<8x32xf32>
    %35 = vector.extract_strided_slice %33 {offsets = [0, 32], sizes = [8, 32], strides = [1, 1]} : vector<8x96xf32> to vector<8x32xf32>
    %36 = vector.extract_strided_slice %33 {offsets = [0, 64], sizes = [8, 32], strides = [1, 1]} : vector<8x96xf32> to vector<8x32xf32>
    %c0_19 = arith.constant 0 : index
    %c0_20 = arith.constant 0 : index
    %c0_21 = arith.constant 0 : index
    %37 = vector.load %arg3[%c0_19, %c0_20, %c0_21] : memref<1x8x8xf32, #tpu.memory_space<vmem>>, vector<1x8x8xf32>
    %38 = vector.shape_cast %37 : vector<1x8x8xf32> to vector<8x8xf32>
    %cst_22 = arith.constant 0.353553385 : f32
    %39 = vector.broadcast %cst_22 : f32 to vector<8x32xf32>
    %40 = arith.mulf %34, %39 : vector<8x32xf32>
    %41 = vector.extract_strided_slice %40 {offsets = [0, 0], sizes = [8, 8], strides = [1, 1]} : vector<8x32xf32> to vector<8x8xf32>
    %42 = vector.extract_strided_slice %35 {offsets = [0, 0], sizes = [8, 8], strides = [1, 1]} : vector<8x32xf32> to vector<8x8xf32>
    %43 = tpu.transpose %42, [1, 0] : vector<8x8xf32> -> vector<8x8xf32>
    %cst_23 = arith.constant dense<0.000000e+00> : vector<8x8xf32>
    %44 = tpu.matmul %41, %43, %cst_23 {dimension_numbers = #tpu.dot_dimension_numbers<[1], [0], [0], [1], [0, 0, 1, 1], [], []>} : vector<8x8xf32>, vector<8x8xf32>, vector<8x8xf32> -> vector<8x8xf32>
    %45 = arith.addf %44, %38 : vector<8x8xf32>
    %cst_24 = arith.constant dense<0xFF800000> : vector<8xf32>
    %46 = vector.multi_reduction <maximumf>, %45, %cst_24 [1] : vector<8x8xf32> to vector<8xf32>
    %47 = vector.shape_cast %46 : vector<8xf32> to vector<8x1xf32>
    %48 = vector.broadcast %47 : vector<8x1xf32> to vector<8x8xf32>
    %49 = arith.subf %45, %48 : vector<8x8xf32>
    %50 = math.exp %49 : vector<8x8xf32>
    %cst_25 = arith.constant dense<0.000000e+00> : vector<8xf32>
    %51 = vector.multi_reduction <add>, %50, %cst_25 [1] : vector<8x8xf32> to vector<8xf32>
    %52 = vector.shape_cast %51 : vector<8xf32> to vector<8x1xf32>
    %53 = tpu.reciprocal %52 {approx = true} : vector<8x1xf32> -> vector<8x1xf32>
    %54 = vector.broadcast %53 : vector<8x1xf32> to vector<8x8xf32>
    %55 = arith.mulf %50, %54 : vector<8x8xf32>
    %56 = vector.extract_strided_slice %36 {offsets = [0, 0], sizes = [8, 8], strides = [1, 1]} : vector<8x32xf32> to vector<8x8xf32>
    %cst_26 = arith.constant dense<0.000000e+00> : vector<8x8xf32>
    %57 = tpu.matmul %55, %56, %cst_26 {dimension_numbers = #tpu.dot_dimension_numbers<[1], [0], [0], [1], [0, 0, 1, 1], [], []>} : vector<8x8xf32>, vector<8x8xf32>, vector<8x8xf32> -> vector<8x8xf32>
    %58 = vector.extract_strided_slice %40 {offsets = [0, 8], sizes = [8, 8], strides = [1, 1]} : vector<8x32xf32> to vector<8x8xf32>
    %59 = vector.extract_strided_slice %35 {offsets = [0, 8], sizes = [8, 8], strides = [1, 1]} : vector<8x32xf32> to vector<8x8xf32>
    %60 = tpu.transpose %59, [1, 0] : vector<8x8xf32> -> vector<8x8xf32>
    %cst_27 = arith.constant dense<0.000000e+00> : vector<8x8xf32>
    %61 = tpu.matmul %58, %60, %cst_27 {dimension_numbers = #tpu.dot_dimension_numbers<[1], [0], [0], [1], [0, 0, 1, 1], [], []>} : vector<8x8xf32>, vector<8x8xf32>, vector<8x8xf32> -> vector<8x8xf32>
    %62 = arith.addf %61, %38 : vector<8x8xf32>
    %cst_28 = arith.constant dense<0xFF800000> : vector<8xf32>
    %63 = vector.multi_reduction <maximumf>, %62, %cst_28 [1] : vector<8x8xf32> to vector<8xf32>
    %64 = vector.shape_cast %63 : vector<8xf32> to vector<8x1xf32>
    %65 = vector.broadcast %64 : vector<8x1xf32> to vector<8x8xf32>
    %66 = arith.subf %62, %65 : vector<8x8xf32>
    %67 = math.exp %66 : vector<8x8xf32>
    %cst_29 = arith.constant dense<0.000000e+00> : vector<8xf32>
    %68 = vector.multi_reduction <add>, %67, %cst_29 [1] : vector<8x8xf32> to vector<8xf32>
    %69 = vector.shape_cast %68 : vector<8xf32> to vector<8x1xf32>
    %70 = tpu.reciprocal %69 {approx = true} : vector<8x1xf32> -> vector<8x1xf32>
    %71 = vector.broadcast %70 : vector<8x1xf32> to vector<8x8xf32>
    %72 = arith.mulf %67, %71 : vector<8x8xf32>
    %73 = vector.extract_strided_slice %36 {offsets = [0, 8], sizes = [8, 8], strides = [1, 1]} : vector<8x32xf32> to vector<8x8xf32>
    %cst_30 = arith.constant dense<0.000000e+00> : vector<8x8xf32>
    %74 = tpu.matmul %72, %73, %cst_30 {dimension_numbers = #tpu.dot_dimension_numbers<[1], [0], [0], [1], [0, 0, 1, 1], [], []>} : vector<8x8xf32>, vector<8x8xf32>, vector<8x8xf32> -> vector<8x8xf32>
    %75 = vector.extract_strided_slice %40 {offsets = [0, 16], sizes = [8, 8], strides = [1, 1]} : vector<8x32xf32> to vector<8x8xf32>
    %76 = vector.extract_strided_slice %35 {offsets = [0, 16], sizes = [8, 8], strides = [1, 1]} : vector<8x32xf32> to vector<8x8xf32>
    %77 = tpu.transpose %76, [1, 0] : vector<8x8xf32> -> vector<8x8xf32>
    %cst_31 = arith.constant dense<0.000000e+00> : vector<8x8xf32>
    %78 = tpu.matmul %75, %77, %cst_31 {dimension_numbers = #tpu.dot_dimension_numbers<[1], [0], [0], [1], [0, 0, 1, 1], [], []>} : vector<8x8xf32>, vector<8x8xf32>, vector<8x8xf32> -> vector<8x8xf32>
    %79 = arith.addf %78, %38 : vector<8x8xf32>
    %cst_32 = arith.constant dense<0xFF800000> : vector<8xf32>
    %80 = vector.multi_reduction <maximumf>, %79, %cst_32 [1] : vector<8x8xf32> to vector<8xf32>
    %81 = vector.shape_cast %80 : vector<8xf32> to vector<8x1xf32>
    %82 = vector.broadcast %81 : vector<8x1xf32> to vector<8x8xf32>
    %83 = arith.subf %79, %82 : vector<8x8xf32>
    %84 = math.exp %83 : vector<8x8xf32>
    %cst_33 = arith.constant dense<0.000000e+00> : vector<8xf32>
    %85 = vector.multi_reduction <add>, %84, %cst_33 [1] : vector<8x8xf32> to vector<8xf32>
    %86 = vector.shape_cast %85 : vector<8xf32> to vector<8x1xf32>
    %87 = tpu.reciprocal %86 {approx = true} : vector<8x1xf32> -> vector<8x1xf32>
    %88 = vector.broadcast %87 : vector<8x1xf32> to vector<8x8xf32>
    %89 = arith.mulf %84, %88 : vector<8x8xf32>
    %90 = vector.extract_strided_slice %36 {offsets = [0, 16], sizes = [8, 8], strides = [1, 1]} : vector<8x32xf32> to vector<8x8xf32>
    %cst_34 = arith.constant dense<0.000000e+00> : vector<8x8xf32>
    %91 = tpu.matmul %89, %90, %cst_34 {dimension_numbers = #tpu.dot_dimension_numbers<[1], [0], [0], [1], [0, 0, 1, 1], [], []>} : vector<8x8xf32>, vector<8x8xf32>, vector<8x8xf32> -> vector<8x8xf32>
    %92 = vector.extract_strided_slice %40 {offsets = [0, 24], sizes = [8, 8], strides = [1, 1]} : vector<8x32xf32> to vector<8x8xf32>
    %93 = vector.extract_strided_slice %35 {offsets = [0, 24], sizes = [8, 8], strides = [1, 1]} : vector<8x32xf32> to vector<8x8xf32>
    %94 = tpu.transpose %93, [1, 0] : vector<8x8xf32> -> vector<8x8xf32>
    %cst_35 = arith.constant dense<0.000000e+00> : vector<8x8xf32>
    %95 = tpu.matmul %92, %94, %cst_35 {dimension_numbers = #tpu.dot_dimension_numbers<[1], [0], [0], [1], [0, 0, 1, 1], [], []>} : vector<8x8xf32>, vector<8x8xf32>, vector<8x8xf32> -> vector<8x8xf32>
    %96 = arith.addf %95, %38 : vector<8x8xf32>
    %cst_36 = arith.constant dense<0xFF800000> : vector<8xf32>
    %97 = vector.multi_reduction <maximumf>, %96, %cst_36 [1] : vector<8x8xf32> to vector<8xf32>
    %98 = vector.shape_cast %97 : vector<8xf32> to vector<8x1xf32>
    %99 = vector.broadcast %98 : vector<8x1xf32> to vector<8x8xf32>
    %100 = arith.subf %96, %99 : vector<8x8xf32>
    %101 = math.exp %100 : vector<8x8xf32>
    %cst_37 = arith.constant dense<0.000000e+00> : vector<8xf32>
    %102 = vector.multi_reduction <add>, %101, %cst_37 [1] : vector<8x8xf32> to vector<8xf32>
    %103 = vector.shape_cast %102 : vector<8xf32> to vector<8x1xf32>
    %104 = tpu.reciprocal %103 {approx = true} : vector<8x1xf32> -> vector<8x1xf32>
    %105 = vector.broadcast %104 : vector<8x1xf32> to vector<8x8xf32>
    %106 = arith.mulf %101, %105 : vector<8x8xf32>
    %107 = vector.extract_strided_slice %36 {offsets = [0, 24], sizes = [8, 8], strides = [1, 1]} : vector<8x32xf32> to vector<8x8xf32>
    %cst_38 = arith.constant dense<0.000000e+00> : vector<8x8xf32>
    %108 = tpu.matmul %106, %107, %cst_38 {dimension_numbers = #tpu.dot_dimension_numbers<[1], [0], [0], [1], [0, 0, 1, 1], [], []>} : vector<8x8xf32>, vector<8x8xf32>, vector<8x8xf32> -> vector<8x8xf32>
    %109 = tpu.concatenate %57, %74, %91, %108 in 1 : vector<8x8xf32>, vector<8x8xf32>, vector<8x8xf32>, vector<8x8xf32> -> vector<8x32xf32>
    %c0_39 = arith.constant 0 : index
    %c0_40 = arith.constant 0 : index
    %110 = vector.load %arg9[%c0_39, %c0_40] : memref<32x32xbf16, #tpu.memory_space<vmem>>, vector<32x32xbf16>
    %c0_41 = arith.constant 0 : index
    %c0_42 = arith.constant 0 : index
    %111 = vector.load %arg10[%c0_41, %c0_42] : memref<1x32xf32, #tpu.memory_space<vmem>>, vector<1x32xf32>
    %112 = arith.truncf %109 : vector<8x32xf32> to vector<8x32xbf16>
    %cst_43 = arith.constant dense<0.000000e+00> : vector<8x32xf32>
    %113 = tpu.matmul %112, %110, %cst_43 {dimension_numbers = #tpu.dot_dimension_numbers<[1], [0], [0], [1], [0, 0, 1, 1], [], []>} : vector<8x32xbf16>, vector<32x32xbf16>, vector<8x32xf32> -> vector<8x32xf32>
    %114 = vector.broadcast %111 : vector<1x32xf32> to vector<8x32xf32>
    %115 = arith.addf %113, %114 : vector<8x32xf32>
    %116 = arith.addf %1, %115 : vector<8x32xf32>
    %c0_44 = arith.constant 0 : index
    %c0_45 = arith.constant 0 : index
    %117 = vector.load %arg11[%c0_44, %c0_45] : memref<1x32xf32, #tpu.memory_space<vmem>>, vector<1x32xf32>
    %c0_46 = arith.constant 0 : index
    %c0_47 = arith.constant 0 : index
    %118 = vector.load %arg12[%c0_46, %c0_47] : memref<1x32xf32, #tpu.memory_space<vmem>>, vector<1x32xf32>
    %cst_48 = arith.constant dense<0.000000e+00> : vector<8xf32>
    %119 = vector.multi_reduction <add>, %116, %cst_48 [1] : vector<8x32xf32> to vector<8xf32>
    %120 = vector.shape_cast %119 : vector<8xf32> to vector<8x1xf32>
    %cst_49 = arith.constant 3.200000e+01 : f32
    %121 = vector.broadcast %cst_49 : f32 to vector<8x1xf32>
    %122 = arith.divf %120, %121 : vector<8x1xf32>
    %123 = vector.broadcast %122 : vector<8x1xf32> to vector<8x32xf32>
    %124 = arith.subf %116, %123 : vector<8x32xf32>
    %125 = arith.mulf %124, %124 : vector<8x32xf32>
    %cst_50 = arith.constant dense<0.000000e+00> : vector<8xf32>
    %126 = vector.multi_reduction <add>, %125, %cst_50 [1] : vector<8x32xf32> to vector<8xf32>
    %127 = vector.shape_cast %126 : vector<8xf32> to vector<8x1xf32>
    %cst_51 = arith.constant 0.0322580636 : f32
    %128 = vector.broadcast %cst_51 : f32 to vector<8x1xf32>
    %129 = arith.mulf %127, %128 : vector<8x1xf32>
    %130 = math.sqrt %129 : vector<8x1xf32>
    %cst_52 = arith.constant 9.99999997E-7 : f32
    %131 = vector.broadcast %cst_52 : f32 to vector<8x1xf32>
    %132 = arith.addf %130, %131 : vector<8x1xf32>
    %cst_53 = arith.constant 1.000000e+00 : f32
    %133 = vector.broadcast %cst_53 : f32 to vector<8x1xf32>
    %134 = arith.divf %133, %132 : vector<8x1xf32>
    %135 = vector.broadcast %134 : vector<8x1xf32> to vector<8x32xf32>
    %136 = arith.mulf %124, %135 : vector<8x32xf32>
    %137 = vector.broadcast %117 : vector<1x32xf32> to vector<8x32xf32>
    %138 = arith.mulf %137, %136 : vector<8x32xf32>
    %139 = vector.broadcast %118 : vector<1x32xf32> to vector<8x32xf32>
    %140 = arith.addf %138, %139 : vector<8x32xf32>
    %c0_54 = arith.constant 0 : index
    %c0_55 = arith.constant 0 : index
    %141 = vector.load %arg13[%c0_54, %c0_55] : memref<32x32xbf16, #tpu.memory_space<vmem>>, vector<32x32xbf16>
    %c0_56 = arith.constant 0 : index
    %c0_57 = arith.constant 0 : index
    %142 = vector.load %arg14[%c0_56, %c0_57] : memref<1x32xf32, #tpu.memory_space<vmem>>, vector<1x32xf32>
    %143 = arith.truncf %140 : vector<8x32xf32> to vector<8x32xbf16>
    %cst_58 = arith.constant dense<0.000000e+00> : vector<8x32xf32>
    %144 = tpu.matmul %143, %141, %cst_58 {dimension_numbers = #tpu.dot_dimension_numbers<[1], [0], [0], [1], [0, 0, 1, 1], [], []>} : vector<8x32xbf16>, vector<32x32xbf16>, vector<8x32xf32> -> vector<8x32xf32>
    %145 = vector.broadcast %142 : vector<1x32xf32> to vector<8x32xf32>
    %146 = arith.addf %144, %145 : vector<8x32xf32>
    %c0_59 = arith.constant 0 : index
    %c0_60 = arith.constant 0 : index
    %147 = vector.load %arg15[%c0_59, %c0_60] : memref<32x64xbf16, #tpu.memory_space<vmem>>, vector<32x64xbf16>
    %c0_61 = arith.constant 0 : index
    %c0_62 = arith.constant 0 : index
    %148 = vector.load %arg16[%c0_61, %c0_62] : memref<1x64xf32, #tpu.memory_space<vmem>>, vector<1x64xf32>
    %149 = arith.truncf %3 : vector<8x32xf32> to vector<8x32xbf16>
    %cst_63 = arith.constant dense<0.000000e+00> : vector<8x64xf32>
    %150 = tpu.matmul %149, %147, %cst_63 {dimension_numbers = #tpu.dot_dimension_numbers<[1], [0], [0], [1], [0, 0, 1, 1], [], []>} : vector<8x32xbf16>, vector<32x64xbf16>, vector<8x64xf32> -> vector<8x64xf32>
    %151 = vector.broadcast %148 : vector<1x64xf32> to vector<8x64xf32>
    %152 = arith.addf %150, %151 : vector<8x64xf32>
    %153 = vector.extract_strided_slice %152 {offsets = [0, 0], sizes = [8, 32], strides = [1, 1]} : vector<8x64xf32> to vector<8x32xf32>
    %154 = vector.extract_strided_slice %152 {offsets = [0, 32], sizes = [8, 32], strides = [1, 1]} : vector<8x64xf32> to vector<8x32xf32>
    %c0_64 = arith.constant 0 : index
    %c0_65 = arith.constant 0 : index
    %c0_66 = arith.constant 0 : index
    %155 = vector.load %arg4[%c0_64, %c0_65, %c0_66] : memref<1x8x8xf32, #tpu.memory_space<vmem>>, vector<1x8x8xf32>
    %156 = vector.shape_cast %155 : vector<1x8x8xf32> to vector<8x8xf32>
    %cst_67 = arith.constant 0.353553385 : f32
    %157 = vector.broadcast %cst_67 : f32 to vector<8x32xf32>
    %158 = arith.mulf %146, %157 : vector<8x32xf32>
    %159 = vector.extract_strided_slice %158 {offsets = [0, 0], sizes = [8, 8], strides = [1, 1]} : vector<8x32xf32> to vector<8x8xf32>
    %160 = vector.extract_strided_slice %153 {offsets = [0, 0], sizes = [8, 8], strides = [1, 1]} : vector<8x32xf32> to vector<8x8xf32>
    %161 = tpu.transpose %160, [1, 0] : vector<8x8xf32> -> vector<8x8xf32>
    %cst_68 = arith.constant dense<0.000000e+00> : vector<8x8xf32>
    %162 = tpu.matmul %159, %161, %cst_68 {dimension_numbers = #tpu.dot_dimension_numbers<[1], [0], [0], [1], [0, 0, 1, 1], [], []>} : vector<8x8xf32>, vector<8x8xf32>, vector<8x8xf32> -> vector<8x8xf32>
    %163 = arith.addf %162, %156 : vector<8x8xf32>
    %cst_69 = arith.constant dense<0xFF800000> : vector<8xf32>
    %164 = vector.multi_reduction <maximumf>, %163, %cst_69 [1] : vector<8x8xf32> to vector<8xf32>
    %165 = vector.shape_cast %164 : vector<8xf32> to vector<8x1xf32>
    %166 = vector.broadcast %165 : vector<8x1xf32> to vector<8x8xf32>
    %167 = arith.subf %163, %166 : vector<8x8xf32>
    %168 = math.exp %167 : vector<8x8xf32>
    %cst_70 = arith.constant dense<0.000000e+00> : vector<8xf32>
    %169 = vector.multi_reduction <add>, %168, %cst_70 [1] : vector<8x8xf32> to vector<8xf32>
    %170 = vector.shape_cast %169 : vector<8xf32> to vector<8x1xf32>
    %171 = tpu.reciprocal %170 {approx = true} : vector<8x1xf32> -> vector<8x1xf32>
    %172 = vector.broadcast %171 : vector<8x1xf32> to vector<8x8xf32>
    %173 = arith.mulf %168, %172 : vector<8x8xf32>
    %174 = vector.extract_strided_slice %154 {offsets = [0, 0], sizes = [8, 8], strides = [1, 1]} : vector<8x32xf32> to vector<8x8xf32>
    %cst_71 = arith.constant dense<0.000000e+00> : vector<8x8xf32>
    %175 = tpu.matmul %173, %174, %cst_71 {dimension_numbers = #tpu.dot_dimension_numbers<[1], [0], [0], [1], [0, 0, 1, 1], [], []>} : vector<8x8xf32>, vector<8x8xf32>, vector<8x8xf32> -> vector<8x8xf32>
    %176 = vector.extract_strided_slice %158 {offsets = [0, 8], sizes = [8, 8], strides = [1, 1]} : vector<8x32xf32> to vector<8x8xf32>
    %177 = vector.extract_strided_slice %153 {offsets = [0, 8], sizes = [8, 8], strides = [1, 1]} : vector<8x32xf32> to vector<8x8xf32>
    %178 = tpu.transpose %177, [1, 0] : vector<8x8xf32> -> vector<8x8xf32>
    %cst_72 = arith.constant dense<0.000000e+00> : vector<8x8xf32>
    %179 = tpu.matmul %176, %178, %cst_72 {dimension_numbers = #tpu.dot_dimension_numbers<[1], [0], [0], [1], [0, 0, 1, 1], [], []>} : vector<8x8xf32>, vector<8x8xf32>, vector<8x8xf32> -> vector<8x8xf32>
    %180 = arith.addf %179, %156 : vector<8x8xf32>
    %cst_73 = arith.constant dense<0xFF800000> : vector<8xf32>
    %181 = vector.multi_reduction <maximumf>, %180, %cst_73 [1] : vector<8x8xf32> to vector<8xf32>
    %182 = vector.shape_cast %181 : vector<8xf32> to vector<8x1xf32>
    %183 = vector.broadcast %182 : vector<8x1xf32> to vector<8x8xf32>
    %184 = arith.subf %180, %183 : vector<8x8xf32>
    %185 = math.exp %184 : vector<8x8xf32>
    %cst_74 = arith.constant dense<0.000000e+00> : vector<8xf32>
    %186 = vector.multi_reduction <add>, %185, %cst_74 [1] : vector<8x8xf32> to vector<8xf32>
    %187 = vector.shape_cast %186 : vector<8xf32> to vector<8x1xf32>
    %188 = tpu.reciprocal %187 {approx = true} : vector<8x1xf32> -> vector<8x1xf32>
    %189 = vector.broadcast %188 : vector<8x1xf32> to vector<8x8xf32>
    %190 = arith.mulf %185, %189 : vector<8x8xf32>
    %191 = vector.extract_strided_slice %154 {offsets = [0, 8], sizes = [8, 8], strides = [1, 1]} : vector<8x32xf32> to vector<8x8xf32>
    %cst_75 = arith.constant dense<0.000000e+00> : vector<8x8xf32>
    %192 = tpu.matmul %190, %191, %cst_75 {dimension_numbers = #tpu.dot_dimension_numbers<[1], [0], [0], [1], [0, 0, 1, 1], [], []>} : vector<8x8xf32>, vector<8x8xf32>, vector<8x8xf32> -> vector<8x8xf32>
    %193 = vector.extract_strided_slice %158 {offsets = [0, 16], sizes = [8, 8], strides = [1, 1]} : vector<8x32xf32> to vector<8x8xf32>
    %194 = vector.extract_strided_slice %153 {offsets = [0, 16], sizes = [8, 8], strides = [1, 1]} : vector<8x32xf32> to vector<8x8xf32>
    %195 = tpu.transpose %194, [1, 0] : vector<8x8xf32> -> vector<8x8xf32>
    %cst_76 = arith.constant dense<0.000000e+00> : vector<8x8xf32>
    %196 = tpu.matmul %193, %195, %cst_76 {dimension_numbers = #tpu.dot_dimension_numbers<[1], [0], [0], [1], [0, 0, 1, 1], [], []>} : vector<8x8xf32>, vector<8x8xf32>, vector<8x8xf32> -> vector<8x8xf32>
    %197 = arith.addf %196, %156 : vector<8x8xf32>
    %cst_77 = arith.constant dense<0xFF800000> : vector<8xf32>
    %198 = vector.multi_reduction <maximumf>, %197, %cst_77 [1] : vector<8x8xf32> to vector<8xf32>
    %199 = vector.shape_cast %198 : vector<8xf32> to vector<8x1xf32>
    %200 = vector.broadcast %199 : vector<8x1xf32> to vector<8x8xf32>
    %201 = arith.subf %197, %200 : vector<8x8xf32>
    %202 = math.exp %201 : vector<8x8xf32>
    %cst_78 = arith.constant dense<0.000000e+00> : vector<8xf32>
    %203 = vector.multi_reduction <add>, %202, %cst_78 [1] : vector<8x8xf32> to vector<8xf32>
    %204 = vector.shape_cast %203 : vector<8xf32> to vector<8x1xf32>
    %205 = tpu.reciprocal %204 {approx = true} : vector<8x1xf32> -> vector<8x1xf32>
    %206 = vector.broadcast %205 : vector<8x1xf32> to vector<8x8xf32>
    %207 = arith.mulf %202, %206 : vector<8x8xf32>
    %208 = vector.extract_strided_slice %154 {offsets = [0, 16], sizes = [8, 8], strides = [1, 1]} : vector<8x32xf32> to vector<8x8xf32>
    %cst_79 = arith.constant dense<0.000000e+00> : vector<8x8xf32>
    %209 = tpu.matmul %207, %208, %cst_79 {dimension_numbers = #tpu.dot_dimension_numbers<[1], [0], [0], [1], [0, 0, 1, 1], [], []>} : vector<8x8xf32>, vector<8x8xf32>, vector<8x8xf32> -> vector<8x8xf32>
    %210 = vector.extract_strided_slice %158 {offsets = [0, 24], sizes = [8, 8], strides = [1, 1]} : vector<8x32xf32> to vector<8x8xf32>
    %211 = vector.extract_strided_slice %153 {offsets = [0, 24], sizes = [8, 8], strides = [1, 1]} : vector<8x32xf32> to vector<8x8xf32>
    %212 = tpu.transpose %211, [1, 0] : vector<8x8xf32> -> vector<8x8xf32>
    %cst_80 = arith.constant dense<0.000000e+00> : vector<8x8xf32>
    %213 = tpu.matmul %210, %212, %cst_80 {dimension_numbers = #tpu.dot_dimension_numbers<[1], [0], [0], [1], [0, 0, 1, 1], [], []>} : vector<8x8xf32>, vector<8x8xf32>, vector<8x8xf32> -> vector<8x8xf32>
    %214 = arith.addf %213, %156 : vector<8x8xf32>
    %cst_81 = arith.constant dense<0xFF800000> : vector<8xf32>
    %215 = vector.multi_reduction <maximumf>, %214, %cst_81 [1] : vector<8x8xf32> to vector<8xf32>
    %216 = vector.shape_cast %215 : vector<8xf32> to vector<8x1xf32>
    %217 = vector.broadcast %216 : vector<8x1xf32> to vector<8x8xf32>
    %218 = arith.subf %214, %217 : vector<8x8xf32>
    %219 = math.exp %218 : vector<8x8xf32>
    %cst_82 = arith.constant dense<0.000000e+00> : vector<8xf32>
    %220 = vector.multi_reduction <add>, %219, %cst_82 [1] : vector<8x8xf32> to vector<8xf32>
    %221 = vector.shape_cast %220 : vector<8xf32> to vector<8x1xf32>
    %222 = tpu.reciprocal %221 {approx = true} : vector<8x1xf32> -> vector<8x1xf32>
    %223 = vector.broadcast %222 : vector<8x1xf32> to vector<8x8xf32>
    %224 = arith.mulf %219, %223 : vector<8x8xf32>
    %225 = vector.extract_strided_slice %154 {offsets = [0, 24], sizes = [8, 8], strides = [1, 1]} : vector<8x32xf32> to vector<8x8xf32>
    %cst_83 = arith.constant dense<0.000000e+00> : vector<8x8xf32>
    %226 = tpu.matmul %224, %225, %cst_83 {dimension_numbers = #tpu.dot_dimension_numbers<[1], [0], [0], [1], [0, 0, 1, 1], [], []>} : vector<8x8xf32>, vector<8x8xf32>, vector<8x8xf32> -> vector<8x8xf32>
    %227 = tpu.concatenate %175, %192, %209, %226 in 1 : vector<8x8xf32>, vector<8x8xf32>, vector<8x8xf32>, vector<8x8xf32> -> vector<8x32xf32>
    %c0_84 = arith.constant 0 : index
    %c0_85 = arith.constant 0 : index
    %228 = vector.load %arg17[%c0_84, %c0_85] : memref<32x32xbf16, #tpu.memory_space<vmem>>, vector<32x32xbf16>
    %c0_86 = arith.constant 0 : index
    %c0_87 = arith.constant 0 : index
    %229 = vector.load %arg18[%c0_86, %c0_87] : memref<1x32xf32, #tpu.memory_space<vmem>>, vector<1x32xf32>
    %230 = arith.truncf %227 : vector<8x32xf32> to vector<8x32xbf16>
    %cst_88 = arith.constant dense<0.000000e+00> : vector<8x32xf32>
    %231 = tpu.matmul %230, %228, %cst_88 {dimension_numbers = #tpu.dot_dimension_numbers<[1], [0], [0], [1], [0, 0, 1, 1], [], []>} : vector<8x32xbf16>, vector<32x32xbf16>, vector<8x32xf32> -> vector<8x32xf32>
    %232 = vector.broadcast %229 : vector<1x32xf32> to vector<8x32xf32>
    %233 = arith.addf %231, %232 : vector<8x32xf32>
    %234 = arith.addf %116, %233 : vector<8x32xf32>
    %c0_89 = arith.constant 0 : index
    %c0_90 = arith.constant 0 : index
    %235 = vector.load %arg19[%c0_89, %c0_90] : memref<1x32xf32, #tpu.memory_space<vmem>>, vector<1x32xf32>
    %c0_91 = arith.constant 0 : index
    %c0_92 = arith.constant 0 : index
    %236 = vector.load %arg20[%c0_91, %c0_92] : memref<1x32xf32, #tpu.memory_space<vmem>>, vector<1x32xf32>
    %cst_93 = arith.constant dense<0.000000e+00> : vector<8xf32>
    %237 = vector.multi_reduction <add>, %234, %cst_93 [1] : vector<8x32xf32> to vector<8xf32>
    %238 = vector.shape_cast %237 : vector<8xf32> to vector<8x1xf32>
    %cst_94 = arith.constant 3.200000e+01 : f32
    %239 = vector.broadcast %cst_94 : f32 to vector<8x1xf32>
    %240 = arith.divf %238, %239 : vector<8x1xf32>
    %241 = vector.broadcast %240 : vector<8x1xf32> to vector<8x32xf32>
    %242 = arith.subf %234, %241 : vector<8x32xf32>
    %243 = arith.mulf %242, %242 : vector<8x32xf32>
    %cst_95 = arith.constant dense<0.000000e+00> : vector<8xf32>
    %244 = vector.multi_reduction <add>, %243, %cst_95 [1] : vector<8x32xf32> to vector<8xf32>
    %245 = vector.shape_cast %244 : vector<8xf32> to vector<8x1xf32>
    %cst_96 = arith.constant 0.0322580636 : f32
    %246 = vector.broadcast %cst_96 : f32 to vector<8x1xf32>
    %247 = arith.mulf %245, %246 : vector<8x1xf32>
    %248 = math.sqrt %247 : vector<8x1xf32>
    %cst_97 = arith.constant 9.99999997E-7 : f32
    %249 = vector.broadcast %cst_97 : f32 to vector<8x1xf32>
    %250 = arith.addf %248, %249 : vector<8x1xf32>
    %cst_98 = arith.constant 1.000000e+00 : f32
    %251 = vector.broadcast %cst_98 : f32 to vector<8x1xf32>
    %252 = arith.divf %251, %250 : vector<8x1xf32>
    %253 = vector.broadcast %252 : vector<8x1xf32> to vector<8x32xf32>
    %254 = arith.mulf %242, %253 : vector<8x32xf32>
    %255 = vector.broadcast %235 : vector<1x32xf32> to vector<8x32xf32>
    %256 = arith.mulf %255, %254 : vector<8x32xf32>
    %257 = vector.broadcast %236 : vector<1x32xf32> to vector<8x32xf32>
    %258 = arith.addf %256, %257 : vector<8x32xf32>
    %c0_99 = arith.constant 0 : index
    %c0_100 = arith.constant 0 : index
    %259 = vector.load %arg21[%c0_99, %c0_100] : memref<32x64xbf16, #tpu.memory_space<vmem>>, vector<32x64xbf16>
    %c0_101 = arith.constant 0 : index
    %c0_102 = arith.constant 0 : index
    %260 = vector.load %arg22[%c0_101, %c0_102] : memref<1x64xf32, #tpu.memory_space<vmem>>, vector<1x64xf32>
    %261 = arith.truncf %258 : vector<8x32xf32> to vector<8x32xbf16>
    %cst_103 = arith.constant dense<0.000000e+00> : vector<8x64xf32>
    %262 = tpu.matmul %261, %259, %cst_103 {dimension_numbers = #tpu.dot_dimension_numbers<[1], [0], [0], [1], [0, 0, 1, 1], [], []>} : vector<8x32xbf16>, vector<32x64xbf16>, vector<8x64xf32> -> vector<8x64xf32>
    %263 = vector.broadcast %260 : vector<1x64xf32> to vector<8x64xf32>
    %264 = arith.addf %262, %263 : vector<8x64xf32>
    %c0_104 = arith.constant 0 : index
    %c0_105 = arith.constant 0 : index
    %265 = vector.load %arg23[%c0_104, %c0_105] : memref<64x32xbf16, #tpu.memory_space<vmem>>, vector<64x32xbf16>
    %c0_106 = arith.constant 0 : index
    %c0_107 = arith.constant 0 : index
    %266 = vector.load %arg24[%c0_106, %c0_107] : memref<1x32xf32, #tpu.memory_space<vmem>>, vector<1x32xf32>
    %267 = arith.truncf %264 : vector<8x64xf32> to vector<8x64xbf16>
    %cst_108 = arith.constant dense<0.000000e+00> : vector<8x32xf32>
    %268 = tpu.matmul %267, %265, %cst_108 {dimension_numbers = #tpu.dot_dimension_numbers<[1], [0], [0], [1], [0, 0, 1, 1], [], []>} : vector<8x64xbf16>, vector<64x32xbf16>, vector<8x32xf32> -> vector<8x32xf32>
    %269 = vector.broadcast %266 : vector<1x32xf32> to vector<8x32xf32>
    %270 = arith.addf %268, %269 : vector<8x32xf32>
    %271 = arith.addf %234, %270 : vector<8x32xf32>
    %c0_109 = arith.constant 0 : index
    %c0_110 = arith.constant 0 : index
    %c0_111 = arith.constant 0 : index
    %272 = vector.load %arg25[%c0_109, %c0_110, %c0_111] : memref<1x8x32xf32, #tpu.memory_space<vmem>>, vector<1x8x32xf32>
    %273 = vector.shape_cast %272 : vector<1x8x32xf32> to vector<8x32xf32>
    %274 = vector.shape_cast %271 : vector<8x32xf32> to vector<1x8x32xf32>
    tpu.vector_store %arg25[%c0_109, %c0_110, %c0_111], %274 {strides = array<i32>} : memref<1x8x32xf32, #tpu.memory_space<vmem>>, vector<1x8x32xf32>,
    return
  }
  func.func @transform_0(%arg0: i32) -> (i32, i32, i32) {
    %c0_i32 = arith.constant 0 : i32
    %c0_i32_0 = arith.constant 0 : i32
    %c0_i32_1 = arith.constant 0 : i32
    return %arg0, %c0_i32, %c0_i32_0 : i32, i32, i32
  }
  func.func @transform_1(%arg0: i32) -> (i32, i32, i32) {
    %c0_i32 = arith.constant 0 : i32
    %c0_i32_0 = arith.constant 0 : i32
    %c0_i32_1 = arith.constant 0 : i32
    return %arg0, %c0_i32, %c0_i32_0 : i32, i32, i32
  }
  func.func @transform_2(%arg0: i32) -> (i32, i32, i32) {
    %c0_i32 = arith.constant 0 : i32
    %c0_i32_0 = arith.constant 0 : i32
    %c0_i32_1 = arith.constant 0 : i32
    %c0_i32_2 = arith.constant 0 : i32
    return %c0_i32, %c0_i32_0, %c0_i32_1 : i32, i32, i32
  }
  func.func @transform_3(%arg0: i32) -> (i32, i32, i32) {
    %c0_i32 = arith.constant 0 : i32
    %c0_i32_0 = arith.constant 0 : i32
    %c0_i32_1 = arith.constant 0 : i32
    %c0_i32_2 = arith.constant 0 : i32
    return %c0_i32, %c0_i32_0, %c0_i32_1 : i32, i32, i32
  }
  func.func @transform_4(%arg0: i32) -> (i32, i32) {
    %c0_i32 = arith.constant 0 : i32
    %c0_i32_0 = arith.constant 0 : i32
    %c0_i32_1 = arith.constant 0 : i32
    return %c0_i32, %c0_i32_0 : i32, i32
  }
  func.func @transform_5(%arg0: i32) -> (i32, i32) {
    %c0_i32 = arith.constant 0 : i32
    %c0_i32_0 = arith.constant 0 : i32
    %c0_i32_1 = arith.constant 0 : i32
    return %c0_i32, %c0_i32_0 : i32, i32
  }
  func.func @transform_6(%arg0: i32) -> (i32, i32) {
    %c0_i32 = arith.constant 0 : i32
    %c0_i32_0 = arith.constant 0 : i32
    %c0_i32_1 = arith.constant 0 : i32
    return %c0_i32, %c0_i32_0 : i32, i32
  }
  func.func @transform_7(%arg0: i32) -> (i32, i32) {
    %c0_i32 = arith.constant 0 : i32
    %c0_i32_0 = arith.constant 0 : i32
    %c0_i32_1 = arith.constant 0 : i32
    return %c0_i32, %c0_i32_0 : i32, i32
  }
  func.func @transform_8(%arg0: i32) -> (i32, i32) {
    %c0_i32 = arith.constant 0 : i32
    %c0_i32_0 = arith.constant 0 : i32
    %c0_i32_1 = arith.constant 0 : i32
    return %c0_i32, %c0_i32_0 : i32, i32
  }
  func.func @transform_9(%arg0: i32) -> (i32, i32) {
    %c0_i32 = arith.constant 0 : i32
    %c0_i32_0 = arith.constant 0 : i32
    %c0_i32_1 = arith.constant 0 : i32
    return %c0_i32, %c0_i32_0 : i32, i32
  }
  func.func @transform_10(%arg0: i32) -> (i32, i32) {
    %c0_i32 = arith.constant 0 : i32
    %c0_i32_0 = arith.constant 0 : i32
    %c0_i32_1 = arith.constant 0 : i32
    return %c0_i32, %c0_i32_0 : i32, i32
  }
  func.func @transform_11(%arg0: i32) -> (i32, i32) {
    %c0_i32 = arith.constant 0 : i32
    %c0_i32_0 = arith.constant 0 : i32
    %c0_i32_1 = arith.constant 0 : i32
    return %c0_i32, %c0_i32_0 : i32, i32
  }
  func.func @transform_12(%arg0: i32) -> (i32, i32) {
    %c0_i32 = arith.constant 0 : i32
    %c0_i32_0 = arith.constant 0 : i32
    %c0_i32_1 = arith.constant 0 : i32
    return %c0_i32, %c0_i32_0 : i32, i32
  }
  func.func @transform_13(%arg0: i32) -> (i32, i32) {
    %c0_i32 = arith.constant 0 : i32
    %c0_i32_0 = arith.constant 0 : i32
    %c0_i32_1 = arith.constant 0 : i32
    return %c0_i32, %c0_i32_0 : i32, i32
  }
  func.func @transform_14(%arg0: i32) -> (i32, i32) {
    %c0_i32 = arith.constant 0 : i32
    %c0_i32_0 = arith.constant 0 : i32
    %c0_i32_1 = arith.constant 0 : i32
    return %c0_i32, %c0_i32_0 : i32, i32
  }
  func.func @transform_15(%arg0: i32) -> (i32, i32) {
    %c0_i32 = arith.constant 0 : i32
    %c0_i32_0 = arith.constant 0 : i32
    %c0_i32_1 = arith.constant 0 : i32
    return %c0_i32, %c0_i32_0 : i32, i32
  }
  func.func @transform_16(%arg0: i32) -> (i32, i32) {
    %c0_i32 = arith.constant 0 : i32
    %c0_i32_0 = arith.constant 0 : i32
    %c0_i32_1 = arith.constant 0 : i32
    return %c0_i32, %c0_i32_0 : i32, i32
  }
  func.func @transform_17(%arg0: i32) -> (i32, i32) {
    %c0_i32 = arith.constant 0 : i32
    %c0_i32_0 = arith.constant 0 : i32
    %c0_i32_1 = arith.constant 0 : i32
    return %c0_i32, %c0_i32_0 : i32, i32
  }
  func.func @transform_18(%arg0: i32) -> (i32, i32) {
    %c0_i32 = arith.constant 0 : i32
    %c0_i32_0 = arith.constant 0 : i32
    %c0_i32_1 = arith.constant 0 : i32
    return %c0_i32, %c0_i32_0 : i32, i32
  }
  func.func @transform_19(%arg0: i32) -> (i32, i32) {
    %c0_i32 = arith.constant 0 : i32
    %c0_i32_0 = arith.constant 0 : i32
    %c0_i32_1 = arith.constant 0 : i32
    return %c0_i32, %c0_i32_0 : i32, i32
  }
  func.func @transform_20(%arg0: i32) -> (i32, i32) {
    %c0_i32 = arith.constant 0 : i32
    %c0_i32_0 = arith.constant 0 : i32
    %c0_i32_1 = arith.constant 0 : i32
    return %c0_i32, %c0_i32_0 : i32, i32
  }
  func.func @transform_21(%arg0: i32) -> (i32, i32) {
    %c0_i32 = arith.constant 0 : i32
    %c0_i32_0 = arith.constant 0 : i32
    %c0_i32_1 = arith.constant 0 : i32
    return %c0_i32, %c0_i32_0 : i32, i32
  }
  func.func @transform_22(%arg0: i32) -> (i32, i32) {
    %c0_i32 = arith.constant 0 : i32
    %c0_i32_0 = arith.constant 0 : i32
    %c0_i32_1 = arith.constant 0 : i32
    return %c0_i32, %c0_i32_0 : i32, i32
  }
  func.func @transform_23(%arg0: i32) -> (i32, i32) {
    %c0_i32 = arith.constant 0 : i32
    %c0_i32_0 = arith.constant 0 : i32
    %c0_i32_1 = arith.constant 0 : i32
    return %c0_i32, %c0_i32_0 : i32, i32
  }
  func.func @transform_24(%arg0: i32) -> (i32, i32, i32) {
    %c0_i32 = arith.constant 0 : i32
    %c0_i32_0 = arith.constant 0 : i32
    %c0_i32_1 = arith.constant 0 : i32
    return %arg0, %c0_i32, %c0_i32_0 : i32, i32, i32
  }
}

module attributes {stable_mosaic.version = 11 : i64} {
  func.func @_decoder_layer_kernel(%arg0: i32, %arg1: memref<1x8x32xf32, #tpu.memory_space<vmem>>, %arg2: memref<1x8x32xf32, #tpu.memory_space<vmem>>, %arg3: memref<1x8x8xf32, #tpu.memory_space<vmem>>, %arg4: memref<1x8x8xf32, #tpu.memory_space<vmem>>, %arg5: memref<1x32xf32, #tpu.memory_space<vmem>>, %arg6: memref<1x32xf32, #tpu.memory_space<vmem>>, %arg7: memref<32x96xbf16, #tpu.memory_space<vmem>>, %arg8: memref<1x96xf32, #tpu.memory_space<vmem>>, %arg9: memref<32x32xbf16, #tpu.memory_space<vmem>>, %arg10: memref<1x32xf32, #tpu.memory_space<vmem>>, %arg11: memref<1x32xf32, #tpu.memory_space<vmem>>, %arg12: memref<1x32xf32, #tpu.memory_space<vmem>>, %arg13: memref<32x32xbf16, #tpu.memory_space<vmem>>, %arg14: memref<1x32xf32, #tpu.memory_space<vmem>>, %arg15: memref<32x64xbf16, #tpu.memory_space<vmem>>, %arg16: memref<1x64xf32, #tpu.memory_space<vmem>>, %arg17: memref<32x32xbf16, #tpu.memory_space<vmem>>, %arg18: memref<1x32xf32, #tpu.memory_space<vmem>>, %arg19: memref<1x32xf32, #tpu.memory_space<vmem>>, %arg20: memref<1x32xf32, #tpu.memory_space<vmem>>, %arg21: memref<32x64xbf16, #tpu.memory_space<vmem>>, %arg22: memref<1x64xf32, #tpu.memory_space<vmem>>, %arg23: memref<64x32xbf16, #tpu.memory_space<vmem>>, %arg24: memref<1x32xf32, #tpu.memory_space<vmem>>, %arg25: memref<1x8x32xf32, #tpu.memory_space<vmem>>) attributes {dimension_semantics = [#tpu.dimension_semantics<parallel>], iteration_bounds = array<i64: 2>, scalar_prefetch = 0 : i64, scratch_operands = 0 : i64, tpu.core_type = #tpu.core_type<tc>, window_params = [{transform_indices = @transform_0, window_bounds = array<i64: 1, 8, 32>}, {transform_indices = @transform_1, window_bounds = array<i64: 1, 8, 32>}, {pipeline_mode = #tpu.pipeline_mode<synchronous>, transform_indices = @transform_2, window_bounds = array<i64: 1, 8, 8>}, {pipeline_mode = #tpu.pipeline_mode<synchronous>, transform_indices = @transform_3, window_bounds = array<i64: 1, 8, 8>}, {pipeline_mode = #tpu.pipeline_mode<synchronous>, transform_indices = @transform_4, window_bounds = array<i64: 1, 32>}, {pipeline_mode = #tpu.pipeline_mode<synchronous>, transform_indices = @transform_5, window_bounds = array<i64: 1, 32>}, {pipeline_mode = #tpu.pipeline_mode<synchronous>, transform_indices = @transform_6, window_bounds = array<i64: 32, 96>}, {pipeline_mode = #tpu.pipeline_mode<synchronous>, transform_indices = @transform_7, window_bounds = array<i64: 1, 96>}, {pipeline_mode = #tpu.pipeline_mode<synchronous>, transform_indices = @transform_8, window_bounds = array<i64: 32, 32>}, {pipeline_mode = #tpu.pipeline_mode<synchronous>, transform_indices = @transform_9, window_bounds = array<i64: 1, 32>}, {pipeline_mode = #tpu.pipeline_mode<synchronous>, transform_indices = @transform_10, window_bounds = array<i64: 1, 32>}, {pipeline_mode = #tpu.pipeline_mode<synchronous>, transform_indices = @transform_11, window_bounds = array<i64: 1, 32>}, {pipeline_mode = #tpu.pipeline_mode<synchronous>, transform_indices = @transform_12, window_bounds = array<i64: 32, 32>}, {pipeline_mode = #tpu.pipeline_mode<synchronous>, transform_indices = @transform_13, window_bounds = array<i64: 1, 32>}, {pipeline_mode = #tpu.pipeline_mode<synchronous>, transform_indices = @transform_14, window_bounds = array<i64: 32, 64>}, {pipeline_mode = #tpu.pipeline_mode<synchronous>, transform_indices = @transform_15, window_bounds = array<i64: 1, 64>}, {pipeline_mode = #tpu.pipeline_mode<synchronous>, transform_indices = @transform_16, window_bounds = array<i64: 32, 32>}, {pipeline_mode = #tpu.pipeline_mode<synchronous>, transform_indices = @transform_17, window_bounds = array<i64: 1, 32>}, {pipeline_mode = #tpu.pipeline_mode<synchronous>, transform_indices = @transform_18, window_bounds = array<i64: 1, 32>}, {pipeline_mode = #tpu.pipeline_mode<synchronous>, transform_indices = @transform_19, window_bounds = array<i64: 1, 32>}, {pipeline_mode = #tpu.pipeline_mode<synchronous>, transform_indices = @transform_20, window_bounds = array<i64: 32, 64>}, {pipeline_mode = #tpu.pipeline_mode<synchronous>, transform_indices = @transform_21, window_bounds = array<i64: 1, 64>}, {pipeline_mode = #tpu.pipeline_mode<synchronous>, transform_indices = @transform_22, window_bounds = array<i64: 64, 32>}, {pipeline_mode = #tpu.pipeline_mode<synchronous>, transform_indices = @transform_23, window_bounds = array<i64: 1, 32>}, {transform_indices = @transform_24, window_bounds = array<i64: 1, 8, 32>}]} {
    %c0 = arith.constant 0 : index
    %c0_0 = arith.constant 0 : index
    %c0_1 = arith.constant 0 : index
    %0 = vector.load %arg1[%c0, %c0_0, %c0_1] : memref<1x8x32xf32, #tpu.memory_space<vmem>>, vector<1x8x32xf32>
    %1 = vector.shape_cast %0 : vector<1x8x32xf32> to vector<8x32xf32>
    %c0_2 = arith.constant 0 : index
    %c0_3 = arith.constant 0 : index
    %c0_4 = arith.constant 0 : index
    %2 = vector.load %arg2[%c0_2, %c0_3, %c0_4] : memref<1x8x32xf32, #tpu.memory_space<vmem>>, vector<1x8x32xf32>
    %3 = vector.shape_cast %2 : vector<1x8x32xf32> to vector<8x32xf32>
    %c0_5 = arith.constant 0 : index
    %c0_6 = arith.constant 0 : index
    %4 = vector.load %arg5[%c0_5, %c0_6] : memref<1x32xf32, #tpu.memory_space<vmem>>, vector<1x32xf32>
    %c0_7 = arith.constant 0 : index
    %c0_8 = arith.constant 0 : index
    %5 = vector.load %arg6[%c0_7, %c0_8] : memref<1x32xf32, #tpu.memory_space<vmem>>, vector<1x32xf32>
    %cst = arith.constant dense<0.000000e+00> : vector<8xf32>
    %6 = vector.multi_reduction <add>, %1, %cst [1] : vector<8x32xf32> to vector<8xf32>
    %7 = vector.shape_cast %6 : vector<8xf32> to vector<8x1xf32>
    %cst_9 = arith.constant 3.200000e+01 : f32
    %8 = vector.broadcast %cst_9 : f32 to vector<8x1xf32>
    %9 = arith.divf %7, %8 : vector<8x1xf32>
    %10 = vector.broadcast %9 : vector<8x1xf32> to vector<8x32xf32>
    %11 = arith.subf %1, %10 : vector<8x32xf32>
    %12 = arith.mulf %11, %11 : vector<8x32xf32>
    %cst_10 = arith.constant dense<0.000000e+00> : vector<8xf32>
    %13 = vector.multi_reduction <add>, %12, %cst_10 [1] : vector<8x32xf32> to vector<8xf32>
    %14 = vector.shape_cast %13 : vector<8xf32> to vector<8x1xf32>
    %cst_11 = arith.constant 0.0322580636 : f32
    %15 = vector.broadcast %cst_11 : f32 to vector<8x1xf32>
    %16 = arith.mulf %14, %15 : vector<8x1xf32>
    %17 = math.sqrt %16 : vector<8x1xf32>
    %cst_12 = arith.constant 9.99999997E-7 : f32
    %18 = vector.broadcast %cst_12 : f32 to vector<8x1xf32>
    %19 = arith.addf %17, %18 : vector<8x1xf32>
    %cst_13 = arith.constant 1.000000e+00 : f32
    %20 = vector.broadcast %cst_13 : f32 to vector<8x1xf32>
    %21 = arith.divf %20, %19 : vector<8x1xf32>
    %22 = vector.broadcast %21 : vector<8x1xf32> to vector<8x32xf32>
    %23 = arith.mulf %11, %22 : vector<8x32xf32>
    %24 = vector.broadcast %4 : vector<1x32xf32> to vector<8x32xf32>
    %25 = arith.mulf %24, %23 : vector<8x32xf32>
    %26 = vector.broadcast %5 : vector<1x32xf32> to vector<8x32xf32>
    %27 = arith.addf %25, %26 : vector<8x32xf32>
    %c0_14 = arith.constant 0 : index
    %c0_15 = arith.constant 0 : index
    %28 = vector.load %arg7[%c0_14, %c0_15] : memref<32x96xbf16, #tpu.memory_space<vmem>>, vector<32x96xbf16>
    %c0_16 = arith.constant 0 : index
    %c0_17 = arith.constant 0 : index
    %29 = vector.load %arg8[%c0_16, %c0_17] : memref<1x96xf32, #tpu.memory_space<vmem>>, vector<1x96xf32>
    %30 = arith.truncf %27 : vector<8x32xf32> to vector<8x32xbf16>
    %cst_18 = arith.constant dense<0.000000e+00> : vector<8x96xf32>
    %31 = tpu.matmul %30, %28, %cst_18 {dimension_numbers = #tpu.dot_dimension_numbers<[1], [0], [0], [1], [0, 0, 1, 1], [], []>} : vector<8x32xbf16>, vector<32x96xbf16>, vector<8x96xf32> -> vector<8x96xf32>
    %32 = vector.broadcast %29 : vector<1x96xf32> to vector<8x96xf32>
    %33 = arith.addf %31, %32 : vector<8x96xf32>
    %34 = vector.extract_strided_slice %33 {offsets = [0, 0], sizes = [8, 32], strides = [1, 1]} : vector<8x96xf32> to vector<8x32xf32>
    %35 = vector.extract_strided_slice %33 {offsets = [0, 32], sizes = [8, 32], strides = [1, 1]} : vector<8x96xf32> to vector<8x32xf32>
    %36 = vector.extract_strided_slice %33 {offsets = [0, 64], sizes = [8, 32], strides = [1, 1]} : vector<8x96xf32> to vector<8x32xf32>
    %c0_19 = arith.constant 0 : index
    %c0_20 = arith.constant 0 : index
    %c0_21 = arith.constant 0 : index
    %37 = vector.load %arg3[%c0_19, %c0_20, %c0_21] : memref<1x8x8xf32, #tpu.memory_space<vmem>>, vector<1x8x8xf32>
    %38 = vector.shape_cast %37 : vector<1x8x8xf32> to vector<8x8xf32>
    %cst_22 = arith.constant 0.353553385 : f32
    %39 = vector.broadcast %cst_22 : f32 to vector<8x32xf32>
    %40 = arith.mulf %34, %39 : vector<8x32xf32>
    %41 = vector.extract_strided_slice %40 {offsets = [0, 0], sizes = [8, 8], strides = [1, 1]} : vector<8x32xf32> to vector<8x8xf32>
    %42 = vector.extract_strided_slice %35 {offsets = [0, 0], sizes = [8, 8], strides = [1, 1]} : vector<8x32xf32> to vector<8x8xf32>
    %43 = tpu.transpose %42, [1, 0] : vector<8x8xf32> -> vector<8x8xf32>
    %cst_23 = arith.constant dense<0.000000e+00> : vector<8x8xf32>
    %44 = tpu.matmul %41, %43, %cst_23 {dimension_numbers = #tpu.dot_dimension_numbers<[1], [0], [0], [1], [0, 0, 1, 1], [], []>} : vector<8x8xf32>, vector<8x8xf32>, vector<8x8xf32> -> vector<8x8xf32>
    %45 = arith.addf %44, %38 : vector<8x8xf32>
    %cst_24 = arith.constant dense<0xFF800000> : vector<8xf32>
    %46 = vector.multi_reduction <maximumf>, %45, %cst_24 [1] : vector<8x8xf32> to vector<8xf32>
    %47 = vector.shape_cast %46 : vector<8xf32> to vector<8x1xf32>
    %48 = vector.broadcast %47 : vector<8x1xf32> to vector<8x8xf32>
    %49 = arith.subf %45, %48 : vector<8x8xf32>
    %50 = math.exp %49 : vector<8x8xf32>
    %cst_25 = arith.constant dense<0.000000e+00> : vector<8xf32>
    %51 = vector.multi_reduction <add>, %50, %cst_25 [1] : vector<8x8xf32> to vector<8xf32>
    %52 = vector.shape_cast %51 : vector<8xf32> to vector<8x1xf32>
    %53 = tpu.reciprocal %52 {approx = true} : vector<8x1xf32> -> vector<8x1xf32>
    %54 = vector.broadcast %53 : vector<8x1xf32> to vector<8x8xf32>
    %55 = arith.mulf %50, %54 : vector<8x8xf32>
    %56 = vector.extract_strided_slice %36 {offsets = [0, 0], sizes = [8, 8], strides = [1, 1]} : vector<8x32xf32> to vector<8x8xf32>
    %cst_26 = arith.constant dense<0.000000e+00> : vector<8x8xf32>
    %57 = tpu.matmul %55, %56, %cst_26 {dimension_numbers = #tpu.dot_dimension_numbers<[1], [0], [0], [1], [0, 0, 1, 1], [], []>} : vector<8x8xf32>, vector<8x8xf32>, vector<8x8xf32> -> vector<8x8xf32>
    %58 = vector.extract_strided_slice %40 {offsets = [0, 8], sizes = [8, 8], strides = [1, 1]} : vector<8x32xf32> to vector<8x8xf32>
    %59 = vector.extract_strided_slice %35 {offsets = [0, 8], sizes = [8, 8], strides = [1, 1]} : vector<8x32xf32> to vector<8x8xf32>
    %60 = tpu.transpose %59, [1, 0] : vector<8x8xf32> -> vector<8x8xf32>
    %cst_27 = arith.constant dense<0.000000e+00> : vector<8x8xf32>
    %61 = tpu.matmul %58, %60, %cst_27 {dimension_numbers = #tpu.dot_dimension_numbers<[1], [0], [0], [1], [0, 0, 1, 1], [], []>} : vector<8x8xf32>, vector<8x8xf32>, vector<8x8xf32> -> vector<8x8xf32>
    %62 = arith.addf %61, %38 : vector<8x8xf32>
    %cst_28 = arith.constant dense<0xFF800000> : vector<8xf32>
    %63 = vector.multi_reduction <maximumf>, %62, %cst_28 [1] : vector<8x8xf32> to vector<8xf32>
    %64 = vector.shape_cast %63 : vector<8xf32> to vector<8x1xf32>
    %65 = vector.broadcast %64 : vector<8x1xf32> to vector<8x8xf32>
    %66 = arith.subf %62, %65 : vector<8x8xf32>
    %67 = math.exp %66 : vector<8x8xf32>
    %cst_29 = arith.constant dense<0.000000e+00> : vector<8xf32>
    %68 = vector.multi_reduction <add>, %67, %cst_29 [1] : vector<8x8xf32> to vector<8xf32>
    %69 = vector.shape_cast %68 : vector<8xf32> to vector<8x1xf32>
    %70 = tpu.reciprocal %69 {approx = true} : vector<8x1xf32> -> vector<8x1xf32>
    %71 = vector.broadcast %70 : vector<8x1xf32> to vector<8x8xf32>
    %72 = arith.mulf %67, %71 : vector<8x8xf32>
    %73 = vector.extract_strided_slice %36 {offsets = [0, 8], sizes = [8, 8], strides = [1, 1]} : vector<8x32xf32> to vector<8x8xf32>
    %cst_30 = arith.constant dense<0.000000e+00> : vector<8x8xf32>
    %74 = tpu.matmul %72, %73, %cst_30 {dimension_numbers = #tpu.dot_dimension_numbers<[1], [0], [0], [1], [0, 0, 1, 1], [], []>} : vector<8x8xf32>, vector<8x8xf32>, vector<8x8xf32> -> vector<8x8xf32>
    %75 = vector.extract_strided_slice %40 {offsets = [0, 16], sizes = [8, 8], strides = [1, 1]} : vector<8x32xf32> to vector<8x8xf32>
    %76 = vector.extract_strided_slice %35 {offsets = [0, 16], sizes = [8, 8], strides = [1, 1]} : vector<8x32xf32> to vector<8x8xf32>
    %77 = tpu.transpose %76, [1, 0] : vector<8x8xf32> -> vector<8x8xf32>
    %cst_31 = arith.constant dense<0.000000e+00> : vector<8x8xf32>
    %78 = tpu.matmul %75, %77, %cst_31 {dimension_numbers = #tpu.dot_dimension_numbers<[1], [0], [0], [1], [0, 0, 1, 1], [], []>} : vector<8x8xf32>, vector<8x8xf32>, vector<8x8xf32> -> vector<8x8xf32>
    %79 = arith.addf %78, %38 : vector<8x8xf32>
    %cst_32 = arith.constant dense<0xFF800000> : vector<8xf32>
    %80 = vector.multi_reduction <maximumf>, %79, %cst_32 [1] : vector<8x8xf32> to vector<8xf32>
    %81 = vector.shape_cast %80 : vector<8xf32> to vector<8x1xf32>
    %82 = vector.broadcast %81 : vector<8x1xf32> to vector<8x8xf32>
    %83 = arith.subf %79, %82 : vector<8x8xf32>
    %84 = math.exp %83 : vector<8x8xf32>
    %cst_33 = arith.constant dense<0.000000e+00> : vector<8xf32>
    %85 = vector.multi_reduction <add>, %84, %cst_33 [1] : vector<8x8xf32> to vector<8xf32>
    %86 = vector.shape_cast %85 : vector<8xf32> to vector<8x1xf32>
    %87 = tpu.reciprocal %86 {approx = true} : vector<8x1xf32> -> vector<8x1xf32>
    %88 = vector.broadcast %87 : vector<8x1xf32> to vector<8x8xf32>
    %89 = arith.mulf %84, %88 : vector<8x8xf32>
    %90 = vector.extract_strided_slice %36 {offsets = [0, 16], sizes = [8, 8], strides = [1, 1]} : vector<8x32xf32> to vector<8x8xf32>
    %cst_34 = arith.constant dense<0.000000e+00> : vector<8x8xf32>
    %91 = tpu.matmul %89, %90, %cst_34 {dimension_numbers = #tpu.dot_dimension_numbers<[1], [0], [0], [1], [0, 0, 1, 1], [], []>} : vector<8x8xf32>, vector<8x8xf32>, vector<8x8xf32> -> vector<8x8xf32>
    %92 = vector.extract_strided_slice %40 {offsets = [0, 24], sizes = [8, 8], strides = [1, 1]} : vector<8x32xf32> to vector<8x8xf32>
    %93 = vector.extract_strided_slice %35 {offsets = [0, 24], sizes = [8, 8], strides = [1, 1]} : vector<8x32xf32> to vector<8x8xf32>
    %94 = tpu.transpose %93, [1, 0] : vector<8x8xf32> -> vector<8x8xf32>
    %cst_35 = arith.constant dense<0.000000e+00> : vector<8x8xf32>
    %95 = tpu.matmul %92, %94, %cst_35 {dimension_numbers = #tpu.dot_dimension_numbers<[1], [0], [0], [1], [0, 0, 1, 1], [], []>} : vector<8x8xf32>, vector<8x8xf32>, vector<8x8xf32> -> vector<8x8xf32>
    %96 = arith.addf %95, %38 : vector<8x8xf32>
    %cst_36 = arith.constant dense<0xFF800000> : vector<8xf32>
    %97 = vector.multi_reduction <maximumf>, %96, %cst_36 [1] : vector<8x8xf32> to vector<8xf32>
    %98 = vector.shape_cast %97 : vector<8xf32> to vector<8x1xf32>
    %99 = vector.broadcast %98 : vector<8x1xf32> to vector<8x8xf32>
    %100 = arith.subf %96, %99 : vector<8x8xf32>
    %101 = math.exp %100 : vector<8x8xf32>
    %cst_37 = arith.constant dense<0.000000e+00> : vector<8xf32>
    %102 = vector.multi_reduction <add>, %101, %cst_37 [1] : vector<8x8xf32> to vector<8xf32>
    %103 = vector.shape_cast %102 : vector<8xf32> to vector<8x1xf32>
    %104 = tpu.reciprocal %103 {approx = true} : vector<8x1xf32> -> vector<8x1xf32>
    %105 = vector.broadcast %104 : vector<8x1xf32> to vector<8x8xf32>
    %106 = arith.mulf %101, %105 : vector<8x8xf32>
    %107 = vector.extract_strided_slice %36 {offsets = [0, 24], sizes = [8, 8], strides = [1, 1]} : vector<8x32xf32> to vector<8x8xf32>
    %cst_38 = arith.constant dense<0.000000e+00> : vector<8x8xf32>
    %108 = tpu.matmul %106, %107, %cst_38 {dimension_numbers = #tpu.dot_dimension_numbers<[1], [0], [0], [1], [0, 0, 1, 1], [], []>} : vector<8x8xf32>, vector<8x8xf32>, vector<8x8xf32> -> vector<8x8xf32>
    %109 = tpu.concatenate %57, %74, %91, %108 in 1 : vector<8x8xf32>, vector<8x8xf32>, vector<8x8xf32>, vector<8x8xf32> -> vector<8x32xf32>
    %c0_39 = arith.constant 0 : index
    %c0_40 = arith.constant 0 : index
    %110 = vector.load %arg9[%c0_39, %c0_40] : memref<32x32xbf16, #tpu.memory_space<vmem>>, vector<32x32xbf16>
    %c0_41 = arith.constant 0 : index
    %c0_42 = arith.constant 0 : index
    %111 = vector.load %arg10[%c0_41, %c0_42] : memref<1x32xf32, #tpu.memory_space<vmem>>, vector<1x32xf32>
    %112 = arith.truncf %109 : vector<8x32xf32> to vector<8x32xbf16>
    %cst_43 = arith.constant dense<0.000000e+00> : vector<8x32xf32>
    %113 = tpu.matmul %112, %110, %cst_43 {dimension_numbers = #tpu.dot_dimension_numbers<[1], [0], [0], [1], [0, 0, 1, 1], [], []>} : vector<8x32xbf16>, vector<32x32xbf16>, vector<8x32xf32> -> vector<8x32xf32>
    %114 = vector.broadcast %111 : vector<1x32xf32> to vector<8x32xf32>
    %115 = arith.addf %113, %114 : vector<8x32xf32>
    %116 = arith.addf %1, %115 : vector<8x32xf32>
    %c0_44 = arith.constant 0 : index
    %c0_45 = arith.constant 0 : index
    %117 = vector.load %arg11[%c0_44, %c0_45] : memref<1x32xf32, #tpu.memory_space<vmem>>, vector<1x32xf32>
    %c0_46 = arith.constant 0 : index
    %c0_47 = arith.constant 0 : index
    %118 = vector.load %arg12[%c0_46, %c0_47] : memref<1x32xf32, #tpu.memory_space<vmem>>, vector<1x32xf32>
    %cst_48 = arith.constant dense<0.000000e+00> : vector<8xf32>
    %119 = vector.multi_reduction <add>, %116, %cst_48 [1] : vector<8x32xf32> to vector<8xf32>
    %120 = vector.shape_cast %119 : vector<8xf32> to vector<8x1xf32>
    %cst_49 = arith.constant 3.200000e+01 : f32
    %121 = vector.broadcast %cst_49 : f32 to vector<8x1xf32>
    %122 = arith.divf %120, %121 : vector<8x1xf32>
    %123 = vector.broadcast %122 : vector<8x1xf32> to vector<8x32xf32>
    %124 = arith.subf %116, %123 : vector<8x32xf32>
    %125 = arith.mulf %124, %124 : vector<8x32xf32>
    %cst_50 = arith.constant dense<0.000000e+00> : vector<8xf32>
    %126 = vector.multi_reduction <add>, %125, %cst_50 [1] : vector<8x32xf32> to vector<8xf32>
    %127 = vector.shape_cast %126 : vector<8xf32> to vector<8x1xf32>
    %cst_51 = arith.constant 0.0322580636 : f32
    %128 = vector.broadcast %cst_51 : f32 to vector<8x1xf32>
    %129 = arith.mulf %127, %128 : vector<8x1xf32>
    %130 = math.sqrt %129 : vector<8x1xf32>
    %cst_52 = arith.constant 9.99999997E-7 : f32
    %131 = vector.broadcast %cst_52 : f32 to vector<8x1xf32>
    %132 = arith.addf %130, %131 : vector<8x1xf32>
    %cst_53 = arith.constant 1.000000e+00 : f32
    %133 = vector.broadcast %cst_53 : f32 to vector<8x1xf32>
    %134 = arith.divf %133, %132 : vector<8x1xf32>
    %135 = vector.broadcast %134 : vector<8x1xf32> to vector<8x32xf32>
    %136 = arith.mulf %124, %135 : vector<8x32xf32>
    %137 = vector.broadcast %117 : vector<1x32xf32> to vector<8x32xf32>
    %138 = arith.mulf %137, %136 : vector<8x32xf32>
    %139 = vector.broadcast %118 : vector<1x32xf32> to vector<8x32xf32>
    %140 = arith.addf %138, %139 : vector<8x32xf32>
    %c0_54 = arith.constant 0 : index
    %c0_55 = arith.constant 0 : index
    %141 = vector.load %arg13[%c0_54, %c0_55] : memref<32x32xbf16, #tpu.memory_space<vmem>>, vector<32x32xbf16>
    %c0_56 = arith.constant 0 : index
    %c0_57 = arith.constant 0 : index
    %142 = vector.load %arg14[%c0_56, %c0_57] : memref<1x32xf32, #tpu.memory_space<vmem>>, vector<1x32xf32>
    %143 = arith.truncf %140 : vector<8x32xf32> to vector<8x32xbf16>
    %cst_58 = arith.constant dense<0.000000e+00> : vector<8x32xf32>
    %144 = tpu.matmul %143, %141, %cst_58 {dimension_numbers = #tpu.dot_dimension_numbers<[1], [0], [0], [1], [0, 0, 1, 1], [], []>} : vector<8x32xbf16>, vector<32x32xbf16>, vector<8x32xf32> -> vector<8x32xf32>
    %145 = vector.broadcast %142 : vector<1x32xf32> to vector<8x32xf32>
    %146 = arith.addf %144, %145 : vector<8x32xf32>
    %c0_59 = arith.constant 0 : index
    %c0_60 = arith.constant 0 : index
    %147 = vector.load %arg15[%c0_59, %c0_60] : memref<32x64xbf16, #tpu.memory_space<vmem>>, vector<32x64xbf16>
    %c0_61 = arith.constant 0 : index
    %c0_62 = arith.constant 0 : index
    %148 = vector.load %arg16[%c0_61, %c0_62] : memref<1x64xf32, #tpu.memory_space<vmem>>, vector<1x64xf32>
    %149 = arith.truncf %3 : vector<8x32xf32> to vector<8x32xbf16>
    %cst_63 = arith.constant dense<0.000000e+00> : vector<8x64xf32>
    %150 = tpu.matmul %149, %147, %cst_63 {dimension_numbers = #tpu.dot_dimension_numbers<[1], [0], [0], [1], [0, 0, 1, 1], [], []>} : vector<8x32xbf16>, vector<32x64xbf16>, vector<8x64xf32> -> vector<8x64xf32>
    %151 = vector.broadcast %148 : vector<1x64xf32> to vector<8x64xf32>
    %152 = arith.addf %150, %151 : vector<8x64xf32>
    %153 = vector.extract_strided_slice %152 {offsets = [0, 0], sizes = [8, 32], strides = [1, 1]} : vector<8x64xf32> to vector<8x32xf32>
    %154 = vector.extract_strided_slice %152 {offsets = [0, 32], sizes = [8, 32], strides = [1, 1]} : vector<8x64xf32> to vector<8x32xf32>
    %c0_64 = arith.constant 0 : index
    %c0_65 = arith.constant 0 : index
    %c0_66 = arith.constant 0 : index
    %155 = vector.load %arg4[%c0_64, %c0_65, %c0_66] : memref<1x8x8xf32, #tpu.memory_space<vmem>>, vector<1x8x8xf32>
    %156 = vector.shape_cast %155 : vector<1x8x8xf32> to vector<8x8xf32>
    %cst_67 = arith.constant 0.353553385 : f32
    %157 = vector.broadcast %cst_67 : f32 to vector<8x32xf32>
    %158 = arith.mulf %146, %157 : vector<8x32xf32>
    %159 = vector.extract_strided_slice %158 {offsets = [0, 0], sizes = [8, 8], strides = [1, 1]} : vector<8x32xf32> to vector<8x8xf32>
    %160 = vector.extract_strided_slice %153 {offsets = [0, 0], sizes = [8, 8], strides = [1, 1]} : vector<8x32xf32> to vector<8x8xf32>
    %161 = tpu.transpose %160, [1, 0] : vector<8x8xf32> -> vector<8x8xf32>
    %cst_68 = arith.constant dense<0.000000e+00> : vector<8x8xf32>
    %162 = tpu.matmul %159, %161, %cst_68 {dimension_numbers = #tpu.dot_dimension_numbers<[1], [0], [0], [1], [0, 0, 1, 1], [], []>} : vector<8x8xf32>, vector<8x8xf32>, vector<8x8xf32> -> vector<8x8xf32>
    %163 = arith.addf %162, %156 : vector<8x8xf32>
    %cst_69 = arith.constant dense<0xFF800000> : vector<8xf32>
    %164 = vector.multi_reduction <maximumf>, %163, %cst_69 [1] : vector<8x8xf32> to vector<8xf32>
    %165 = vector.shape_cast %164 : vector<8xf32> to vector<8x1xf32>
    %166 = vector.broadcast %165 : vector<8x1xf32> to vector<8x8xf32>
    %167 = arith.subf %163, %166 : vector<8x8xf32>
    %168 = math.exp %167 : vector<8x8xf32>
    %cst_70 = arith.constant dense<0.000000e+00> : vector<8xf32>
    %169 = vector.multi_reduction <add>, %168, %cst_70 [1] : vector<8x8xf32> to vector<8xf32>
    %170 = vector.shape_cast %169 : vector<8xf32> to vector<8x1xf32>
    %171 = tpu.reciprocal %170 {approx = true} : vector<8x1xf32> -> vector<8x1xf32>
    %172 = vector.broadcast %171 : vector<8x1xf32> to vector<8x8xf32>
    %173 = arith.mulf %168, %172 : vector<8x8xf32>
    %174 = vector.extract_strided_slice %154 {offsets = [0, 0], sizes = [8, 8], strides = [1, 1]} : vector<8x32xf32> to vector<8x8xf32>
    %cst_71 = arith.constant dense<0.000000e+00> : vector<8x8xf32>
    %175 = tpu.matmul %173, %174, %cst_71 {dimension_numbers = #tpu.dot_dimension_numbers<[1], [0], [0], [1], [0, 0, 1, 1], [], []>} : vector<8x8xf32>, vector<8x8xf32>, vector<8x8xf32> -> vector<8x8xf32>
    %176 = vector.extract_strided_slice %158 {offsets = [0, 8], sizes = [8, 8], strides = [1, 1]} : vector<8x32xf32> to vector<8x8xf32>
    %177 = vector.extract_strided_slice %153 {offsets = [0, 8], sizes = [8, 8], strides = [1, 1]} : vector<8x32xf32> to vector<8x8xf32>
    %178 = tpu.transpose %177, [1, 0] : vector<8x8xf32> -> vector<8x8xf32>
    %cst_72 = arith.constant dense<0.000000e+00> : vector<8x8xf32>
    %179 = tpu.matmul %176, %178, %cst_72 {dimension_numbers = #tpu.dot_dimension_numbers<[1], [0], [0], [1], [0, 0, 1, 1], [], []>} : vector<8x8xf32>, vector<8x8xf32>, vector<8x8xf32> -> vector<8x8xf32>
    %180 = arith.addf %179, %156 : vector<8x8xf32>
    %cst_73 = arith.constant dense<0xFF800000> : vector<8xf32>
    %181 = vector.multi_reduction <maximumf>, %180, %cst_73 [1] : vector<8x8xf32> to vector<8xf32>
    %182 = vector.shape_cast %181 : vector<8xf32> to vector<8x1xf32>
    %183 = vector.broadcast %182 : vector<8x1xf32> to vector<8x8xf32>
    %184 = arith.subf %180, %183 : vector<8x8xf32>
    %185 = math.exp %184 : vector<8x8xf32>
    %cst_74 = arith.constant dense<0.000000e+00> : vector<8xf32>
    %186 = vector.multi_reduction <add>, %185, %cst_74 [1] : vector<8x8xf32> to vector<8xf32>
    %187 = vector.shape_cast %186 : vector<8xf32> to vector<8x1xf32>
    %188 = tpu.reciprocal %187 {approx = true} : vector<8x1xf32> -> vector<8x1xf32>
    %189 = vector.broadcast %188 : vector<8x1xf32> to vector<8x8xf32>
    %190 = arith.mulf %185, %189 : vector<8x8xf32>
    %191 = vector.extract_strided_slice %154 {offsets = [0, 8], sizes = [8, 8], strides = [1, 1]} : vector<8x32xf32> to vector<8x8xf32>
    %cst_75 = arith.constant dense<0.000000e+00> : vector<8x8xf32>
    %192 = tpu.matmul %190, %191, %cst_75 {dimension_numbers = #tpu.dot_dimension_numbers<[1], [0], [0], [1], [0, 0, 1, 1], [], []>} : vector<8x8xf32>, vector<8x8xf32>, vector<8x8xf32> -> vector<8x8xf32>
    %193 = vector.extract_strided_slice %158 {offsets = [0, 16], sizes = [8, 8], strides = [1, 1]} : vector<8x32xf32> to vector<8x8xf32>
    %194 = vector.extract_strided_slice %153 {offsets = [0, 16], sizes = [8, 8], strides = [1, 1]} : vector<8x32xf32> to vector<8x8xf32>
    %195 = tpu.transpose %194, [1, 0] : vector<8x8xf32> -> vector<8x8xf32>
    %cst_76 = arith.constant dense<0.000000e+00> : vector<8x8xf32>
    %196 = tpu.matmul %193, %195, %cst_76 {dimension_numbers = #tpu.dot_dimension_numbers<[1], [0], [0], [1], [0, 0, 1, 1], [], []>} : vector<8x8xf32>, vector<8x8xf32>, vector<8x8xf32> -> vector<8x8xf32>
    %197 = arith.addf %196, %156 : vector<8x8xf32>
    %cst_77 = arith.constant dense<0xFF800000> : vector<8xf32>
    %198 = vector.multi_reduction <maximumf>, %197, %cst_77 [1] : vector<8x8xf32> to vector<8xf32>
    %199 = vector.shape_cast %198 : vector<8xf32> to vector<8x1xf32>
    %200 = vector.broadcast %199 : vector<8x1xf32> to vector<8x8xf32>
    %201 = arith.subf %197, %200 : vector<8x8xf32>
    %202 = math.exp %201 : vector<8x8xf32>
    %cst_78 = arith.constant dense<0.000000e+00> : vector<8xf32>
    %203 = vector.multi_reduction <add>, %202, %cst_78 [1] : vector<8x8xf32> to vector<8xf32>
    %204 = vector.shape_cast %203 : vector<8xf32> to vector<8x1xf32>
    %205 = tpu.reciprocal %204 {approx = true} : vector<8x1xf32> -> vector<8x1xf32>
    %206 = vector.broadcast %205 : vector<8x1xf32> to vector<8x8xf32>
    %207 = arith.mulf %202, %206 : vector<8x8xf32>
    %208 = vector.extract_strided_slice %154 {offsets = [0, 16], sizes = [8, 8], strides = [1, 1]} : vector<8x32xf32> to vector<8x8xf32>
    %cst_79 = arith.constant dense<0.000000e+00> : vector<8x8xf32>
    %209 = tpu.matmul %207, %208, %cst_79 {dimension_numbers = #tpu.dot_dimension_numbers<[1], [0], [0], [1], [0, 0, 1, 1], [], []>} : vector<8x8xf32>, vector<8x8xf32>, vector<8x8xf32> -> vector<8x8xf32>
    %210 = vector.extract_strided_slice %158 {offsets = [0, 24], sizes = [8, 8], strides = [1, 1]} : vector<8x32xf32> to vector<8x8xf32>
    %211 = vector.extract_strided_slice %153 {offsets = [0, 24], sizes = [8, 8], strides = [1, 1]} : vector<8x32xf32> to vector<8x8xf32>
    %212 = tpu.transpose %211, [1, 0] : vector<8x8xf32> -> vector<8x8xf32>
    %cst_80 = arith.constant dense<0.000000e+00> : vector<8x8xf32>
    %213 = tpu.matmul %210, %212, %cst_80 {dimension_numbers = #tpu.dot_dimension_numbers<[1], [0], [0], [1], [0, 0, 1, 1], [], []>} : vector<8x8xf32>, vector<8x8xf32>, vector<8x8xf32> -> vector<8x8xf32>
    %214 = arith.addf %213, %156 : vector<8x8xf32>
    %cst_81 = arith.constant dense<0xFF800000> : vector<8xf32>
    %215 = vector.multi_reduction <maximumf>, %214, %cst_81 [1] : vector<8x8xf32> to vector<8xf32>
    %216 = vector.shape_cast %215 : vector<8xf32> to vector<8x1xf32>
    %217 = vector.broadcast %216 : vector<8x1xf32> to vector<8x8xf32>
    %218 = arith.subf %214, %217 : vector<8x8xf32>
    %219 = math.exp %218 : vector<8x8xf32>
    %cst_82 = arith.constant dense<0.000000e+00> : vector<8xf32>
    %220 = vector.multi_reduction <add>, %219, %cst_82 [1] : vector<8x8xf32> to vector<8xf32>
    %221 = vector.shape_cast %220 : vector<8xf32> to vector<8x1xf32>
    %222 = tpu.reciprocal %221 {approx = true} : vector<8x1xf32> -> vector<8x1xf32>
    %223 = vector.broadcast %222 : vector<8x1xf32> to vector<8x8xf32>
    %224 = arith.mulf %219, %223 : vector<8x8xf32>
    %225 = vector.extract_strided_slice %154 {offsets = [0, 24], sizes = [8, 8], strides = [1, 1]} : vector<8x32xf32> to vector<8x8xf32>
    %cst_83 = arith.constant dense<0.000000e+00> : vector<8x8xf32>
    %226 = tpu.matmul %224, %225, %cst_83 {dimension_numbers = #tpu.dot_dimension_numbers<[1], [0], [0], [1], [0, 0, 1, 1], [], []>} : vector<8x8xf32>, vector<8x8xf32>, vector<8x8xf32> -> vector<8x8xf32>
    %227 = tpu.concatenate %175, %192, %209, %226 in 1 : vector<8x8xf32>, vector<8x8xf32>, vector<8x8xf32>, vector<8x8xf32> -> vector<8x32xf32>
    %c0_84 = arith.constant 0 : index
    %c0_85 = arith.constant 0 : index
    %228 = vector.load %arg17[%c0_84, %c0_85] : memref<32x32xbf16, #tpu.memory_space<vmem>>, vector<32x32xbf16>
    %c0_86 = arith.constant 0 : index
    %c0_87 = arith.constant 0 : index
    %229 = vector.load %arg18[%c0_86, %c0_87] : memref<1x32xf32, #tpu.memory_space<vmem>>, vector<1x32xf32>
    %230 = arith.truncf %227 : vector<8x32xf32> to vector<8x32xbf16>
    %cst_88 = arith.constant dense<0.000000e+00> : vector<8x32xf32>
    %231 = tpu.matmul %230, %228, %cst_88 {dimension_numbers = #tpu.dot_dimension_numbers<[1], [0], [0], [1], [0, 0, 1, 1], [], []>} : vector<8x32xbf16>, vector<32x32xbf16>, vector<8x32xf32> -> vector<8x32xf32>
    %232 = vector.broadcast %229 : vector<1x32xf32> to vector<8x32xf32>
    %233 = arith.addf %231, %232 : vector<8x32xf32>
    %234 = arith.addf %116, %233 : vector<8x32xf32>
    %c0_89 = arith.constant 0 : index
    %c0_90 = arith.constant 0 : index
    %235 = vector.load %arg19[%c0_89, %c0_90] : memref<1x32xf32, #tpu.memory_space<vmem>>, vector<1x32xf32>
    %c0_91 = arith.constant 0 : index
    %c0_92 = arith.constant 0 : index
    %236 = vector.load %arg20[%c0_91, %c0_92] : memref<1x32xf32, #tpu.memory_space<vmem>>, vector<1x32xf32>
    %cst_93 = arith.constant dense<0.000000e+00> : vector<8xf32>
    %237 = vector.multi_reduction <add>, %234, %cst_93 [1] : vector<8x32xf32> to vector<8xf32>
    %238 = vector.shape_cast %237 : vector<8xf32> to vector<8x1xf32>
    %cst_94 = arith.constant 3.200000e+01 : f32
    %239 = vector.broadcast %cst_94 : f32 to vector<8x1xf32>
    %240 = arith.divf %238, %239 : vector<8x1xf32>
    %241 = vector.broadcast %240 : vector<8x1xf32> to vector<8x32xf32>
    %242 = arith.subf %234, %241 : vector<8x32xf32>
    %243 = arith.mulf %242, %242 : vector<8x32xf32>
    %cst_95 = arith.constant dense<0.000000e+00> : vector<8xf32>
    %244 = vector.multi_reduction <add>, %243, %cst_95 [1] : vector<8x32xf32> to vector<8xf32>
    %245 = vector.shape_cast %244 : vector<8xf32> to vector<8x1xf32>
    %cst_96 = arith.constant 0.0322580636 : f32
    %246 = vector.broadcast %cst_96 : f32 to vector<8x1xf32>
    %247 = arith.mulf %245, %246 : vector<8x1xf32>
    %248 = math.sqrt %247 : vector<8x1xf32>
    %cst_97 = arith.constant 9.99999997E-7 : f32
    %249 = vector.broadcast %cst_97 : f32 to vector<8x1xf32>
    %250 = arith.addf %248, %249 : vector<8x1xf32>
    %cst_98 = arith.constant 1.000000e+00 : f32
    %251 = vector.broadcast %cst_98 : f32 to vector<8x1xf32>
    %252 = arith.divf %251, %250 : vector<8x1xf32>
    %253 = vector.broadcast %252 : vector<8x1xf32> to vector<8x32xf32>
    %254 = arith.mulf %242, %253 : vector<8x32xf32>
    %255 = vector.broadcast %235 : vector<1x32xf32> to vector<8x32xf32>
    %256 = arith.mulf %255, %254 : vector<8x32xf32>
    %257 = vector.broadcast %236 : vector<1x32xf32> to vector<8x32xf32>
    %258 = arith.addf %256, %257 : vector<8x32xf32>
    %c0_99 = arith.constant 0 : index
    %c0_100 = arith.constant 0 : index
    %259 = vector.load %arg21[%c0_99, %c0_100] : memref<32x64xbf16, #tpu.memory_space<vmem>>, vector<32x64xbf16>
    %c0_101 = arith.constant 0 : index
    %c0_102 = arith.constant 0 : index
    %260 = vector.load %arg22[%c0_101, %c0_102] : memref<1x64xf32, #tpu.memory_space<vmem>>, vector<1x64xf32>
    %261 = arith.truncf %258 : vector<8x32xf32> to vector<8x32xbf16>
    %cst_103 = arith.constant dense<0.000000e+00> : vector<8x64xf32>
    %262 = tpu.matmul %261, %259, %cst_103 {dimension_numbers = #tpu.dot_dimension_numbers<[1], [0], [0], [1], [0, 0, 1, 1], [], []>} : vector<8x32xbf16>, vector<32x64xbf16>, vector<8x64xf32> -> vector<8x64xf32>
    %263 = vector.broadcast %260 : vector<1x64xf32> to vector<8x64xf32>
    %264 = arith.addf %262, %263 : vector<8x64xf32>
    %c0_104 = arith.constant 0 : index
    %c0_105 = arith.constant 0 : index
    %265 = vector.load %arg23[%c0_104, %c0_105] : memref<64x32xbf16, #tpu.memory_space<vmem>>, vector<64x32xbf16>
    %c0_106 = arith.constant 0 : index
    %c0_107 = arith.constant 0 : index
    %266 = vector.load %arg24[%c0_106, %c0_107] : memref<1x32xf32, #tpu.memory_space<vmem>>, vector<1x32xf32>
    %267 = arith.truncf %264 : vector<8x64xf32> to vector<8x64xbf16>
    %cst_108 = arith.constant dense<0.000000e+00> : vector<8x32xf32>
    %268 = tpu.matmul %267, %265, %cst_108 {dimension_numbers = #tpu.dot_dimension_numbers<[1], [0], [0], [1], [0, 0, 1, 1], [], []>} : vector<8x64xbf16>, vector<64x32xbf16>, vector<8x32xf32> -> vector<8x32xf32>
    %269 = vector.broadcast %266 : vector<1x32xf32> to vector<8x32xf32>
    %270 = arith.addf %268, %269 : vector<8x32xf32>
    %271 = arith.addf %234, %270 : vector<8x32xf32>
    %c0_109 = arith.constant 0 : index
    %c0_110 = arith.constant 0 : index
    %c0_111 = arith.constant 0 : index
    %272 = vector.load %arg25[%c0_109, %c0_110, %c0_111] : memref<1x8x32xf32, #tpu.memory_space<vmem>>, vector<1x8x32xf32>
    %273 = vector.shape_cast %272 : vector<1x8x32xf32> to vector<8x32xf32>
    %274 = vector.shape_cast %271 : vector<8x32xf32> to vector<1x8x32xf32>
    tpu.vector_store %arg25[%c0_109, %c0_110, %c0_111], %274 {strides = array<i32>} : memref<1x8x32xf32, #tpu.memory_space<vmem>>, vector<1x8x32xf32>,
    return
  }
  func.func @transform_0(%arg0: i32) -> (i32, i32, i32) {
    %c0_i32 = arith.constant 0 : i32
    %c0_i32_0 = arith.constant 0 : i32
    %c0_i32_1 = arith.constant 0 : i32
    return %arg0, %c0_i32, %c0_i32_0 : i32, i32, i32
  }
  func.func @transform_1(%arg0: i32) -> (i32, i32, i32) {
    %c0_i32 = arith.constant 0 : i32
    %c0_i32_0 = arith.constant 0 : i32
    %c0_i32_1 = arith.constant 0 : i32
    return %arg0, %c0_i32, %c0_i32_0 : i32, i32, i32
  }
  func.func @transform_2(%arg0: i32) -> (i32, i32, i32) {
    %c0_i32 = arith.constant 0 : i32
    %c0_i32_0 = arith.constant 0 : i32
    %c0_i32_1 = arith.constant 0 : i32
    %c0_i32_2 = arith.constant 0 : i32
    return %c0_i32, %c0_i32_0, %c0_i32_1 : i32, i32, i32
  }
  func.func @transform_3(%arg0: i32) -> (i32, i32, i32) {
    %c0_i32 = arith.constant 0 : i32
    %c0_i32_0 = arith.constant 0 : i32
    %c0_i32_1 = arith.constant 0 : i32
    %c0_i32_2 = arith.constant 0 : i32
    return %c0_i32, %c0_i32_0, %c0_i32_1 : i32, i32, i32
  }
  func.func @transform_4(%arg0: i32) -> (i32, i32) {
    %c0_i32 = arith.constant 0 : i32
    %c0_i32_0 = arith.constant 0 : i32
    %c0_i32_1 = arith.constant 0 : i32
    return %c0_i32, %c0_i32_0 : i32, i32
  }
  func.func @transform_5(%arg0: i32) -> (i32, i32) {
    %c0_i32 = arith.constant 0 : i32
    %c0_i32_0 = arith.constant 0 : i32
    %c0_i32_1 = arith.constant 0 : i32
    return %c0_i32, %c0_i32_0 : i32, i32
  }
  func.func @transform_6(%arg0: i32) -> (i32, i32) {
    %c0_i32 = arith.constant 0 : i32
    %c0_i32_0 = arith.constant 0 : i32
    %c0_i32_1 = arith.constant 0 : i32
    return %c0_i32, %c0_i32_0 : i32, i32
  }
  func.func @transform_7(%arg0: i32) -> (i32, i32) {
    %c0_i32 = arith.constant 0 : i32
    %c0_i32_0 = arith.constant 0 : i32
    %c0_i32_1 = arith.constant 0 : i32
    return %c0_i32, %c0_i32_0 : i32, i32
  }
  func.func @transform_8(%arg0: i32) -> (i32, i32) {
    %c0_i32 = arith.constant 0 : i32
    %c0_i32_0 = arith.constant 0 : i32
    %c0_i32_1 = arith.constant 0 : i32
    return %c0_i32, %c0_i32_0 : i32, i32
  }
  func.func @transform_9(%arg0: i32) -> (i32, i32) {
    %c0_i32 = arith.constant 0 : i32
    %c0_i32_0 = arith.constant 0 : i32
    %c0_i32_1 = arith.constant 0 : i32
    return %c0_i32, %c0_i32_0 : i32, i32
  }
  func.func @transform_10(%arg0: i32) -> (i32, i32) {
    %c0_i32 = arith.constant 0 : i32
    %c0_i32_0 = arith.constant 0 : i32
    %c0_i32_1 = arith.constant 0 : i32
    return %c0_i32, %c0_i32_0 : i32, i32
  }
  func.func @transform_11(%arg0: i32) -> (i32, i32) {
    %c0_i32 = arith.constant 0 : i32
    %c0_i32_0 = arith.constant 0 : i32
    %c0_i32_1 = arith.constant 0 : i32
    return %c0_i32, %c0_i32_0 : i32, i32
  }
  func.func @transform_12(%arg0: i32) -> (i32, i32) {
    %c0_i32 = arith.constant 0 : i32
    %c0_i32_0 = arith.constant 0 : i32
    %c0_i32_1 = arith.constant 0 : i32
    return %c0_i32, %c0_i32_0 : i32, i32
  }
  func.func @transform_13(%arg0: i32) -> (i32, i32) {
    %c0_i32 = arith.constant 0 : i32
    %c0_i32_0 = arith.constant 0 : i32
    %c0_i32_1 = arith.constant 0 : i32
    return %c0_i32, %c0_i32_0 : i32, i32
  }
  func.func @transform_14(%arg0: i32) -> (i32, i32) {
    %c0_i32 = arith.constant 0 : i32
    %c0_i32_0 = arith.constant 0 : i32
    %c0_i32_1 = arith.constant 0 : i32
    return %c0_i32, %c0_i32_0 : i32, i32
  }
  func.func @transform_15(%arg0: i32) -> (i32, i32) {
    %c0_i32 = arith.constant 0 : i32
    %c0_i32_0 = arith.constant 0 : i32
    %c0_i32_1 = arith.constant 0 : i32
    return %c0_i32, %c0_i32_0 : i32, i32
  }
  func.func @transform_16(%arg0: i32) -> (i32, i32) {
    %c0_i32 = arith.constant 0 : i32
    %c0_i32_0 = arith.constant 0 : i32
    %c0_i32_1 = arith.constant 0 : i32
    return %c0_i32, %c0_i32_0 : i32, i32
  }
  func.func @transform_17(%arg0: i32) -> (i32, i32) {
    %c0_i32 = arith.constant 0 : i32
    %c0_i32_0 = arith.constant 0 : i32
    %c0_i32_1 = arith.constant 0 : i32
    return %c0_i32, %c0_i32_0 : i32, i32
  }
  func.func @transform_18(%arg0: i32) -> (i32, i32) {
    %c0_i32 = arith.constant 0 : i32
    %c0_i32_0 = arith.constant 0 : i32
    %c0_i32_1 = arith.constant 0 : i32
    return %c0_i32, %c0_i32_0 : i32, i32
  }
  func.func @transform_19(%arg0: i32) -> (i32, i32) {
    %c0_i32 = arith.constant 0 : i32
    %c0_i32_0 = arith.constant 0 : i32
    %c0_i32_1 = arith.constant 0 : i32
    return %c0_i32, %c0_i32_0 : i32, i32
  }
  func.func @transform_20(%arg0: i32) -> (i32, i32) {
    %c0_i32 = arith.constant 0 : i32
    %c0_i32_0 = arith.constant 0 : i32
    %c0_i32_1 = arith.constant 0 : i32
    return %c0_i32, %c0_i32_0 : i32, i32
  }
  func.func @transform_21(%arg0: i32) -> (i32, i32) {
    %c0_i32 = arith.constant 0 : i32
    %c0_i32_0 = arith.constant 0 : i32
    %c0_i32_1 = arith.constant 0 : i32
    return %c0_i32, %c0_i32_0 : i32, i32
  }
  func.func @transform_22(%arg0: i32) -> (i32, i32) {
    %c0_i32 = arith.constant 0 : i32
    %c0_i32_0 = arith.constant 0 : i32
    %c0_i32_1 = arith.constant 0 : i32
    return %c0_i32, %c0_i32_0 : i32, i32
  }
  func.func @transform_23(%arg0: i32) -> (i32, i32) {
    %c0_i32 = arith.constant 0 : i32
    %c0_i32_0 = arith.constant 0 : i32
    %c0_i32_1 = arith.constant 0 : i32
    return %c0_i32, %c0_i32_0 : i32, i32
  }
  func.func @transform_24(%arg0: i32) -> (i32, i32, i32) {
    %c0_i32 = arith.constant 0 : i32
    %c0_i32_0 = arith.constant 0 : i32
    %c0_i32_1 = arith.constant 0 : i32
    return %arg0, %c0_i32, %c0_i32_0 : i32, i32, i32
  }
}

module attributes {stable_mosaic.version = 11 : i64} {
  func.func @_final_ln_kernel(%arg0: i32, %arg1: memref<1x8x32xf32, #tpu.memory_space<vmem>>, %arg2: memref<1x32xf32, #tpu.memory_space<vmem>>, %arg3: memref<1x32xf32, #tpu.memory_space<vmem>>, %arg4: memref<1x8x32xf32, #tpu.memory_space<vmem>>) attributes {dimension_semantics = [#tpu.dimension_semantics<parallel>], iteration_bounds = array<i64: 2>, scalar_prefetch = 0 : i64, scratch_operands = 0 : i64, tpu.core_type = #tpu.core_type<tc>, window_params = [{transform_indices = @transform_0, window_bounds = array<i64: 1, 8, 32>}, {pipeline_mode = #tpu.pipeline_mode<synchronous>, transform_indices = @transform_1, window_bounds = array<i64: 1, 32>}, {pipeline_mode = #tpu.pipeline_mode<synchronous>, transform_indices = @transform_2, window_bounds = array<i64: 1, 32>}, {transform_indices = @transform_3, window_bounds = array<i64: 1, 8, 32>}]} {
    %c0 = arith.constant 0 : index
    %c0_0 = arith.constant 0 : index
    %c0_1 = arith.constant 0 : index
    %0 = vector.load %arg1[%c0, %c0_0, %c0_1] : memref<1x8x32xf32, #tpu.memory_space<vmem>>, vector<1x8x32xf32>
    %1 = vector.shape_cast %0 : vector<1x8x32xf32> to vector<8x32xf32>
    %c0_2 = arith.constant 0 : index
    %c0_3 = arith.constant 0 : index
    %2 = vector.load %arg2[%c0_2, %c0_3] : memref<1x32xf32, #tpu.memory_space<vmem>>, vector<1x32xf32>
    %c0_4 = arith.constant 0 : index
    %c0_5 = arith.constant 0 : index
    %3 = vector.load %arg3[%c0_4, %c0_5] : memref<1x32xf32, #tpu.memory_space<vmem>>, vector<1x32xf32>
    %cst = arith.constant dense<0.000000e+00> : vector<8xf32>
    %4 = vector.multi_reduction <add>, %1, %cst [1] : vector<8x32xf32> to vector<8xf32>
    %5 = vector.shape_cast %4 : vector<8xf32> to vector<8x1xf32>
    %cst_6 = arith.constant 3.200000e+01 : f32
    %6 = vector.broadcast %cst_6 : f32 to vector<8x1xf32>
    %7 = arith.divf %5, %6 : vector<8x1xf32>
    %8 = vector.broadcast %7 : vector<8x1xf32> to vector<8x32xf32>
    %9 = arith.subf %1, %8 : vector<8x32xf32>
    %10 = arith.mulf %9, %9 : vector<8x32xf32>
    %cst_7 = arith.constant dense<0.000000e+00> : vector<8xf32>
    %11 = vector.multi_reduction <add>, %10, %cst_7 [1] : vector<8x32xf32> to vector<8xf32>
    %12 = vector.shape_cast %11 : vector<8xf32> to vector<8x1xf32>
    %cst_8 = arith.constant 0.0322580636 : f32
    %13 = vector.broadcast %cst_8 : f32 to vector<8x1xf32>
    %14 = arith.mulf %12, %13 : vector<8x1xf32>
    %15 = math.sqrt %14 : vector<8x1xf32>
    %cst_9 = arith.constant 9.99999997E-7 : f32
    %16 = vector.broadcast %cst_9 : f32 to vector<8x1xf32>
    %17 = arith.addf %15, %16 : vector<8x1xf32>
    %cst_10 = arith.constant 1.000000e+00 : f32
    %18 = vector.broadcast %cst_10 : f32 to vector<8x1xf32>
    %19 = arith.divf %18, %17 : vector<8x1xf32>
    %20 = vector.broadcast %19 : vector<8x1xf32> to vector<8x32xf32>
    %21 = arith.mulf %9, %20 : vector<8x32xf32>
    %22 = vector.broadcast %2 : vector<1x32xf32> to vector<8x32xf32>
    %23 = arith.mulf %22, %21 : vector<8x32xf32>
    %24 = vector.broadcast %3 : vector<1x32xf32> to vector<8x32xf32>
    %25 = arith.addf %23, %24 : vector<8x32xf32>
    %c0_11 = arith.constant 0 : index
    %c0_12 = arith.constant 0 : index
    %c0_13 = arith.constant 0 : index
    %26 = vector.load %arg4[%c0_11, %c0_12, %c0_13] : memref<1x8x32xf32, #tpu.memory_space<vmem>>, vector<1x8x32xf32>
    %27 = vector.shape_cast %26 : vector<1x8x32xf32> to vector<8x32xf32>
    %28 = vector.shape_cast %25 : vector<8x32xf32> to vector<1x8x32xf32>
    tpu.vector_store %arg4[%c0_11, %c0_12, %c0_13], %28 {strides = array<i32>} : memref<1x8x32xf32, #tpu.memory_space<vmem>>, vector<1x8x32xf32>,
    return
  }
  func.func @transform_0(%arg0: i32) -> (i32, i32, i32) {
    %c0_i32 = arith.constant 0 : i32
    %c0_i32_0 = arith.constant 0 : i32
    %c0_i32_1 = arith.constant 0 : i32
    return %arg0, %c0_i32, %c0_i32_0 : i32, i32, i32
  }
  func.func @transform_1(%arg0: i32) -> (i32, i32) {
    %c0_i32 = arith.constant 0 : i32
    %c0_i32_0 = arith.constant 0 : i32
    %c0_i32_1 = arith.constant 0 : i32
    return %c0_i32, %c0_i32_0 : i32, i32
  }
  func.func @transform_2(%arg0: i32) -> (i32, i32) {
    %c0_i32 = arith.constant 0 : i32
    %c0_i32_0 = arith.constant 0 : i32
    %c0_i32_1 = arith.constant 0 : i32
    return %c0_i32, %c0_i32_0 : i32, i32
  }
  func.func @transform_3(%arg0: i32) -> (i32, i32, i32) {
    %c0_i32 = arith.constant 0 : i32
    %c0_i32_0 = arith.constant 0 : i32
    %c0_i32_1 = arith.constant 0 : i32
    return %arg0, %c0_i32, %c0_i32_0 : i32, i32, i32
  }
}

</mosaic_0001>

<bundles_post_ra>
// kernel: decoder_forward.5
= control target key start
LH: loop header
LB: loop body
LE: loop exit
PB: predicated region body
PF: predicated region fallthrough
CT: control target
= control target key end

     0   :  { %8 = vsyncpa [#allocation3], 0  ;;  %s514_s0 = inlined_call_operand.vmem [shape: f32[2,8,32], index: 0, kind: input, shape index: {}]   ;;  %s515_s1 = inlined_call_operand.vmem [shape: f32[1,32], index: 1, kind: input, shape index: {}]   ;;  %s516_s2 = inlined_call_operand.vmem [shape: f32[1,32], index: 2, kind: input, shape index: {}]   ;;  %s517_s3 = inlined_call_operand.hbm [shape: f32[2,8,32], index: 3, kind: output, shape index: {}]  }
   0x1   :  { %10 = vsyncpa [#allocation3 + $0x1], 0  ;;  %s418_s12 = smov 0   ;;  %s420_s13 = smov 0  }
   0x2   :  { %s422_s14 = smov 0   ;;  %s424_s15 = smov 0  }
   0x3 LB: > { %s439_s16 = sadd.s32 4294967295, %s395_s15   ;;  %s280_s17 = sadd.s32 4294967294, %s395_s15   ;;  %s395_s15 = sphi %s424_s15, %s523_s15   ;;  %s391_s14 = sphi %s422_s14, %s522_s14   ;;  %s387_s13 = sphi %s420_s13, %s521_s13   ;;  %s383_s12 = sphi %s418_s12, %s520_s12  }
   0x4   : > { %s443_s18 = sadd.s32 1, %s395_s15   ;;  %s91_s19 = sadd.s32 1, %s391_s14 }
   0x5   : > { %s88_s20 = ssub.s32 %s395_s15, %s443_s18  ;;  %p101_p0 = scmp.ne.s32.totalorder %s391_s14, %s387_s13 }
   0x6   : > { %p89_p1 = scmp.eq.s32.totalorder %s88_s20, 0  ;;  %p102_p2 = scmp.eq.s32.totalorder %s439_s16, 1 }
   0x7   : > { %p107_p3 = scmp.ne.s32.totalorder %s387_s13, %s383_s12  ;;  %p108_p4 = scmp.eq.s32.totalorder %s280_s17, 1 }
   0x8   : > { %s454_s21 = scalar_select %p89_p1, %s391_s14, %s91_s19  }
   0x9   : > { %p456_p5 = por %p102_p2, %p101_p0  ;;  %p460_p6 = por %p108_p4, %p107_p3 }
   0xa   : > { %p283_p7 = scmp.ge.s32.totalorder %s395_s15, 1  ;;  %p139_p8 = scmp.lt.s32.totalorder %s395_s15, 3 }
   0xc   : > { %p140_p9 = pnand %p283_p7, %p139_p8 }
   0xd   : > { %p162_p10 = scmp.lt.s32.totalorder (!%p140_p9), %s439_s16, 1  ;;  %s159_s29 = sand.u32 (!%p140_p9), 1, %s387_s13  }
   0xe   : > { %143 = sbr.rel (%p140_p9) target bundleno = 363 (0x16b), region = 32  ;;  %s284_s30 = sshll.u32 (!%p140_p9), %s159_s29, 3 }
   0xf   : > { %s289_s8 = sshll.u32 (!%p140_p9), %s439_s16, 7  ;;  %s161_s9 = scalar_lea.vmem (!%p140_p9), [#allocation2], %s284_s30 }
  0x10   : > { %s221_s10 = sshll.u32 (!%p140_p9), %s161_s9, 4  ;;  %s219_s19 = scalar_lea.hbm (!%p140_p9), %s517_s3, %s289_s8  ;;  %s222_s10 = int_to_ptr.vmem [resolvable:$true] %s221_s10 }
  0x11   : > { %s208_s20 = scalar_lea.sflag (!%p140_p9), [#allocation3], %s159_s29 }
  0x13   : > { %s163_s24 = scalar_select %p162_p10, %s439_s16, 1  ;;  %vm169_vm0 = vcmask 261120   ;;  %v286_v16 = vld [vmem:[%s515_s1] ss:$0 sm:$0xff] }
  0x14   : > { %v287_v18 = vld [vmem:[%s516_s2] ss:$0 sm:$0xff] }
  0x15   : > { %s285_s25 = sshll.u32 %s163_s24, 3  ;;  %s335_s24 = scalar_lea.vmem %s222_s10, 128 }
  0x16   : > { %s165_s28 = scalar_lea.vmem %s514_s0, %s285_s25  ;;  %p336_p11 = scmp.ne.s32.totalorder %s222_s10, %s335_s24 }
  0x17   : > { %v166_v0 = vld [vmem:[%s165_s28] sm:$0xff]  ;;  %s397_s25 = smov [#allocation2]  }
  0x18   : > { %v170_v1 = vsel %vm169_vm0, %v166_v0, 0.0  ;;  %p337_p12 = pnand %p336_p11, %p456_p5  ;;  %s339_s26 = sshll.u32 %s397_s25, 4  ;;  %s340_s26 = int_to_ptr.vmem [resolvable:$false] %s339_s26 }
  0x19   : > { %171 = vadd.xlane.f32.xlu0 %v170_v1  ;;  %s341_s16 = scalar_lea.vmem %s340_s26, 256  ;;  %p342_p0 = scmp.lt.s32.totalorder %s222_s10, %s340_s26 }
  0x1a   : > { %p338_p13 = pneg %p337_p12  ;;  %p343_p1 = scmp.lt.s32.totalorder %s341_s16, %s335_s24 }
  0x1c   : > { %p344_p2 = por %p343_p1, %p342_p0 }
  0x1e   : > { %p345_p3 = pnand %p344_p2, %p338_p13 }
  0xa2   : > { %v172_v2 = vpop.xlane.xlu0 %171 }
  0xa3   : > { %v174_v3 = vmul.f32 0.03125, %v172_v2 }
  0xa5   : > { %v175_v4 = vsub.f32 %v166_v0, %v174_v3 }
  0xa7   : > { %v176_v5 = vmul.f32 %v175_v4, %v175_v4 }
  0xa9   : > { %v177_v6 = vsel %vm169_vm0, %v176_v5, 0.0 }
  0xaa   : > { %178 = vadd.xlane.f32.xlu0 %v177_v6 }
 0x133   : > { %v179_v7 = vpop.xlane.xlu0 %178 }
 0x134   : > { %v180_v8 = vmul.f32 0.032258064, %v179_v7 }
 0x136   : > { %331 = vrsqrt.f32 %v180_v8  ;;  %vm183_vm1 = vcmp.eq.f32.partialorder %v180_v8, inf  ;;  %v186_v11 = vand.u32 2147483648, %v180_v8  ;;  %vm185_vm2 = vcmp.eq.f32.partialorder %v180_v8, 0.0 }
 0x143   : > { %v332_v9 = vpop.eup %331 }
 0x144   : > { %v182_v10 = vmul.f32 %v332_v9, %v180_v8 }
 0x146   : > { %v184_v12 = vsel %vm183_vm1, %v180_v8, %v182_v10 }
 0x147   : > { %v187_v13 = vsel %vm185_vm2, %v186_v11, %v184_v12 }
 0x148   : > { %v188_v14 = vadd.f32 1e-06, %v187_v13 }
 0x14a   : > { %333 = vrcp.f32 %v188_v14 }
 0x157   : > { %v334_v15 = vpop.eup %333 }
 0x158   : > { %v191_v17 = vmul.f32 %v334_v15, %v175_v4 }
 0x15a   : > { %v198_v19 = vmul.f32 %v286_v16, %v191_v17 }
 0x15c   : > { %v205_v20 = vadd.f32 %v287_v18, %v198_v19 }
 0x15e   : > { %206 = vst.msk [vmem:[%s161_s9] sm:$0xff] %vm169_vm0, %v205_v20 }
 0x15f   : > { %348 = shalt.err (!%p345_p3)
}
 0x160   : > { %s349_s27 = scalar_lea.hbm %s219_s19, 128  ;;  %s353_s30 = scalar_lea.hbm %s517_s3, 256 }
 0x161   : > { %p350_p4 = scmp.ne.s32.totalorder %s219_s19, %s349_s27  ;;  %p354_p9 = scmp.lt.s32.totalorder %s219_s19, %s517_s3 }
 0x162   : > { %p355_p10 = scmp.lt.s32.totalorder %s353_s30, %s349_s27 }
 0x163   : > { %p351_p7 = pnand %p350_p4, %p456_p5 }
 0x164   : > { %p356_p11 = por %p355_p10, %p354_p9 }
 0x165   : > { %p352_p8 = pneg %p351_p7 }
 0x167   : > { %p357_p12 = pnand %p356_p11, %p352_p8 }
 0x169   : > { %360 = shalt.err (!%p357_p12)
}
 0x16a   : > { %292 = dma.vmem_to_hbm [thread:$0]  (%p456_p5), %s222_s10, 128, %s219_s19, %s208_s20  }
 0x16b PF: > { %p298_p13 = scmp.ge.s32.totalorder %s395_s15, 2  ;;  %s233_s6 = sand.u32 1, %s383_s12  }
 0x16c   : > { %s234_s7 = scalar_lea.sflag [#allocation3], %s233_s6 }
 0x16d   : > { %p295_p0 = pnand %p298_p13, %p460_p6 }
 0x16f   : > { %p296_p1 = pneg %p295_p0 }
 0x171   : > { %378 = dma.done.wait (%p296_p1), %s234_s7, 128  }
 0x172   : > { %380 = vsyncadd (%p296_p1), %s234_s7, 4294967168  ;;  %p13_p2 = scmp.ge.s32.totalorder %s443_s18, 4   ;;  %s520_s12 = smov %s387_s13 }
 0x173   : > { %s521_s13 = smov %s391_s14  ;;  %s522_s14 = smov %s454_s21 }
 0x174   : > { %s523_s15 = smov %s443_s18  ;;  %15 = sbr.rel (!%p13_p2) target bundleno = 3 (0x3), region = 67 }
 0x179   :  { %239 = vsyncpa [#allocation3], 1 }
 0x17a   :  { %241 = vsyncpa [#allocation3 + $0x1], 1 }

// kernel: decoder_forward.3
= control target key start
LH: loop header
LB: loop body
LE: loop exit
PB: predicated region body
PF: predicated region fallthrough
CT: control target
= control target key end

     0   :  { %s4480_s0 = inlined_call_operand.vmem [shape: f32[2,8,32], index: 0, kind: input, shape index: {}]   ;;  %s4481_s1 = inlined_call_operand.vmem [shape: f32[2,8,32], index: 1, kind: input, shape index: {}]   ;;  %s4482_s2 = inlined_call_operand.vmem [shape: f32[1,8,8], index: 2, kind: input, shape index: {}]   ;;  %s4483_s3 = inlined_call_operand.vmem [shape: f32[1,8,8], index: 3, kind: input, shape index: {}]   ;;  %s4484_s4 = inlined_call_operand.hbm [shape: f32[1,32], index: 4, kind: input, shape index: {}]   ;;  %s4485_s5 = inlined_call_operand.hbm [shape: f32[1,32], index: 5, kind: input, shape index: {}]   ;;  %s4486_s6 = inlined_call_operand.vmem [shape: bf16[32,96], index: 6, kind: input, shape index: {}]   ;;  %s4487_s7 = inlined_call_operand.vmem [shape: f32[1,96], index: 7, kind: input, shape index: {}]   ;;  %s4488_s8 = inlined_call_operand.vmem [shape: bf16[32,32], index: 8, kind: input, shape index: {}]   ;;  %s4489_s9 = inlined_call_operand.vmem [shape: f32[1,32], index: 9, kind: input, shape index: {}]   ;;  %s4490_s10 = inlined_call_operand.hbm [shape: f32[1,32], index: 10, kind: input, shape index: {}]   ;;  %s4491_s11 = inlined_call_operand.hbm [shape: f32[1,32], index: 11, kind: input, shape index: {}]   ;;  %s4492_s12 = inlined_call_operand.vmem [shape: bf16[32,32], index: 12, kind: input, shape index: {}]   ;;  %s4493_s13 = inlined_call_operand.hbm [shape: f32[1,32], index: 13, kind: input, shape index: {}]   ;;  %s4494_s14 = inlined_call_operand.hbm [shape: bf16[32,64], index: 14, kind: input, shape index: {}]   ;;  %s4495_s15 = inlined_call_operand.hbm [shape: f32[1,64], index: 15, kind: input, shape index: {}]   ;;  %s4496_s16 = inlined_call_operand.hbm [shape: bf16[32,32], index: 16, kind: input, shape index: {}]   ;;  %s4497_s17 = inlined_call_operand.hbm [shape: f32[1,32], index: 17, kind: input, shape index: {}]   ;;  %s4498_s18 = inlined_call_operand.vmem [shape: f32[1,32], index: 18, kind: input, shape index: {}]   ;;  %s4499_s19 = inlined_call_operand.vmem [shape: f32[1,32], index: 19, kind: input, shape index: {}]   ;;  %s4500_s20 = inlined_call_operand.hbm [shape: bf16[32,64], index: 20, kind: input, shape index: {}]   ;;  %s4501_s21 = inlined_call_operand.hbm [shape: f32[1,64], index: 21, kind: input, shape index: {}]   ;;  %s4502_s22 = inlined_call_operand.vmem [shape: bf16[64,32], index: 22, kind: input, shape index: {}]   ;;  %s4503_s23 = inlined_call_operand.hbm [shape: f32[1,32], index: 23, kind: input, shape index: {}]   ;;  %s4504_s24 = inlined_call_operand.vmem [shape: f32[2,8,32], index: 24, kind: output, shape index: {}]  }
   0x1   :  { %4514 = sst [smem:[#allocation28_spill]] %s4480_s0 }
   0x2   :  { %4515 = sst [smem:[#allocation29_spill]] %s4481_s1 }
   0x3   :  { %4516 = sst [smem:[#allocation30_spill]] %s4482_s2 }
   0x4   :  { %4517 = sst [smem:[#allocation31_spill]] %s4483_s3 }
   0x5   :  { %4518 = sst [smem:[#allocation32_spill]] %s4484_s4 }
   0x6   :  { %4519 = sst [smem:[#allocation33_spill]] %s4485_s5 }
   0x7   :  { %4520 = sst [smem:[#allocation34_spill]] %s4486_s6 }
   0x8   :  { %4521 = sst [smem:[#allocation35_spill]] %s4487_s7 }
   0x9   :  { %4522 = sst [smem:[#allocation36_spill]] %s4488_s8 }
   0xa   :  { %4523 = sst [smem:[#allocation37_spill]] %s4491_s11 }
   0xb   :  { %29 = vsyncpa [#allocation3], 0 }
   0xc   :  { %30 = vsyncpa [#allocation5], 0 }
   0xd   :  { %31 = vsyncpa [#allocation8], 0 }
   0xe   :  { %32 = vsyncpa [#allocation11], 0 }
   0xf   :  { %33 = vsyncpa [#allocation14], 0 }
  0x10   :  { %34 = vsyncpa [#allocation17], 0 }
  0x11   :  { %35 = vsyncpa [#allocation20], 0  ;;  %s4049_s5 = smov 0  }
  0x12 LB: > { %s3894_s26 = smov [#allocation4]   ;;  %s4055_s28 = sadd.s32 4294967295, %s3892_s5   ;;  %s3892_s5 = sphi %s4049_s5, %s41_s5  }
  0x13   : > { %s616_s27 = sshll.u32 %s3894_s26, 4  ;;  %p3052_p0 = scmp.ge.s32.totalorder %s3892_s5, 1  ;;  %s617_s27 = int_to_ptr.vmem [resolvable:$true] %s616_s27 }
  0x14   : > { %p586_p1 = scmp.lt.s32.totalorder %s3892_s5, 3  ;;  %p4507_p2 = scmp.eq.s32.totalorder %s4055_s28, 0 }
  0x15   : > { %s3895_s2 = smov [#allocation7]   ;;  %s3896_s0 = smov [#allocation10]  }
  0x16   : > { %p4060_p3 = pnand %p3052_p0, %p586_p1  ;;  %s650_s29 = sshll.u32 %s3895_s2, 4  ;;  %s4066_s29 = int_to_ptr.vmem [resolvable:$true] %s650_s29 }
  0x17   : > { %s674_s7 = sshll.u32 %s3896_s0, 4  ;;  %s3897_s3 = smov [#allocation13]   ;;  %s4074_s7 = int_to_ptr.vmem [resolvable:$true] %s674_s7 }
  0x18   : > { %p3387_p4 = pneg %p4060_p3  ;;  %s4076_s25 = sshll.u32 %s3897_s3, 4  ;;  %s699_s25 = int_to_ptr.vmem [resolvable:$true] %s4076_s25 }
  0x19   : > { %s3557_s4 = scalar_lea.vmem %s617_s27, 16  ;;  %s3564_s1 = scalar_lea.vmem %s617_s27, 32 }
  0x1a   : > { %p4070_p5 = pnand %p4507_p2, %p3387_p4  ;;  %p3558_p7 = scmp.ne.s32.totalorder %s617_s27, %s3557_s4 }
  0x1b   : > { %p3565_p10 = scmp.lt.s32.totalorder %s617_s27, %s617_s27  ;;  %p3566_p11 = scmp.lt.s32.totalorder %s3564_s1, %s3557_s4 }
  0x1c   : > { %p4080_p6 = pneg %p4070_p5 }
  0x1d   : > { %p3567_p12 = por %p3566_p11, %p3565_p10 }
  0x1e   : > { %p3560_p8 = pnand %p3558_p7, %p4080_p6 }
  0x20   : > { %p3561_p9 = pneg %p3560_p8 }
  0x22   : > { %p3568_p13 = pnand %p3567_p12, %p3561_p9 }
  0x24   : > { %3571 = shalt.err (!%p3568_p13)
}
  0x25   : > { %s4527_s0 = sld [smem:[#allocation33_spill]]  ;;  %s3583_s3 = scalar_lea.vmem %s4066_s29, 16 }
  0x26   : > { %p3584_p0 = scmp.ne.s32.totalorder %s4066_s29, %s3583_s3  ;;  %s3590_s4 = scalar_lea.vmem %s4066_s29, 32 }
  0x27   : > { %p3591_p7 = scmp.lt.s32.totalorder %s4066_s29, %s4066_s29  ;;  %p3592_p8 = scmp.lt.s32.totalorder %s3590_s4, %s3583_s3 }
  0x28   : > { %p3586_p1 = pnand %p3584_p0, %p4080_p6 }
  0x29   : > { %p3593_p9 = por %p3592_p8, %p3591_p7 }
  0x2a   : > { %p3587_p4 = pneg %p3586_p1 }
  0x2b   : > { %3393 = dma.hbm_to_vmem [thread:$0]  (!%p4070_p5), %s4527_s0, 16, %s617_s27, [#allocation5]  }
  0x2c   : > { %p3594_p10 = pnand %p3593_p9, %p3587_p4 }
  0x2e   : > { %3597 = shalt.err (!%p3594_p10)
}
  0x2f   : > { %s4528_s11 = sld [smem:[#allocation37_spill]]  ;;  %s3609_s27 = scalar_lea.vmem %s4074_s7, 256 }
  0x30   : > { %p3610_p11 = scmp.ne.s32.totalorder %s4074_s7, %s3609_s27  ;;  %p3617_p0 = scmp.lt.s32.totalorder %s4074_s7, %s4074_s7 }
  0x31   : > { %p3618_p1 = scmp.lt.s32.totalorder %s3609_s27, %s3609_s27 }
  0x32   : > { %p3612_p12 = pnand %p3610_p11, %p4080_p6 }
  0x33   : > { %p3619_p4 = por %p3618_p1, %p3617_p0 }
  0x34   : > { %p3613_p13 = pneg %p3612_p12 }
  0x35   : > { %3399 = dma.hbm_to_vmem [thread:$0]  (!%p4070_p5), %s4528_s11, 16, %s4066_s29, [#allocation8]  }
  0x36   : > { %p3620_p7 = pnand %p3619_p4, %p3613_p13 }
  0x38   : > { %3623 = shalt.err (!%p3620_p7)
}
  0x39   : > { %s3898_s2 = smov 64   ;;  %s3899_s0 = smov 4  }
  0x3a   : > { %3405 = dma.hbm_to_vmem [thread:$0]  (!%p4070_p5), %s4494_s14, 256, %s4074_s7, [#allocation11], %s3898_s2, %s3898_s2, %s3899_s0  }
  0x3b   : > { %s3635_s4 = scalar_lea.vmem %s699_s25, 256  ;;  %p3643_p11 = scmp.lt.s32.totalorder %s699_s25, %s699_s25 }
  0x3c   : > { %p3636_p8 = scmp.ne.s32.totalorder %s699_s25, %s3635_s4  ;;  %p3644_p12 = scmp.lt.s32.totalorder %s3635_s4, %s3635_s4 }
  0x3e   : > { %p3638_p9 = pnand %p3636_p8, %p4080_p6  ;;  %p3645_p13 = por %p3644_p12, %p3643_p11 }
  0x40   : > { %p3639_p10 = pneg %p3638_p9 }
  0x42   : > { %p3646_p0 = pnand %p3645_p13, %p3639_p10 }
  0x44   : > { %3649 = shalt.err (!%p3646_p0)
}
  0x45   : > { %3411 = dma.hbm_to_vmem [thread:$0]  (!%p4070_p5), %s4496_s16, 256, %s699_s25, [#allocation14], %s3898_s2, %s3898_s2, %s3899_s0  }
  0x46   : > { %s3900_s7 = smov [#allocation16]   ;;  %s3901_s29 = smov [#allocation2]  }
  0x47   : > { %s728_s27 = sshll.u32 %s3900_s7, 4  ;;  %s605_s3 = sshll.u32 %s3901_s29, 4  ;;  %s729_s27 = int_to_ptr.vmem [resolvable:$true] %s728_s27  ;;  %s606_s3 = int_to_ptr.vmem [resolvable:$true] %s605_s3 }
  0x48   : > { %s3661_s11 = scalar_lea.vmem %s729_s27, 256  ;;  %p3669_p8 = scmp.lt.s32.totalorder %s729_s27, %s729_s27 }
  0x49   : > { %p3662_p1 = scmp.ne.s32.totalorder %s729_s27, %s3661_s11  ;;  %p3670_p9 = scmp.lt.s32.totalorder %s3661_s11, %s3661_s11 }
  0x4b   : > { %p3664_p4 = pnand %p3662_p1, %p4080_p6  ;;  %p3671_p10 = por %p3670_p9, %p3669_p8 }
  0x4d   : > { %p3665_p7 = pneg %p3664_p4 }
  0x4f   : > { %p3672_p11 = pnand %p3671_p10, %p3665_p7 }
  0x51   : > { %3675 = shalt.err (!%p3672_p11)
}
  0x52   : > { %3417 = dma.hbm_to_vmem [thread:$0]  (!%p4070_p5), %s4500_s20, 256, %s729_s27, [#allocation17], %s3898_s2, %s3898_s2, %s3899_s0  }
  0x53   : > { %s3687_s1 = scalar_lea.vmem %s606_s3, 16  ;;  %s3694_s11 = scalar_lea.vmem %s606_s3, 32 }
  0x54   : > { %p3688_p12 = scmp.ne.s32.totalorder %s606_s3, %s3687_s1  ;;  %p3695_p1 = scmp.lt.s32.totalorder %s606_s3, %s606_s3 }
  0x55   : > { %p3696_p4 = scmp.lt.s32.totalorder %s3694_s11, %s3687_s1 }
  0x56   : > { %p3690_p13 = pnand %p3688_p12, %p4080_p6 }
  0x57   : > { %p3697_p7 = por %p3696_p4, %p3695_p1 }
  0x58   : > { %p3691_p0 = pneg %p3690_p13 }
  0x5a   : > { %p3698_p8 = pnand %p3697_p7, %p3691_p0 }
  0x5c   : > { %3701 = shalt.err (!%p3698_p8)
}
  0x5d   : > { %s4529_s29 = sld [smem:[#allocation32_spill]]  ;;  %s3902_s2 = smov [#allocation6]  }
  0x5e   : > { %s639_s0 = sshll.u32 %s3902_s2, 4  ;;  %s3903_s27 = smov [#allocation9]   ;;  %s640_s0 = int_to_ptr.vmem [resolvable:$true] %s639_s0 }
  0x5f   : > { %s664_s25 = sshll.u32 %s3903_s27, 4  ;;  %s3713_s4 = scalar_lea.vmem %s640_s0, 16  ;;  %s665_s25 = int_to_ptr.vmem [resolvable:$true] %s664_s25 }
  0x60   : > { %p3714_p9 = scmp.ne.s32.totalorder %s640_s0, %s3713_s4  ;;  %s3720_s1 = scalar_lea.vmem %s640_s0, 32 }
  0x61   : > { %p3721_p12 = scmp.lt.s32.totalorder %s640_s0, %s640_s0  ;;  %p3722_p13 = scmp.lt.s32.totalorder %s3720_s1, %s3713_s4 }
  0x62   : > { %p3716_p10 = pnand %p3714_p9, %p4080_p6 }
  0x63   : > { %3390 = dma.hbm_to_vmem [thread:$0]  (!%p4070_p5), %s4529_s29, 16, %s606_s3, [#allocation3]  }
  0x64   : > { %p3717_p11 = pneg %p3716_p10  ;;  %p3723_p0 = por %p3722_p13, %p3721_p12 }
  0x66   : > { %p3724_p1 = pnand %p3723_p0, %p3717_p11 }
  0x68   : > { %3727 = shalt.err (!%p3724_p1)
}
  0x69   : > { %3396 = dma.hbm_to_vmem [thread:$0]  (!%p4070_p5), %s4490_s10, 16, %s640_s0, [#allocation5]  }
  0x6a   : > { %s3739_s26 = scalar_lea.vmem %s665_s25, 16  ;;  %s3746_s7 = scalar_lea.vmem %s665_s25, 32 }
  0x6b   : > { %p3740_p4 = scmp.ne.s32.totalorder %s665_s25, %s3739_s26  ;;  %p3747_p9 = scmp.lt.s32.totalorder %s665_s25, %s665_s25 }
  0x6c   : > { %p3748_p10 = scmp.lt.s32.totalorder %s3746_s7, %s3739_s26 }
  0x6d   : > { %p3742_p7 = pnand %p3740_p4, %p4080_p6 }
  0x6e   : > { %p3749_p2 = por %p3748_p10, %p3747_p9 }
  0x6f   : > { %p3743_p8 = pneg %p3742_p7 }
  0x71   : > { %p3750_p12 = pnand %p3749_p2, %p3743_p8 }
  0x73   : > { %3753 = shalt.err (!%p3750_p12)
}
  0x74   : > { %3402 = dma.hbm_to_vmem [thread:$0]  (!%p4070_p5), %s4493_s13, 16, %s665_s25, [#allocation8]  }
  0x75   : > { %s3904_s0 = smov [#allocation12]   ;;  %s3905_s4 = smov [#allocation15]  }
  0x76   : > { %s688_s27 = sshll.u32 %s3904_s0, 4  ;;  %s712_s1 = sshll.u32 %s3905_s4, 4  ;;  %s689_s27 = int_to_ptr.vmem [resolvable:$true] %s688_s27  ;;  %s713_s1 = int_to_ptr.vmem [resolvable:$true] %s712_s1 }
  0x77   : > { %s3765_s11 = scalar_lea.vmem %s689_s27, 16  ;;  %s3772_s3 = scalar_lea.vmem %s689_s27, 32 }
  0x78   : > { %p3766_p11 = scmp.ne.s32.totalorder %s689_s27, %s3765_s11  ;;  %p3773_p2 = scmp.lt.s32.totalorder %s689_s27, %s689_s27 }
  0x79   : > { %p3774_p1 = scmp.lt.s32.totalorder %s3772_s3, %s3765_s11 }
  0x7a   : > { %p3768_p13 = pnand %p3766_p11, %p4080_p6 }
  0x7b   : > { %p3775_p4 = por %p3774_p1, %p3773_p2 }
  0x7c   : > { %p3769_p0 = pneg %p3768_p13 }
  0x7e   : > { %p3776_p7 = pnand %p3775_p4, %p3769_p0 }
  0x80   : > { %3779 = shalt.err (!%p3776_p7)
}
  0x81   : > { %3408 = dma.hbm_to_vmem [thread:$0]  (!%p4070_p5), %s4495_s15, 16, %s689_s27, [#allocation11]  }
  0x82   : > { %s3791_s7 = scalar_lea.vmem %s713_s1, 16  ;;  %s3798_s29 = scalar_lea.vmem %s713_s1, 32 }
  0x83   : > { %p3792_p8 = scmp.ne.s32.totalorder %s713_s1, %s3791_s7  ;;  %p3799_p12 = scmp.lt.s32.totalorder %s713_s1, %s713_s1 }
  0x84   : > { %p3800_p11 = scmp.lt.s32.totalorder %s3798_s29, %s3791_s7 }
  0x85   : > { %p3794_p9 = pnand %p3792_p8, %p4080_p6 }
  0x86   : > { %p3801_p13 = por %p3800_p11, %p3799_p12 }
  0x87   : > { %p3795_p10 = pneg %p3794_p9 }
  0x89   : > { %p3802_p2 = pnand %p3801_p13, %p3795_p10 }
  0x8b   : > { %3805 = shalt.err (!%p3802_p2)
}
  0x8c   : > { %3414 = dma.hbm_to_vmem [thread:$0]  (!%p4070_p5), %s4497_s17, 16, %s713_s1, [#allocation14]  }
  0x8d   : > { %s3906_s27 = smov [#allocation18]   ;;  %s3907_s11 = smov [#allocation19]  }
  0x8e   : > { %s742_s4 = sshll.u32 %s3906_s27, 4  ;;  %s756_s3 = sshll.u32 %s3907_s11, 4  ;;  %s743_s4 = int_to_ptr.vmem [resolvable:$true] %s742_s4  ;;  %s757_s3 = int_to_ptr.vmem [resolvable:$true] %s756_s3 }
  0x8f   : > { %s3817_s26 = scalar_lea.vmem %s743_s4, 16  ;;  %s3824_s25 = scalar_lea.vmem %s743_s4, 32 }
  0x90   : > { %p3818_p0 = scmp.ne.s32.totalorder %s743_s4, %s3817_s26  ;;  %p3825_p7 = scmp.lt.s32.totalorder %s743_s4, %s743_s4 }
  0x91   : > { %p3826_p8 = scmp.lt.s32.totalorder %s3824_s25, %s3817_s26 }
  0x92   : > { %p3820_p1 = pnand %p3818_p0, %p4080_p6 }
  0x93   : > { %p3827_p9 = por %p3826_p8, %p3825_p7 }
  0x94   : > { %p3821_p4 = pneg %p3820_p1 }
  0x96   : > { %p3828_p10 = pnand %p3827_p9, %p3821_p4 }
  0x98   : > { %3831 = shalt.err (!%p3828_p10)
}
  0x99   : > { %3420 = dma.hbm_to_vmem [thread:$0]  (!%p4070_p5), %s4501_s21, 16, %s743_s4, [#allocation17]  }
  0x9a   : > { %s3843_s29 = scalar_lea.vmem %s757_s3, 16  ;;  %s3850_s2 = scalar_lea.vmem %s757_s3, 32 }
  0x9b   : > { %p3844_p12 = scmp.ne.s32.totalorder %s757_s3, %s3843_s29  ;;  %p3851_p2 = scmp.lt.s32.totalorder %s757_s3, %s757_s3 }
  0x9c   : > { %p3852_p0 = scmp.lt.s32.totalorder %s3850_s2, %s3843_s29 }
  0x9d   : > { %p3846_p11 = pnand %p3844_p12, %p4080_p6 }
  0x9e   : > { %p3853_p1 = por %p3852_p0, %p3851_p2 }
  0x9f   : > { %p3847_p13 = pneg %p3846_p11 }
  0xa1   : > { %p3854_p7 = pnand %p3853_p1, %p3847_p13 }
  0xa3   : > { %3857 = shalt.err (!%p3854_p7)
}
  0xa4   : > { %3423 = dma.hbm_to_vmem [thread:$0]  (!%p4070_p5), %s4503_s23, 16, %s757_s3, [#allocation20]  }
  0xa5   : > { %783 = sbr.rel (%p4060_p3) target bundleno = 4809 (0x12c9), region = 116  ;;  %p4530_p4 = scmp.eq.s32.totalorder (!%p4060_p3), %s4055_s28, 0 }
  0xaa   : > { %3863 = dma.done.wait (%p4530_p4), [#allocation3], 16   ;;  %p4531_p6 = pmov %p4530_p4 }
  0xab   : > { %p4532_p8 = pmov %p4530_p4 }
  0xac   : > { %3865 = vsyncadd (%p4531_p6), [#allocation3], 4294967280 }
  0xad   : > { %3867 = dma.done.wait (%p4532_p8), [#allocation5], 32   ;;  %p4533_p9 = pmov %p4530_p4 }
  0xae   : > { %p4534_p10 = pmov %p4530_p4 }
  0xaf   : > { %3869 = vsyncadd (%p4533_p9), [#allocation5], 4294967264 }
  0xb0   : > { %3871 = dma.done.wait (%p4534_p10), [#allocation8], 32   ;;  %p4535_p5 = pmov %p4530_p4 }
  0xb1   : > { %p4536_p3 = pmov %p4530_p4 }
  0xb2   : > { %3873 = vsyncadd (%p4535_p5), [#allocation8], 4294967264 }
  0xb3   : > { %3875 = dma.done.wait (%p4536_p3), [#allocation11], 272   ;;  %p4537_p12 = pmov %p4536_p3 }
  0xb4   : > { %p4538_p11 = pmov %p4536_p3 }
  0xb5   : > { %3877 = vsyncadd (%p4537_p12), [#allocation11], 4294967024 }
  0xb6   : > { %3879 = dma.done.wait (%p4538_p11), [#allocation14], 272   ;;  %p4539_p13 = pmov %p4536_p3 }
  0xb7   : > { %p4540_p2 = pmov %p4536_p3 }
  0xb8   : > { %3881 = vsyncadd (%p4539_p13), [#allocation14], 4294967024 }
  0xb9   : > { %3883 = dma.done.wait (%p4540_p2), [#allocation17], 272   ;;  %p4541_p0 = pmov %p4540_p2 }
  0xbb   : > { %3885 = vsyncadd (%p4541_p0), [#allocation17], 4294967024  ;;  %p4542_p1 = pmov %p4541_p0 }
  0xbc   : > { %p4543_p7 = pmov %p4541_p0 }
  0xbd   : > { %3887 = dma.done.wait (%p4542_p1), [#allocation20], 16  }
  0xbe   : > { %3889 = vsyncadd (%p4543_p7), [#allocation20], 4294967280  ;;  %p895_p4 = scmp.lt.s32.totalorder %s4055_s28, 1  ;;  %s4544_s4 = sld [smem:[#allocation28_spill]]  ;;  %vm912_vm0 = vcmask 261120   ;;  %v3908_v8 = vmov 0.0  }
  0xbf   : > { %s4545_s26 = sld [smem:[#allocation34_spill]]  ;;  %3199 = vmatprep.subr.bf16.mxu0 %v3908_v8  ;;  %vm3909_vm1 = vmmov 0   ;;  %3212 = vmatprep.subr.mxu1 %v3908_v8  ;;  %v3082_v19 = vld [vmem:[#allocation2] ss:$0 sm:$0xff]  ;;  %v3083_v21 = vld [vmem:[#allocation4] ss:$0 sm:$0xff] }
  0xc0   : > { %s4558_s28 = smov (!%p895_p4, %s4055_s28), 1  ;;  %3203 = vmatprep.mubr.msk.bf16.mxu0 %vm3909_vm1, %v3908_v8  ;;  %3214 = vmatprep.mubr.msk.f32.mxu1 %vm3909_vm1, %v3908_v8  ;;  %s4546_s2 = sld [smem:[#allocation35_spill]]  ;;  %vm1021_vm4 = vcmask 64512   ;;  %vm1692_vm5 = vcmask 130048   ;;  %vm1694_vm6 = vcmask 195584   ;;  %vm2822_vm11 = vcmask 523264  }
  0xc1   : > { %s4221_s6 = sshll.u32 %s4558_s28, 3  ;;  %s3910_s0 = smov 64  }
  0xc2   : > { %s4512_s27 = smov 96   ;;  %s3912_s30 = smov 88  }
  0xc3   : > { %s4513_s28 = smov 80   ;;  %s3914_s3 = smov 120  }
  0xc4   : > { %s898_s11 = scalar_lea.vmem %s4544_s4, %s4221_s6  ;;  %s3915_s25 = smov 112  }
  0xc5   : > { %v4227_v0 = vld [vmem:[%s898_s11] sm:$0xff]  ;;  %v3486_v7 = vld [vmem:[%s4545_s26 + $0x8] sm:$0xff]   ;;  %s4547_s11 = sld [smem:[#allocation30_spill]]  ;;  %s4508_s7 = smov 72  }
  0xc6   : > { %v913_v1 = vsel %vm912_vm0, %v4227_v0, 0.0  ;;  %3200 = vmatpush3.bf16.msra.mxu0 %v3486_v7  ;;  %v3487_v9 = vld [vmem:[%s4545_s26] sm:$0xff]   ;;  %s3917_s1 = smov 104   ;;  %s3918_s29 = smov 48  }
  0xc7   : > { %914 = vadd.xlane.f32.xlu0 %v913_v1  ;;  %3201 = vmatprep.subr.bf16.mxu0 %v3908_v8  ;;  %v3084_v25 = vld [vmem:[%s4546_s2] ss:$0 sm:$0xff]  ;;  %s3919_s2 = smov 40   ;;  %s4509_s8 = smov 24  }
  0xca   : > { %3202 = vmatpush3.bf16.msra.mxu0 %v3487_v9 }
  0xcb   : > { %3207 = vmatprep.subr.mxu0 %v3908_v8  ;;  %v1016_v34 = vld [vmem:[%s4547_s11] sm:$0xff]  ;;  %s4548_s11 = sld [smem:[#allocation36_spill]] }
 0x150   : > { %v915_v2 = vpop.xlane.xlu0 %914 }
 0x151   : > { %v917_v3 = vmul.f32 0.03125, %v915_v2 }
 0x153   : > { %v918_v4 = vsub.f32 %v4227_v0, %v917_v3 }
 0x155   : > { %v919_v5 = vmul.f32 %v918_v4, %v918_v4 }
 0x157   : > { %v920_v6 = vsel %vm912_vm0, %v919_v5, 0.0 }
 0x158   : > { %921 = vadd.xlane.f32.xlu0 %v920_v6 }
 0x1e1   : > { %v922_v10 = vpop.xlane.xlu0 %921 }
 0x1e2   : > { %v923_v11 = vmul.f32 0.032258064, %v922_v10 }
 0x1e4   : > { %3502 = vrsqrt.f32 %v923_v11  ;;  %vm926_vm2 = vcmp.eq.f32.partialorder %v923_v11, inf  ;;  %v929_v14 = vand.u32 2147483648, %v923_v11  ;;  %vm928_vm3 = vcmp.eq.f32.partialorder %v923_v11, 0.0 }
 0x1f1   : > { %v3503_v12 = vpop.eup %3502 }
 0x1f2   : > { %v925_v13 = vmul.f32 %v3503_v12, %v923_v11 }
 0x1f4   : > { %v927_v15 = vsel %vm926_vm2, %v923_v11, %v925_v13 }
 0x1f5   : > { %v930_v16 = vsel %vm928_vm3, %v929_v14, %v927_v15 }
 0x1f6   : > { %v931_v17 = vadd.f32 1e-06, %v930_v16 }
 0x1f8   : > { %3504 = vrcp.f32 %v931_v17 }
 0x205   : > { %v3505_v18 = vpop.eup %3504 }
 0x206   : > { %v934_v20 = vmul.f32 %v3505_v18, %v918_v4 }
 0x208   : > { %v941_v22 = vmul.f32 %v3082_v19, %v934_v20 }
 0x20a   : > { %v948_v23 = vadd.f32 %v3083_v21, %v941_v22 }
 0x20c   : > { %v954_v24 = vpack.c.bf16 %v948_v23, %v948_v23 }
 0x20e   : > { %3204 = vmatmul.mubr.msk.bf16.vlgmr.msra.gmra.mxu0 %vm912_vm0, %v954_v24 }
 0x20f   : > { %3209 = vmatprep.mubr.msk.f32.mxu0 %vm3909_vm1, %v3908_v8 }
 0x2ce   : > { %v1010_v26 = vpop.f32.mrf.mxu0 }
 0x2cf   : > { %v4253_v27 = vadd.f32 %v3084_v25, %v1010_v26 }
 0x2d0   : > { %v3205_v28 = vpop.f32.mrf.mxu0 }
 0x2d1   : > { %1108 = vrot.lane.b32.xlu0 %v4253_v27, %s3910_s0  ;;  %1019 = vrot.lane.b32.xlu1 %v4253_v27, %s4512_s27  ;;  %v1017_v33 = vmul.f32 0.35355338, %v4253_v27  ;;  %s3920_s0 = smov 56  }
 0x2d2   : > { %v1013_v29 = vpop.f32.mrf.mxu0 }
 0x2d4   : > { %v3206_v30 = vpop.f32.mrf.mxu0 }
 0x2d5   : > { %1186 = vrot.lane.b32.xlu0 %v4253_v27, %s3912_s30 }
 0x343   : > { %v1109_v31 = vpop.permute.xlu0 %1108  ;;  %v1020_v32 = vpop.permute.xlu1 %1019 }
 0x344   : > { %3208 = vmatpush3.xpose.msk.msra.mxu0 %vm1021_vm4, %v1020_v32  ;;  %3213 = vmatpush3.msra.mxu1 %v1109_v31  ;;  %v3488_v32 = vld [vmem:[%s4548_s11 + $0x8] sm:$0xff]  }
 0x345   : > { %3217 = vmatprep.subr.mxu1 %v3908_v8  ;;  %3222 = vmatprep.subr.mxu0 %v3908_v8 }
 0x347   : > { %3210 = vmatmul.mubr.msk.f32.vlgmr.msra.gmra.mxu0 %vm1021_vm4, %v1017_v33  ;;  %v1187_v44 = vpop.permute.xlu0 %1186 }
 0x348   : > { %3224 = vmatprep.mubr.msk.f32.mxu0 %vm3909_vm1, %v3908_v8 }
 0x407   : > { %v1093_v35 = vpop.f32.mrf.mxu0 }
 0x408   : > { %v1094_v36 = vadd.f32 %v1093_v35, %v1016_v34 }
 0x409   : > { %v3211_v37 = vpop.f32.mrf.mxu0 }
 0x40a   : > { %v1097_v38 = vsel %vm1021_vm4, %v1094_v36, -inf }
 0x40b   : > { %1098 = vmax.xlane.f32.xlu1 %v1097_v38 }
 0x41c   : > { %1351 = vrot.lane.b32.xlu1 %v4253_v27, %s4513_s28 }
 0x494   : > { %v1099_v39 = vpop.xlane.xlu1 %1098 }
 0x495   : > { %v1100_v40 = vsub.f32 %v1094_v36, %v1099_v39 }
 0x497   : > { %v1101_v41 = vmul.f32 1.442695, %v1100_v40 }
 0x498   : > { %v1352_v50 = vpop.permute.xlu1 %1351 }
 0x499   : > { %3506 = vpow2.f32 %v1101_v41 }
 0x4a6   : > { %v3507_v42 = vpop.eup %3506 }
 0x4a7   : > { %v1103_v43 = vsel %vm1021_vm4, %v3507_v42, 0.0 }
 0x4a8   : > { %1104 = vadd.xlane.f32.xlu0 %v1103_v43 }
 0x4be   : > { %1184 = vrot.lane.b32.xlu0 %v1017_v33, %s3914_s3 }
 0x4c2   : > { %1349 = vrot.lane.b32.xlu0 %v1017_v33, %s3915_s25 }
 0x4c6   : > { %1516 = vrot.lane.b32.xlu0 %v4253_v27, %s4508_s7  ;;  %s4510_s7 = smov 16  }
 0x4ca   : > { %1514 = vrot.lane.b32.xlu0 %v1017_v33, %s3917_s1  ;;  %v3489_v33 = vld [vmem:[%s4548_s11] sm:$0xff]  }
 0x531   : > { %v1105_v45 = vpop.xlane.xlu0 %1104 }
 0x532   : > { %3508 = vrcp.f32 %v1105_v45 }
 0x535   : > { %v1185_v46 = vpop.permute.xlu0 %1184 }
 0x539   : > { %v1350_v49 = vpop.permute.xlu0 %1349 }
 0x53d   : > { %v1517_v51 = vpop.permute.xlu0 %1516 }
 0x53f   : > { %v3509_v47 = vpop.eup %3508 }
 0x540   : > { %v1107_v48 = vmul.f32 %v3509_v47, %v3507_v42  ;;  %v3100_v47 = vld [vmem:[%s4489_s9] ss:$0 sm:$0xff] }
 0x541   : > { %v1515_v52 = vpop.permute.xlu0 %1514 }
 0x542   : > { %3215 = vmatmul.mubr.msk.f32.vlgmr.msra.gmra.mxu1 %vm1021_vm4, %v1107_v48 }
 0x543   : > { %3218 = vmatpush3.xpose.msk.msra.mxu1 %vm1021_vm4, %v1187_v44  ;;  %3219 = vmatprep.mubr.msk.f32.mxu1 %vm3909_vm1, %v3908_v8 }
 0x544   : > { %3227 = vmatprep.subr.mxu1 %v3908_v8 }
 0x546   : > { %3220 = vmatmul.mubr.msk.f32.vlgmr.msra.gmra.mxu1 %vm1021_vm4, %v1185_v46 }
 0x547   : > { %3228 = vmatpush3.xpose.msk.msra.mxu1 %vm1021_vm4, %v1352_v50  ;;  %3229 = vmatprep.mubr.msk.f32.mxu1 %vm3909_vm1, %v3908_v8 }
 0x548   : > { %3237 = vmatprep.subr.mxu1 %v3908_v8 }
 0x54a   : > { %3230 = vmatmul.mubr.msk.f32.vlgmr.msra.gmra.mxu1 %vm1021_vm4, %v1350_v49 }
 0x54b   : > { %3238 = vmatpush3.xpose.msk.msra.mxu1 %vm1021_vm4, %v1517_v51  ;;  %3239 = vmatprep.mubr.msk.f32.mxu1 %vm3909_vm1, %v3908_v8 }
 0x54c   : > { %3247 = vmatprep.subr.bf16.mxu1 %v3908_v8 }
 0x54e   : > { %3240 = vmatmul.mubr.msk.f32.vlgmr.msra.gmra.mxu1 %vm1021_vm4, %v1515_v52 }
 0x54f   : > { %3251 = vmatprep.mubr.msk.bf16.mxu1 %vm3909_vm1, %v3908_v8  ;;  %3248 = vmatpush3.bf16.msra.mxu1 %v3488_v32 }
 0x550   : > { %3249 = vmatprep.subr.bf16.mxu1 %v3908_v8 }
 0x553   : > { %3250 = vmatpush3.bf16.msra.mxu1 %v3489_v33 }
 0x554   : > { %3263 = vmatprep.subr.bf16.mxu1 %v3908_v8 }
 0x602   : > { %v4297_v53 = vpop.f32.mrf.mxu1 }
 0x604   : > { %v3216_v54 = vpop.f32.mrf.mxu1 }
 0x606   : > { %v1258_v55 = vpop.f32.mrf.mxu1 }
 0x607   : > { %v1259_v56 = vadd.f32 %v1258_v55, %v1016_v34 }
 0x608   : > { %v3221_v57 = vpop.f32.mrf.mxu1 }
 0x609   : > { %v1262_v58 = vsel %vm1021_vm4, %v1259_v56, -inf }
 0x60a   : > { %1263 = vmax.xlane.f32.xlu0 %v1262_v58  ;;  %v1423_v59 = vpop.f32.mrf.mxu1 }
 0x60b   : > { %v1424_v60 = vadd.f32 %v1423_v59, %v1016_v34 }
 0x60c   : > { %v3231_v61 = vpop.f32.mrf.mxu1 }
 0x60d   : > { %v1427_v62 = vsel %vm1021_vm4, %v1424_v60, -inf }
 0x60e   : > { %1428 = vmax.xlane.f32.xlu1 %v1427_v62  ;;  %v1588_v63 = vpop.f32.mrf.mxu1  ;;  %v3491_v62 = vld [vmem:[#allocation10] sm:$0xff]  }
 0x60f   : > { %v1589_v1 = vadd.f32 %v1588_v63, %v1016_v34  ;;  %v3493_v63 = vld [vmem:[%s4492_s12] sm:$0xff]  }
 0x610   : > { %v3241_v2 = vpop.f32.mrf.mxu1 }
 0x611   : > { %v1592_v3 = vsel %vm1021_vm4, %v1589_v1, -inf }
 0x612   : > { %1593 = vmax.xlane.f32.xlu0 %v1592_v3 }
 0x61f   : > { %1438 = vrot.lane.b32.xlu1 %v4253_v27, %s3918_s29  ;;  %s4549_s29 = sld [smem:[#allocation29_spill]] }
 0x693   : > { %v1264_v4 = vpop.xlane.xlu0 %1263 }
 0x694   : > { %v1265_v5 = vsub.f32 %v1259_v56, %v1264_v4 }
 0x696   : > { %v1266_v6 = vmul.f32 1.442695, %v1265_v5 }
 0x697   : > { %v1429_v7 = vpop.xlane.xlu1 %1428 }
 0x698   : > { %3510 = vpow2.f32 %v1266_v6  ;;  %v1430_v9 = vsub.f32 %v1424_v60, %v1429_v7  ;;  %v3492_v60 = vld [vmem:[%s4492_s12 + $0x8] sm:$0xff]  }
 0x69a   : > { %v1431_v10 = vmul.f32 1.442695, %v1430_v9 }
 0x69b   : > { %v1594_v11 = vpop.xlane.xlu0 %1593  ;;  %v1439_v21 = vpop.permute.xlu1 %1438 }
 0x69c   : > { %3512 = vpow2.f32 %v1431_v10  ;;  %v1595_v12 = vsub.f32 %v1589_v1, %v1594_v11 }
 0x69e   : > { %v1596_v13 = vmul.f32 1.442695, %v1595_v12  ;;  %v3104_v12 = vld [vmem:[#allocation6] ss:$0 sm:$0xff] }
 0x6a0   : > { %3514 = vpow2.f32 %v1596_v13 }
 0x6a5   : > { %v3511_v14 = vpop.eup %3510 }
 0x6a6   : > { %v1268_v15 = vsel %vm1021_vm4, %v3511_v14, 0.0 }
 0x6a7   : > { %1269 = vadd.xlane.f32.xlu0 %v1268_v15 }
 0x6a9   : > { %v3513_v16 = vpop.eup %3512 }
 0x6aa   : > { %v1433_v17 = vsel %vm1021_vm4, %v3513_v16, 0.0 }
 0x6ab   : > { %1434 = vadd.xlane.f32.xlu0 %v1433_v17 }
 0x6ad   : > { %v3515_v18 = vpop.eup %3514 }
 0x6ae   : > { %v1598_v19 = vsel %vm1021_vm4, %v3515_v18, 0.0 }
 0x6af   : > { %1599 = vadd.xlane.f32.xlu1 %v1598_v19 }
 0x6c0   : > { %1603 = vrot.lane.b32.xlu1 %v4253_v27, %s3919_s2 }
 0x6c1   : > { %1273 = vrot.lane.b32.xlu0 %v4253_v27, %s3920_s0  ;;  %s4511_s0 = smov 8  }
 0x730   : > { %v1270_v20 = vpop.xlane.xlu0 %1269 }
 0x731   : > { %3516 = vrcp.f32 %v1270_v20 }
 0x734   : > { %v1435_v22 = vpop.xlane.xlu0 %1434 }
 0x735   : > { %3518 = vrcp.f32 %v1435_v22 }
 0x738   : > { %v1600_v23 = vpop.xlane.xlu1 %1599  ;;  %v1274_v24 = vpop.permute.xlu0 %1273 }
 0x739   : > { %3520 = vrcp.f32 %v1600_v23  ;;  %3223 = vmatpush3.msra.mxu0 %v1274_v24 }
 0x73a   : > { %3232 = vmatprep.subr.mxu0 %v3908_v8 }
 0x73c   : > { %v1604_v29 = vpop.permute.xlu1 %1603 }
 0x73e   : > { %v3517_v25 = vpop.eup %3516 }
 0x73f   : > { %v1272_v26 = vmul.f32 %v3517_v25, %v3511_v14  ;;  %v3105_v14 = vld [vmem:[#allocation7] ss:$0 sm:$0xff]  ;;  %v3106_v25 = vld [vmem:[#allocation9] ss:$0 sm:$0xff] }
 0x741   : > { %3225 = vmatmul.mubr.msk.f32.vlgmr.msra.gmra.mxu0 %vm1021_vm4, %v1272_v26 }
 0x742   : > { %v3519_v28 = vpop.eup %3518  ;;  %3233 = vmatpush3.msra.mxu0 %v1439_v21  ;;  %3234 = vmatprep.mubr.msk.f32.mxu0 %vm3909_vm1, %v3908_v8 }
 0x743   : > { %3242 = vmatprep.subr.mxu0 %v3908_v8  ;;  %v1437_v27 = vmul.f32 %v3519_v28, %v3513_v16 }
 0x745   : > { %3235 = vmatmul.mubr.msk.f32.vlgmr.msra.gmra.mxu0 %vm1021_vm4, %v1437_v27 }
 0x746   : > { %v3521_v30 = vpop.eup %3520  ;;  %3243 = vmatpush3.msra.mxu0 %v1604_v29  ;;  %3244 = vmatprep.mubr.msk.f32.mxu0 %vm3909_vm1, %v3908_v8 }
 0x747   : > { %v1602_v31 = vmul.f32 %v3521_v30, %v3515_v18  ;;  %3255 = vmatprep.subr.bf16.mxu0 %v3908_v8  ;;  %v3110_v18 = vld [vmem:[#allocation12] ss:$0 sm:$0xff] }
 0x749   : > { %3245 = vmatmul.mubr.msk.f32.vlgmr.msra.gmra.mxu0 %vm1021_vm4, %v1602_v31 }
 0x74a   : > { %3259 = vmatprep.mubr.msk.bf16.mxu0 %vm3909_vm1, %v3908_v8  ;;  %3256 = vmatpush3.bf16.msra.mxu0 %v3492_v60 }
 0x74b   : > { %3257 = vmatprep.subr.bf16.mxu0 %v3908_v8 }
 0x74e   : > { %3258 = vmatpush3.bf16.msra.mxu0 %v3493_v63 }
 0x74f   : > { %3271 = vmatprep.subr.mxu0 %v3908_v8 }
 0x801   : > { %v1345_v34 = vpop.f32.mrf.mxu0 }
 0x802   : > { %1680 = vrot.lane.b32.xlu1 %v1345_v34, %s4511_s0  ;;  %s4555_s0 = smov 16  }
 0x803   : > { %v3226_v35 = vpop.f32.mrf.mxu0 }
 0x805   : > { %v1510_v36 = vpop.f32.mrf.mxu0 }
 0x806   : > { %1684 = vrot.lane.b32.xlu0 %v1510_v36, %s4510_s7  ;;  %s4552_s7 = smov 96  }
 0x807   : > { %v3236_v37 = vpop.f32.mrf.mxu0 }
 0x809   : > { %v1675_v38 = vpop.f32.mrf.mxu0 }
 0x80a   : > { %1688 = vrot.lane.b32.xlu1 %v1675_v38, %s4509_s8  ;;  %s902_s8 = scalar_lea.vmem %s4549_s29, %s4221_s6  ;;  %s906_s29 = scalar_lea.vmem %s4504_s24, %s4221_s6 }
 0x80b   : > { %v3246_v39 = vpop.f32.mrf.mxu0  ;;  %v909_v61 = vld [vmem:[%s902_s8] sm:$0xff]  ;;  %s4556_s8 = smov 24  }
 0x80c   : > { %v1873_v1 = vpack.c.bf16 %v909_v61, %v909_v61 }
 0x874   : > { %v1681_v40 = vpop.permute.xlu1 %1680 }
 0x875   : > { %v1691_v42 = vsel %vm1021_vm4, %v4297_v53, %v1681_v40 }
 0x878   : > { %v1685_v41 = vpop.permute.xlu0 %1684 }
 0x879   : > { %v1693_v43 = vsel %vm1692_vm5, %v1691_v42, %v1685_v41 }
 0x87c   : > { %v1689_v44 = vpop.permute.xlu1 %1688 }
 0x87d   : > { %v1695_v45 = vsel %vm1694_vm6, %v1693_v43, %v1689_v44 }
 0x87e   : > { %v1701_v46 = vpack.c.bf16 %v1695_v45, %v1695_v45 }
 0x880   : > { %3252 = vmatmul.mubr.msk.bf16.vlgmr.msra.gmra.mxu1 %vm912_vm0, %v1701_v46 }
 0x881   : > { %3267 = vmatprep.mubr.msk.bf16.mxu1 %vm3909_vm1, %v3908_v8 }
 0x940   : > { %v1757_v48 = vpop.f32.mrf.mxu1 }
 0x941   : > { %v1758_v49 = vadd.f32 %v3100_v47, %v1757_v48 }
 0x942   : > { %v3253_v50 = vpop.f32.mrf.mxu1 }
 0x943   : > { %v4342_v51 = vadd.f32 %v1758_v49, %v4227_v0  ;;  %v3490_v0 = vld [vmem:[#allocation10 + $0x8] sm:$0xff]  }
 0x944   : > { %v1760_v52 = vpop.f32.mrf.mxu1  ;;  %3264 = vmatpush3.bf16.msra.mxu1 %v3490_v0 }
 0x945   : > { %v1766_v53 = vsel %vm912_vm0, %v4342_v51, 0.0  ;;  %3265 = vmatprep.subr.bf16.mxu1 %v3908_v8 }
 0x946   : > { %1767 = vadd.xlane.f32.xlu0 %v1766_v53  ;;  %v3254_v54 = vpop.f32.mrf.mxu1 }
 0x948   : > { %3266 = vmatpush3.bf16.msra.mxu1 %v3491_v62 }
 0x949   : > { %3281 = vmatprep.subr.mxu1 %v3908_v8 }
 0x94b   : > { %3268 = vmatmul.mubr.msk.bf16.vlgmr.msra.gmra.mxu1 %vm912_vm0, %v1873_v1 }
 0x94c   : > { %3283 = vmatprep.mubr.msk.f32.mxu1 %vm3909_vm1, %v3908_v8 }
 0x9cf   : > { %v1768_v55 = vpop.xlane.xlu0 %1767 }
 0x9d0   : > { %v1769_v56 = vmul.f32 0.03125, %v1768_v55 }
 0x9d2   : > { %v1770_v57 = vsub.f32 %v4342_v51, %v1769_v56 }
 0x9d4   : > { %v1771_v58 = vmul.f32 %v1770_v57, %v1770_v57 }
 0x9d6   : > { %v1772_v59 = vsel %vm912_vm0, %v1771_v58, 0.0 }
 0x9d7   : > { %1773 = vadd.xlane.f32.xlu1 %v1772_v59 }
 0xa0b   : > { %v1929_v19 = vpop.f32.mrf.mxu1 }
 0xa0c   : > { %v4368_v20 = vadd.f32 %v3110_v18, %v1929_v19 }
 0xa0d   : > { %v3269_v21 = vpop.f32.mrf.mxu1 }
 0xa0e   : > { %2102 = vrot.lane.b32.xlu0 %v4368_v20, %s3914_s3 }
 0xa0f   : > { %v1932_v22 = vpop.f32.mrf.mxu1 }
 0xa11   : > { %v3270_v23 = vpop.f32.mrf.mxu1 }
 0xa12   : > { %2267 = vrot.lane.b32.xlu0 %v4368_v20, %s3915_s25 }
 0xa16   : > { %2432 = vrot.lane.b32.xlu0 %v4368_v20, %s3917_s1 }
 0xa60   : > { %v1774_v2 = vpop.xlane.xlu1 %1773 }
 0xa61   : > { %v1775_v3 = vmul.f32 0.032258064, %v1774_v2 }
 0xa63   : > { %3522 = vrsqrt.f32 %v1775_v3  ;;  %vm1778_vm7 = vcmp.eq.f32.partialorder %v1775_v3, inf  ;;  %v1781_v6 = vand.u32 2147483648, %v1775_v3  ;;  %vm1780_vm8 = vcmp.eq.f32.partialorder %v1775_v3, 0.0 }
 0xa70   : > { %v3523_v4 = vpop.eup %3522 }
 0xa71   : > { %v1777_v5 = vmul.f32 %v3523_v4, %v1775_v3 }
 0xa73   : > { %v1779_v7 = vsel %vm1778_vm7, %v1775_v3, %v1777_v5 }
 0xa74   : > { %v1782_v9 = vsel %vm1780_vm8, %v1781_v6, %v1779_v7 }
 0xa75   : > { %v1783_v10 = vadd.f32 1e-06, %v1782_v9 }
 0xa77   : > { %3524 = vrcp.f32 %v1783_v10 }
 0xa80   : > { %v2103_v24 = vpop.permute.xlu0 %2102 }
 0xa81   : > { %3282 = vmatpush3.xpose.msk.msra.mxu1 %vm1021_vm4, %v2103_v24 }
 0xa82   : > { %3291 = vmatprep.subr.mxu1 %v3908_v8 }
 0xa84   : > { %v3525_v11 = vpop.eup %3524  ;;  %v2268_v32 = vpop.permute.xlu0 %2267 }
 0xa85   : > { %v1786_v13 = vmul.f32 %v3525_v11, %v1770_v57 }
 0xa87   : > { %v1793_v15 = vmul.f32 %v3104_v12, %v1786_v13 }
 0xa88   : > { %v2433_v35 = vpop.permute.xlu0 %2432 }
 0xa89   : > { %v1800_v16 = vadd.f32 %v3105_v14, %v1793_v15 }
 0xa8b   : > { %v1806_v17 = vpack.c.bf16 %v1800_v16, %v1800_v16 }
 0xa8d   : > { %3260 = vmatmul.mubr.msk.bf16.vlgmr.msra.gmra.mxu0 %vm912_vm0, %v1806_v17 }
 0xa8e   : > { %3273 = vmatprep.mubr.msk.f32.mxu0 %vm3909_vm1, %v3908_v8  ;;  %3272 = vmatpush3.xpose.msk.msra.mxu0 %vm1021_vm4, %v4368_v20 }
 0xa8f   : > { %3276 = vmatprep.subr.mxu0 %v3908_v8 }
 0xb4d   : > { %v1862_v26 = vpop.f32.mrf.mxu0 }
 0xb4e   : > { %v1863_v28 = vadd.f32 %v3106_v25, %v1862_v26 }
 0xb4f   : > { %v3261_v27 = vpop.f32.mrf.mxu0 }
 0xb50   : > { %v1936_v29 = vmul.f32 0.35355338, %v1863_v28  ;;  %v3494_v27 = vld [vmem:[#allocation13 + $0x8] sm:$0xff]  }
 0xb51   : > { %v1865_v30 = vpop.f32.mrf.mxu0 }
 0xb52   : > { %2100 = vrot.lane.b32.xlu1 %v1936_v29, %s3914_s3  ;;  %3274 = vmatmul.mubr.msk.f32.vlgmr.msra.gmra.mxu0 %vm1021_vm4, %v1936_v29  ;;  %s4550_s3 = sld [smem:[#allocation31_spill]] }
 0xb53   : > { %v3262_v31 = vpop.f32.mrf.mxu0  ;;  %3278 = vmatprep.mubr.msk.f32.mxu0 %vm3909_vm1, %v3908_v8 }
 0xb56   : > { %2265 = vrot.lane.b32.xlu1 %v1936_v29, %s3915_s25  ;;  %s4551_s25 = smov 80  }
 0xb58   : > { %v1935_v37 = vld [vmem:[%s4550_s3] sm:$0xff] }
 0xb5a   : > { %2430 = vrot.lane.b32.xlu1 %v1936_v29, %s3917_s1  ;;  %s4553_s1 = smov 72  }
 0xbc4   : > { %v2101_v33 = vpop.permute.xlu1 %2100 }
 0xbc5   : > { %3284 = vmatmul.mubr.msk.f32.vlgmr.msra.gmra.mxu1 %vm1021_vm4, %v2101_v33 }
 0xbc6   : > { %3292 = vmatpush3.xpose.msk.msra.mxu1 %vm1021_vm4, %v2268_v32  ;;  %3293 = vmatprep.mubr.msk.f32.mxu1 %vm3909_vm1, %v3908_v8 }
 0xbc7   : > { %3301 = vmatprep.subr.mxu1 %v3908_v8 }
 0xbc8   : > { %v2266_v34 = vpop.permute.xlu1 %2265 }
 0xbc9   : > { %3294 = vmatmul.mubr.msk.f32.vlgmr.msra.gmra.mxu1 %vm1021_vm4, %v2266_v34 }
 0xbca   : > { %3302 = vmatpush3.xpose.msk.msra.mxu1 %vm1021_vm4, %v2433_v35  ;;  %3303 = vmatprep.mubr.msk.f32.mxu1 %vm3909_vm1, %v3908_v8  ;;  %v3495_v35 = vld [vmem:[#allocation13] sm:$0xff]  }
 0xbcb   : > { %3311 = vmatprep.subr.bf16.mxu1 %v3908_v8 }
 0xbcc   : > { %v2431_v36 = vpop.permute.xlu1 %2430 }
 0xbcd   : > { %3304 = vmatmul.mubr.msk.f32.vlgmr.msra.gmra.mxu1 %vm1021_vm4, %v2431_v36 }
 0xbce   : > { %3315 = vmatprep.mubr.msk.bf16.mxu1 %vm3909_vm1, %v3908_v8  ;;  %3312 = vmatpush3.bf16.msra.mxu1 %v3494_v27 }
 0xbcf   : > { %3313 = vmatprep.subr.bf16.mxu1 %v3908_v8 }
 0xbd2   : > { %3314 = vmatpush3.bf16.msra.mxu1 %v3495_v35 }
 0xbd3   : > { %3327 = vmatprep.subr.bf16.mxu1 %v3908_v8 }
 0xc12   : > { %v2009_v38 = vpop.f32.mrf.mxu0 }
 0xc13   : > { %v2010_v39 = vadd.f32 %v2009_v38, %v1935_v37 }
 0xc14   : > { %v3275_v40 = vpop.f32.mrf.mxu0 }
 0xc15   : > { %v2013_v41 = vsel %vm1021_vm4, %v2010_v39, -inf }
 0xc16   : > { %2014 = vmax.xlane.f32.xlu0 %v2013_v41 }
 0xc85   : > { %v2174_v42 = vpop.f32.mrf.mxu1 }
 0xc86   : > { %v2175_v43 = vadd.f32 %v2174_v42, %v1935_v37 }
 0xc87   : > { %v3285_v44 = vpop.f32.mrf.mxu1 }
 0xc88   : > { %v2178_v45 = vsel %vm1021_vm4, %v2175_v43, -inf }
 0xc89   : > { %2179 = vmax.xlane.f32.xlu1 %v2178_v45  ;;  %v2339_v46 = vpop.f32.mrf.mxu1  ;;  %v3126_v45 = vld [vmem:[#allocation15] ss:$0 sm:$0xff] }
 0xc8a   : > { %v2340_v47 = vadd.f32 %v2339_v46, %v1935_v37 }
 0xc8b   : > { %v3295_v48 = vpop.f32.mrf.mxu1 }
 0xc8c   : > { %v2343_v49 = vsel %vm1021_vm4, %v2340_v47, -inf }
 0xc8d   : > { %v2504_v50 = vpop.f32.mrf.mxu1  ;;  %2344 = vmax.xlane.f32.xlu0 %v2343_v49 }
 0xc8e   : > { %v2505_v52 = vadd.f32 %v2504_v50, %v1935_v37 }
 0xc8f   : > { %v3305_v53 = vpop.f32.mrf.mxu1 }
 0xc90   : > { %v2508_v54 = vsel %vm1021_vm4, %v2505_v52, -inf }
 0xc91   : > { %2509 = vmax.xlane.f32.xlu0 %v2508_v54 }
 0xc9f   : > { %v2015_v55 = vpop.xlane.xlu0 %2014 }
 0xca0   : > { %v2016_v56 = vsub.f32 %v2010_v39, %v2015_v55 }
 0xca2   : > { %v2017_v57 = vmul.f32 1.442695, %v2016_v56 }
 0xca4   : > { %3526 = vpow2.f32 %v2017_v57 }
 0xcb1   : > { %v3527_v58 = vpop.eup %3526 }
 0xcb2   : > { %v2019_v59 = vsel %vm1021_vm4, %v3527_v58, 0.0 }
 0xcb3   : > { %2020 = vadd.xlane.f32.xlu0 %v2019_v59  ;;  %v3496_v59 = vld [vmem:[#allocation16 + $0x8] sm:$0xff]  }
 0xd12   : > { %v2180_v0 = vpop.xlane.xlu1 %2179 }
 0xd13   : > { %v2181_v60 = vsub.f32 %v2175_v43, %v2180_v0  ;;  %v3497_v0 = vld [vmem:[#allocation16] sm:$0xff]  }
 0xd15   : > { %v2182_v61 = vmul.f32 1.442695, %v2181_v60  ;;  %v3499_v60 = vld [vmem:[%s4502_s22 + $0x10] sm:$0xff]  }
 0xd16   : > { %v2345_v62 = vpop.xlane.xlu0 %2344 }
 0xd17   : > { %3528 = vpow2.f32 %v2182_v61  ;;  %v2346_v63 = vsub.f32 %v2340_v47, %v2345_v62  ;;  %v3500_v61 = vld [vmem:[%s4502_s22 + $0x8] sm:$0xff]  }
 0xd19   : > { %v2347_v1 = vmul.f32 1.442695, %v2346_v63 }
 0xd1a   : > { %v2510_v6 = vpop.xlane.xlu0 %2509 }
 0xd1b   : > { %3530 = vpow2.f32 %v2347_v1  ;;  %v2511_v7 = vsub.f32 %v2505_v52, %v2510_v6 }
 0xd1d   : > { %v2512_v9 = vmul.f32 1.442695, %v2511_v7 }
 0xd1f   : > { %3532 = vpow2.f32 %v2512_v9  ;;  %v3130_v9 = vld [vmem:[%s4498_s18] ss:$0 sm:$0xff] }
 0xd24   : > { %v3529_v2 = vpop.eup %3528 }
 0xd25   : > { %v2184_v3 = vsel %vm1021_vm4, %v3529_v2, 0.0 }
 0xd26   : > { %2185 = vadd.xlane.f32.xlu1 %v2184_v3 }
 0xd28   : > { %v3531_v4 = vpop.eup %3530 }
 0xd29   : > { %v2349_v5 = vsel %vm1021_vm4, %v3531_v4, 0.0 }
 0xd2a   : > { %2350 = vadd.xlane.f32.xlu0 %v2349_v5 }
 0xd2c   : > { %v3533_v10 = vpop.eup %3532 }
 0xd2d   : > { %v2514_v11 = vsel %vm1021_vm4, %v3533_v10, 0.0 }
 0xd37   : > { %2189 = vrot.lane.b32.xlu1 %v4368_v20, %s3912_s30  ;;  %s4554_s30 = smov 8  }
 0xd3b   : > { %2354 = vrot.lane.b32.xlu1 %v4368_v20, %s4551_s25 }
 0xd3c   : > { %v2021_v12 = vpop.xlane.xlu0 %2020 }
 0xd3d   : > { %3534 = vrcp.f32 %v2021_v12 }
 0xd40   : > { %2024 = vrot.lane.b32.xlu0 %v4368_v20, %s4552_s7 }
 0xd4a   : > { %v3535_v15 = vpop.eup %3534 }
 0xd4b   : > { %v2023_v17 = vmul.f32 %v3535_v15, %v3527_v58  ;;  %v3132_v15 = vld [vmem:[#allocation18] ss:$0 sm:$0xff] }
 0xd5f   : > { %2515 = vadd.xlane.f32.xlu1 %v2514_v11 }
 0xd70   : > { %2519 = vrot.lane.b32.xlu1 %v4368_v20, %s4553_s1 }
 0xdaf   : > { %v2186_v13 = vpop.xlane.xlu1 %2185 }
 0xdb0   : > { %3536 = vrcp.f32 %v2186_v13 }
 0xdb3   : > { %v2351_v14 = vpop.xlane.xlu0 %2350  ;;  %v2190_v18 = vpop.permute.xlu1 %2189 }
 0xdb4   : > { %3538 = vrcp.f32 %v2351_v14  ;;  %v3501_v14 = vld [vmem:[%s4502_s22] sm:$0xff]  }
 0xdb7   : > { %v2025_v16 = vpop.permute.xlu0 %2024  ;;  %v2355_v21 = vpop.permute.xlu1 %2354 }
 0xdb8   : > { %3277 = vmatpush3.msra.mxu0 %v2025_v16 }
 0xdb9   : > { %3279 = vmatmul.mubr.msk.f32.vlgmr.msra.gmra.mxu0 %vm1021_vm4, %v2023_v17  ;;  %3286 = vmatprep.subr.mxu0 %v3908_v8 }
 0xdba   : > { %3287 = vmatpush3.msra.mxu0 %v2190_v18  ;;  %3288 = vmatprep.mubr.msk.f32.mxu0 %vm3909_vm1, %v3908_v8 }
 0xdbb   : > { %3296 = vmatprep.subr.mxu0 %v3908_v8 }
 0xdbd   : > { %v3537_v19 = vpop.eup %3536 }
 0xdbe   : > { %v2188_v20 = vmul.f32 %v3537_v19, %v3529_v2 }
 0xdc0   : > { %3289 = vmatmul.mubr.msk.f32.vlgmr.msra.gmra.mxu0 %vm1021_vm4, %v2188_v20 }
 0xdc1   : > { %v3539_v22 = vpop.eup %3538  ;;  %3297 = vmatpush3.msra.mxu0 %v2355_v21  ;;  %3298 = vmatprep.mubr.msk.f32.mxu0 %vm3909_vm1, %v3908_v8 }
 0xdc2   : > { %v2353_v23 = vmul.f32 %v3539_v22, %v3531_v4  ;;  %3306 = vmatprep.subr.mxu0 %v3908_v8  ;;  %v3136_v22 = vld [vmem:[#allocation19] ss:$0 sm:$0xff] }
 0xdc4   : > { %3299 = vmatmul.mubr.msk.f32.vlgmr.msra.gmra.mxu0 %vm1021_vm4, %v2353_v23 }
 0xdc5   : > { %3308 = vmatprep.mubr.msk.f32.mxu0 %vm3909_vm1, %v3908_v8 }
 0xde8   : > { %v2516_v24 = vpop.xlane.xlu1 %2515 }
 0xde9   : > { %3540 = vrcp.f32 %v2516_v24 }
 0xdec   : > { %v2520_v25 = vpop.permute.xlu1 %2519 }
 0xded   : > { %3307 = vmatpush3.msra.mxu0 %v2520_v25 }
 0xdee   : > { %3319 = vmatprep.subr.bf16.mxu0 %v3908_v8 }
 0xdf6   : > { %v3541_v26 = vpop.eup %3540 }
 0xdf7   : > { %v2518_v28 = vmul.f32 %v3541_v26, %v3533_v10 }
 0xdf9   : > { %3309 = vmatmul.mubr.msk.f32.vlgmr.msra.gmra.mxu0 %vm1021_vm4, %v2518_v28 }
 0xdfa   : > { %3323 = vmatprep.mubr.msk.bf16.mxu0 %vm3909_vm1, %v3908_v8  ;;  %3320 = vmatpush3.bf16.msra.mxu0 %v3496_v59 }
 0xdfb   : > { %3321 = vmatprep.subr.bf16.mxu0 %v3908_v8 }
 0xdfe   : > { %3322 = vmatpush3.bf16.msra.mxu0 %v3497_v0 }
 0xe79   : > { %v2096_v29 = vpop.f32.mrf.mxu0 }
 0xe7b   : > { %v3280_v30 = vpop.f32.mrf.mxu0 }
 0xe80   : > { %v2261_v31 = vpop.f32.mrf.mxu0 }
 0xe81   : > { %2596 = vrot.lane.b32.xlu0 %v2261_v31, %s4554_s30 }
 0xe82   : > { %v3290_v32 = vpop.f32.mrf.mxu0 }
 0xe84   : > { %v2426_v33 = vpop.f32.mrf.mxu0 }
 0xe85   : > { %2600 = vrot.lane.b32.xlu1 %v2426_v33, %s4555_s0 }
 0xe86   : > { %v3300_v34 = vpop.f32.mrf.mxu0 }
 0xeb9   : > { %v2591_v36 = vpop.f32.mrf.mxu0 }
 0xeba   : > { %2604 = vrot.lane.b32.xlu0 %v2591_v36, %s4556_s8 }
 0xebb   : > { %v3310_v37 = vpop.f32.mrf.mxu0 }
 0xef3   : > { %v2597_v38 = vpop.permute.xlu0 %2596 }
 0xef4   : > { %v2607_v40 = vsel %vm1021_vm4, %v2096_v29, %v2597_v38 }
 0xef7   : > { %v2601_v39 = vpop.permute.xlu1 %2600 }
 0xef8   : > { %v2608_v41 = vsel %vm1692_vm5, %v2607_v40, %v2601_v39 }
 0xf2c   : > { %v2605_v42 = vpop.permute.xlu0 %2604 }
 0xf2d   : > { %v2609_v43 = vsel %vm1694_vm6, %v2608_v41, %v2605_v42 }
 0xf2e   : > { %v2615_v44 = vpack.c.bf16 %v2609_v43, %v2609_v43 }
 0xf30   : > { %3316 = vmatmul.mubr.msk.bf16.vlgmr.msra.gmra.mxu1 %vm912_vm0, %v2615_v44 }
 0xf31   : > { %3335 = vmatprep.mubr.msk.bf16.mxu1 %vm3909_vm1, %v3908_v8 }
 0xff0   : > { %v2671_v46 = vpop.f32.mrf.mxu1 }
 0xff1   : > { %v2672_v47 = vadd.f32 %v3126_v45, %v2671_v46 }
 0xff2   : > { %v3317_v48 = vpop.f32.mrf.mxu1 }
 0xff3   : > { %v2677_v49 = vadd.f32 %v2672_v47, %v4342_v51  ;;  %v3498_v51 = vld [vmem:[%s4502_s22 + $0x18] sm:$0xff]  }
 0xff4   : > { %v2674_v50 = vpop.f32.mrf.mxu1  ;;  %3328 = vmatpush3.bf16.msra.mxu1 %v3498_v51 }
 0xff5   : > { %v2680_v52 = vsel %vm912_vm0, %v2677_v49, 0.0  ;;  %3329 = vmatprep.subr.bf16.mxu1 %v3908_v8 }
 0xff6   : > { %2681 = vadd.xlane.f32.xlu1 %v2680_v52  ;;  %v3318_v53 = vpop.f32.mrf.mxu1 }
 0xff8   : > { %3330 = vmatpush3.bf16.msra.mxu1 %v3499_v60 }
 0xff9   : > { %3331 = vmatprep.subr.bf16.mxu1 %v3908_v8 }
 0xffc   : > { %3332 = vmatpush3.bf16.msra.mxu1 %v3500_v61 }
 0xffd   : > { %3333 = vmatprep.subr.bf16.mxu1 %v3908_v8  ;;  %v3131_v8 = vld [vmem:[%s4499_s19] ss:$0 sm:$0xff] }
0x1000   : > { %3334 = vmatpush3.bf16.msra.mxu1 %v3501_v14 }
0x107f   : > { %v2682_v54 = vpop.xlane.xlu1 %2681 }
0x1080   : > { %v2683_v55 = vmul.f32 0.03125, %v2682_v54 }
0x1082   : > { %v2684_v56 = vsub.f32 %v2677_v49, %v2683_v55 }
0x1084   : > { %v2685_v57 = vmul.f32 %v2684_v56, %v2684_v56 }
0x1086   : > { %v2686_v58 = vsel %vm912_vm0, %v2685_v57, 0.0 }
0x1087   : > { %2687 = vadd.xlane.f32.xlu0 %v2686_v58 }
0x1110   : > { %v2688_v62 = vpop.xlane.xlu0 %2687 }
0x1111   : > { %v2689_v63 = vmul.f32 0.032258064, %v2688_v62 }
0x1113   : > { %3542 = vrsqrt.f32 %v2689_v63  ;;  %vm2692_vm9 = vcmp.eq.f32.partialorder %v2689_v63, inf  ;;  %v2695_v3 = vand.u32 2147483648, %v2689_v63  ;;  %vm2694_vm10 = vcmp.eq.f32.partialorder %v2689_v63, 0.0 }
0x1120   : > { %v3543_v1 = vpop.eup %3542 }
0x1121   : > { %v2691_v2 = vmul.f32 %v3543_v1, %v2689_v63 }
0x1123   : > { %v2693_v4 = vsel %vm2692_vm9, %v2689_v63, %v2691_v2 }
0x1124   : > { %v2696_v5 = vsel %vm2694_vm10, %v2695_v3, %v2693_v4 }
0x1125   : > { %v2697_v6 = vadd.f32 1e-06, %v2696_v5 }
0x1127   : > { %3544 = vrcp.f32 %v2697_v6 }
0x1134   : > { %v3545_v7 = vpop.eup %3544 }
0x1135   : > { %v2700_v10 = vmul.f32 %v3545_v7, %v2684_v56 }
0x1137   : > { %v2707_v11 = vmul.f32 %v3130_v9, %v2700_v10 }
0x1139   : > { %v2714_v12 = vadd.f32 %v3131_v8, %v2707_v11 }
0x113b   : > { %v2720_v13 = vpack.c.bf16 %v2714_v12, %v2714_v12 }
0x113d   : > { %3324 = vmatmul.mubr.msk.bf16.vlgmr.msra.gmra.mxu0 %vm912_vm0, %v2720_v13 }
0x11fd   : > { %v2776_v16 = vpop.f32.mrf.mxu0 }
0x11fe   : > { %v2777_v17 = vadd.f32 %v3132_v15, %v2776_v16 }
0x11ff   : > { %v3325_v18 = vpop.f32.mrf.mxu0 }
0x1200   : > { %v2791_v19 = vpack.c.bf16 %v2777_v17, %v2777_v17 }
0x1201   : > { %v2779_v20 = vpop.f32.mrf.mxu0 }
0x1202   : > { %3336 = vmatmul.mubr.msk.bf16.vlgmr.msra.gmra.mxu1 %vm2822_vm11, %v2791_v19 }
0x1203   : > { %v3326_v21 = vpop.f32.mrf.mxu0 }
0x12c2   : > { %v2860_v23 = vpop.f32.mrf.mxu1 }
0x12c3   : > { %v2861_v24 = vadd.f32 %v3136_v22, %v2860_v23 }
0x12c4   : > { %v3337_v25 = vpop.f32.mrf.mxu1 }
0x12c5   : > { %v2866_v26 = vadd.f32 %v2861_v24, %v2677_v49 }
0x12c6   : > { %v2863_v28 = vpop.f32.mrf.mxu1 }
0x12c7   : > { %2867 = vst.msk [vmem:[%s906_s29] sm:$0xff] %vm912_vm0, %v2866_v26 }
0x12c8   : > { %v3338_v27 = vpop.f32.mrf.mxu1 }
0x12c9 PF: > { %s41_s5 = sadd.s32 1, %s3892_s5  }
0x12ca   : > { %p38_p6 = scmp.ge.s32.totalorder %s41_s5, 4  }
0x12cc   :  { %40 = sbr.rel (!%p38_p6) target bundleno = 18 (0x12), region = 198 }
0x12d1   :  { %2887 = vsyncpa [#allocation3], 1 }
0x12d2   :  { %2889 = vsyncpa [#allocation3 + $0x1], 1 }
0x12d3   :  { %2890 = vsyncpa [#allocation5], 1 }
0x12d4   :  { %2891 = vsyncpa [#allocation8], 1 }
0x12d5   :  { %2892 = vsyncpa [#allocation11], 1 }
0x12d6   :  { %2893 = vsyncpa [#allocation14], 1 }
0x12d7   :  { %2894 = vsyncpa [#allocation17], 1 }
0x12d8   :  { %2895 = vsyncpa [#allocation20], 1 }

// kernel: decoder_forward.4
= control target key start
LH: loop header
LB: loop body
LE: loop exit
PB: predicated region body
PF: predicated region fallthrough
CT: control target
= control target key end

     0   :  { %s3586_s0 = inlined_call_operand.vmem [shape: f32[2,8,32], index: 0, kind: input, shape index: {}]   ;;  %s3587_s1 = inlined_call_operand.vmem [shape: f32[2,8,32], index: 1, kind: input, shape index: {}]   ;;  %s3588_s2 = inlined_call_operand.vmem [shape: f32[1,8,8], index: 2, kind: input, shape index: {}]   ;;  %s3589_s3 = inlined_call_operand.vmem [shape: f32[1,8,8], index: 3, kind: input, shape index: {}]   ;;  %s3590_s4 = inlined_call_operand.vmem [shape: f32[1,32], index: 4, kind: input, shape index: {}]   ;;  %s3591_s5 = inlined_call_operand.vmem [shape: f32[1,32], index: 5, kind: input, shape index: {}]   ;;  %s3592_s6 = inlined_call_operand.vmem [shape: bf16[32,96], index: 6, kind: input, shape index: {}]   ;;  %s3593_s7 = inlined_call_operand.vmem [shape: f32[1,96], index: 7, kind: input, shape index: {}]   ;;  %s3594_s8 = inlined_call_operand.vmem [shape: bf16[32,32], index: 8, kind: input, shape index: {}]   ;;  %s3595_s9 = inlined_call_operand.vmem [shape: f32[1,32], index: 9, kind: input, shape index: {}]   ;;  %s3596_s10 = inlined_call_operand.vmem [shape: f32[1,32], index: 10, kind: input, shape index: {}]   ;;  %s3597_s11 = inlined_call_operand.vmem [shape: f32[1,32], index: 11, kind: input, shape index: {}]   ;;  %s3598_s12 = inlined_call_operand.vmem [shape: bf16[32,32], index: 12, kind: input, shape index: {}]   ;;  %s3599_s13 = inlined_call_operand.vmem [shape: f32[1,32], index: 13, kind: input, shape index: {}]   ;;  %s3600_s14 = inlined_call_operand.vmem [shape: bf16[32,64], index: 14, kind: input, shape index: {}]   ;;  %s3601_s15 = inlined_call_operand.vmem [shape: f32[1,64], index: 15, kind: input, shape index: {}]   ;;  %s3602_s16 = inlined_call_operand.vmem [shape: bf16[32,32], index: 16, kind: input, shape index: {}]   ;;  %s3603_s17 = inlined_call_operand.vmem [shape: f32[1,32], index: 17, kind: input, shape index: {}]   ;;  %s3604_s18 = inlined_call_operand.vmem [shape: f32[1,32], index: 18, kind: input, shape index: {}]   ;;  %s3605_s19 = inlined_call_operand.vmem [shape: f32[1,32], index: 19, kind: input, shape index: {}]   ;;  %s3606_s20 = inlined_call_operand.vmem [shape: bf16[32,64], index: 20, kind: input, shape index: {}]   ;;  %s3607_s21 = inlined_call_operand.vmem [shape: f32[1,64], index: 21, kind: input, shape index: {}]   ;;  %s3608_s22 = inlined_call_operand.vmem [shape: bf16[64,32], index: 22, kind: input, shape index: {}]   ;;  %s3609_s23 = inlined_call_operand.vmem [shape: f32[1,32], index: 23, kind: input, shape index: {}]   ;;  %s3610_s24 = inlined_call_operand.vmem [shape: f32[2,8,32], index: 24, kind: output, shape index: {}]  }
   0x1   :  { %3627 = sst [smem:[#allocation2_spill]] %s3586_s0 }
   0x2   :  { %3628 = sst [smem:[#allocation3_spill]] %s3587_s1 }
   0x3   :  { %3629 = sst [smem:[#allocation4_spill]] %s3588_s2 }
   0x4   :  { %3630 = sst [smem:[#allocation5_spill]] %s3589_s3 }
   0x5   :  { %3631 = sst [smem:[#allocation6_spill]] %s3590_s4 }
   0x6   :  { %3632 = sst [smem:[#allocation7_spill]] %s3591_s5  ;;  %s3274_s5 = smov 0  }
   0x7   :  { %3633 = sst [smem:[#allocation8_spill]] %s3592_s6 }
   0x8   :  { %3634 = sst [smem:[#allocation9_spill]] %s3593_s7 }
   0x9   :  { %3635 = sst [smem:[#allocation10_spill]] %s3594_s8 }
   0xa LB: > { %s2776_s26 = sadd.s32 4294967295, %s3131_s5   ;;  %p2780_p0 = scmp.ge.s32.totalorder %s3131_s5, 1  ;;  %s3131_s5 = sphi %s3274_s5, %s34_s5  }
   0xb   : > { %p670_p1 = scmp.lt.s32.totalorder %s3131_s5, 3 }
   0xd   : > { %p671_p2 = pnand %p2780_p0, %p670_p1 }
   0xe   : > { %p738_p3 = scmp.lt.s32.totalorder (!%p671_p2), %s2776_s26, 1  ;;  %s3636_s2 = sld [smem:[#allocation2_spill]] (!%p671_p2) }
   0xf   : > { %674 = sbr.rel (%p671_p2) target bundleno = 4635 (0x121b), region = 116  ;;  %s3637_s30 = sld [smem:[#allocation8_spill]] (!%p671_p2) }
  0x10   : > { %s3638_s1 = sld [smem:[#allocation6_spill]] (!%p671_p2)  ;;  %s3135_s7 = smov (!%p671_p2), 64  }
  0x11   : > { %s3639_s6 = sld [smem:[#allocation7_spill]] (!%p671_p2)  ;;  %s3614_s3 = smov (!%p671_p2), 96  }
  0x12   : > { %s3640_s0 = sld [smem:[#allocation9_spill]] (!%p671_p2)  ;;  %s3619_s25 = smov (!%p671_p2), 88  }
  0x13   : > { %s3624_s28 = smov (!%p671_p2), 120   ;;  %s3145_s8 = smov (!%p671_p2), 56  }
  0x14   : > { %s3656_s26 = smov (!%p738_p3, %s2776_s26), 1  ;;  %vm755_vm0 = vcmask 261120   ;;  %v3133_v8 = vmov 0.0   ;;  %vm3134_vm1 = vmmov 0   ;;  %vm864_vm4 = vcmask 64512   ;;  %s3615_s4 = smov 24  }
  0x15   : > { %s3282_s27 = sshll.u32 %s3656_s26, 3  ;;  %v3065_v7 = vld [vmem:[%s3637_s30 + $0x8] sm:$0xff]   ;;  %2901 = vmatprep.subr.bf16.mxu0 %v3133_v8  ;;  %2905 = vmatprep.mubr.msk.bf16.mxu0 %vm3134_vm1, %v3133_v8  ;;  %v3066_v9 = vld [vmem:[%s3637_s30] sm:$0xff]   ;;  %s3618_s26 = smov 80   ;;  %vm1535_vm5 = vcmask 130048   ;;  %vm1537_vm6 = vcmask 195584  }
  0x16   : > { %s741_s29 = scalar_lea.vmem %s3636_s2, %s3282_s27  ;;  %2902 = vmatpush3.bf16.msra.mxu0 %v3065_v7  ;;  %2914 = vmatprep.subr.mxu1 %v3133_v8  ;;  %v2784_v19 = vld [vmem:[%s3638_s1] ss:$0 sm:$0xff]  ;;  %s3641_s1 = sld [smem:[#allocation4_spill]]  ;;  %vm2665_vm11 = vcmask 523264  }
  0x17   : > { %v3288_v0 = vld [vmem:[%s741_s29] sm:$0xff]  ;;  %2903 = vmatprep.subr.bf16.mxu0 %v3133_v8  ;;  %2916 = vmatprep.mubr.msk.f32.mxu1 %vm3134_vm1, %v3133_v8  ;;  %s3613_s2 = smov 72   ;;  %s3620_s29 = smov 104  }
  0x18   : > { %v756_v1 = vsel %vm755_vm0, %v3288_v0, 0.0  ;;  %v2785_v21 = vld [vmem:[%s3639_s6] ss:$0 sm:$0xff]  ;;  %s3622_s6 = smov 112  }
  0x19   : > { %757 = vadd.xlane.f32.xlu0 %v756_v1  ;;  %v2786_v25 = vld [vmem:[%s3640_s0] ss:$0 sm:$0xff]  ;;  %s3143_s0 = smov 48  }
  0x1a   : > { %2904 = vmatpush3.bf16.msra.mxu0 %v3066_v9 }
  0x1b   : > { %2909 = vmatprep.subr.mxu0 %v3133_v8 }
  0x1c   : > { %v859_v34 = vld [vmem:[%s3641_s1] sm:$0xff] }
  0xa2   : > { %v758_v2 = vpop.xlane.xlu0 %757 }
  0xa3   : > { %v760_v3 = vmul.f32 0.03125, %v758_v2 }
  0xa5   : > { %v761_v4 = vsub.f32 %v3288_v0, %v760_v3 }
  0xa7   : > { %v762_v5 = vmul.f32 %v761_v4, %v761_v4 }
  0xa9   : > { %v763_v6 = vsel %vm755_vm0, %v762_v5, 0.0 }
  0xaa   : > { %764 = vadd.xlane.f32.xlu0 %v763_v6 }
 0x133   : > { %v765_v10 = vpop.xlane.xlu0 %764 }
 0x134   : > { %v766_v11 = vmul.f32 0.032258064, %v765_v10 }
 0x136   : > { %3081 = vrsqrt.f32 %v766_v11  ;;  %vm769_vm2 = vcmp.eq.f32.partialorder %v766_v11, inf  ;;  %v772_v14 = vand.u32 2147483648, %v766_v11  ;;  %vm771_vm3 = vcmp.eq.f32.partialorder %v766_v11, 0.0 }
 0x143   : > { %v3082_v12 = vpop.eup %3081 }
 0x144   : > { %v768_v13 = vmul.f32 %v3082_v12, %v766_v11 }
 0x146   : > { %v770_v15 = vsel %vm769_vm2, %v766_v11, %v768_v13 }
 0x147   : > { %v773_v16 = vsel %vm771_vm3, %v772_v14, %v770_v15 }
 0x148   : > { %v774_v17 = vadd.f32 1e-06, %v773_v16 }
 0x14a   : > { %3083 = vrcp.f32 %v774_v17 }
 0x157   : > { %v3084_v18 = vpop.eup %3083 }
 0x158   : > { %v777_v20 = vmul.f32 %v3084_v18, %v761_v4 }
 0x15a   : > { %v784_v22 = vmul.f32 %v2784_v19, %v777_v20 }
 0x15c   : > { %v791_v23 = vadd.f32 %v2785_v21, %v784_v22 }
 0x15e   : > { %v797_v24 = vpack.c.bf16 %v791_v23, %v791_v23 }
 0x160   : > { %2906 = vmatmul.mubr.msk.bf16.vlgmr.msra.gmra.mxu0 %vm755_vm0, %v797_v24 }
 0x161   : > { %2911 = vmatprep.mubr.msk.f32.mxu0 %vm3134_vm1, %v3133_v8 }
 0x220   : > { %v853_v26 = vpop.f32.mrf.mxu0 }
 0x221   : > { %v3320_v27 = vadd.f32 %v2786_v25, %v853_v26 }
 0x222   : > { %v2907_v28 = vpop.f32.mrf.mxu0 }
 0x223   : > { %951 = vrot.lane.b32.xlu0 %v3320_v27, %s3135_s7  ;;  %862 = vrot.lane.b32.xlu1 %v3320_v27, %s3614_s3  ;;  %v860_v33 = vmul.f32 0.35355338, %v3320_v27  ;;  %s3144_s7 = smov 40   ;;  %s3616_s3 = smov 16  }
 0x224   : > { %v856_v29 = vpop.f32.mrf.mxu0 }
 0x226   : > { %v2908_v30 = vpop.f32.mrf.mxu0 }
 0x227   : > { %1029 = vrot.lane.b32.xlu0 %v3320_v27, %s3619_s25  ;;  %s3647_s25 = sld [smem:[#allocation5_spill]] }
 0x295   : > { %v952_v31 = vpop.permute.xlu0 %951  ;;  %v863_v32 = vpop.permute.xlu1 %862 }
 0x296   : > { %2910 = vmatpush3.xpose.msk.msra.mxu0 %vm864_vm4, %v863_v32  ;;  %2915 = vmatpush3.msra.mxu1 %v952_v31 }
 0x297   : > { %2919 = vmatprep.subr.mxu1 %v3133_v8  ;;  %2924 = vmatprep.subr.mxu0 %v3133_v8 }
 0x299   : > { %2912 = vmatmul.mubr.msk.f32.vlgmr.msra.gmra.mxu0 %vm864_vm4, %v860_v33  ;;  %v1030_v44 = vpop.permute.xlu0 %1029 }
 0x29a   : > { %2926 = vmatprep.mubr.msk.f32.mxu0 %vm3134_vm1, %v3133_v8 }
 0x359   : > { %v936_v35 = vpop.f32.mrf.mxu0 }
 0x35a   : > { %v937_v36 = vadd.f32 %v936_v35, %v859_v34 }
 0x35b   : > { %v2913_v37 = vpop.f32.mrf.mxu0 }
 0x35c   : > { %v940_v38 = vsel %vm864_vm4, %v937_v36, -inf }
 0x35d   : > { %941 = vmax.xlane.f32.xlu1 %v940_v38 }
 0x36e   : > { %1194 = vrot.lane.b32.xlu1 %v3320_v27, %s3618_s26  ;;  %s3648_s26 = smov 88  }
 0x3e6   : > { %v942_v39 = vpop.xlane.xlu1 %941 }
 0x3e7   : > { %v943_v40 = vsub.f32 %v937_v36, %v942_v39 }
 0x3e9   : > { %v944_v41 = vmul.f32 1.442695, %v943_v40 }
 0x3ea   : > { %v1195_v50 = vpop.permute.xlu1 %1194 }
 0x3eb   : > { %3085 = vpow2.f32 %v944_v41 }
 0x3f8   : > { %v3086_v42 = vpop.eup %3085 }
 0x3f9   : > { %v946_v43 = vsel %vm864_vm4, %v3086_v42, 0.0 }
 0x3fa   : > { %947 = vadd.xlane.f32.xlu0 %v946_v43 }
 0x410   : > { %1027 = vrot.lane.b32.xlu0 %v860_v33, %s3624_s28  ;;  %s3649_s28 = smov 80  }
 0x414   : > { %1192 = vrot.lane.b32.xlu0 %v860_v33, %s3622_s6  ;;  %s3650_s6 = smov 96  }
 0x418   : > { %1359 = vrot.lane.b32.xlu0 %v3320_v27, %s3613_s2  ;;  %s3617_s2 = smov 8  }
 0x41c   : > { %1357 = vrot.lane.b32.xlu0 %v860_v33, %s3620_s29  ;;  %s3644_s29 = smov 120  }
 0x483   : > { %v948_v45 = vpop.xlane.xlu0 %947 }
 0x484   : > { %3087 = vrcp.f32 %v948_v45 }
 0x487   : > { %v1028_v46 = vpop.permute.xlu0 %1027 }
 0x48b   : > { %v1193_v49 = vpop.permute.xlu0 %1192 }
 0x48f   : > { %v1360_v51 = vpop.permute.xlu0 %1359 }
 0x491   : > { %v3088_v47 = vpop.eup %3087 }
 0x492   : > { %v950_v48 = vmul.f32 %v3088_v47, %v3086_v42  ;;  %v2802_v47 = vld [vmem:[%s3595_s9] ss:$0 sm:$0xff] }
 0x493   : > { %v1358_v52 = vpop.permute.xlu0 %1357 }
 0x494   : > { %2917 = vmatmul.mubr.msk.f32.vlgmr.msra.gmra.mxu1 %vm864_vm4, %v950_v48 }
 0x495   : > { %2920 = vmatpush3.xpose.msk.msra.mxu1 %vm864_vm4, %v1030_v44  ;;  %2921 = vmatprep.mubr.msk.f32.mxu1 %vm3134_vm1, %v3133_v8 }
 0x496   : > { %2929 = vmatprep.subr.mxu1 %v3133_v8 }
 0x498   : > { %2922 = vmatmul.mubr.msk.f32.vlgmr.msra.gmra.mxu1 %vm864_vm4, %v1028_v46 }
 0x499   : > { %2930 = vmatpush3.xpose.msk.msra.mxu1 %vm864_vm4, %v1195_v50  ;;  %2931 = vmatprep.mubr.msk.f32.mxu1 %vm3134_vm1, %v3133_v8 }
 0x49a   : > { %2939 = vmatprep.subr.mxu1 %v3133_v8 }
 0x49c   : > { %2932 = vmatmul.mubr.msk.f32.vlgmr.msra.gmra.mxu1 %vm864_vm4, %v1193_v49 }
 0x49d   : > { %2940 = vmatpush3.xpose.msk.msra.mxu1 %vm864_vm4, %v1360_v51  ;;  %2941 = vmatprep.mubr.msk.f32.mxu1 %vm3134_vm1, %v3133_v8 }
 0x49e   : > { %2949 = vmatprep.subr.bf16.mxu1 %v3133_v8 }
 0x4a0   : > { %2942 = vmatmul.mubr.msk.f32.vlgmr.msra.gmra.mxu1 %vm864_vm4, %v1358_v52 }
 0x4a1   : > { %2953 = vmatprep.mubr.msk.bf16.mxu1 %vm3134_vm1, %v3133_v8 }
 0x554   : > { %v3364_v53 = vpop.f32.mrf.mxu1 }
 0x556   : > { %v2918_v54 = vpop.f32.mrf.mxu1 }
 0x558   : > { %v1101_v55 = vpop.f32.mrf.mxu1 }
 0x559   : > { %v1102_v56 = vadd.f32 %v1101_v55, %v859_v34 }
 0x55a   : > { %v2923_v57 = vpop.f32.mrf.mxu1 }
 0x55b   : > { %v1105_v58 = vsel %vm864_vm4, %v1102_v56, -inf }
 0x55c   : > { %1106 = vmax.xlane.f32.xlu0 %v1105_v58  ;;  %v1266_v59 = vpop.f32.mrf.mxu1 }
 0x55d   : > { %v1267_v60 = vadd.f32 %v1266_v59, %v859_v34 }
 0x55e   : > { %v2933_v61 = vpop.f32.mrf.mxu1 }
 0x55f   : > { %v1270_v62 = vsel %vm864_vm4, %v1267_v60, -inf }
 0x560   : > { %1271 = vmax.xlane.f32.xlu1 %v1270_v62  ;;  %v1431_v63 = vpop.f32.mrf.mxu1  ;;  %v3070_v62 = vld [vmem:[%s3600_s14] sm:$0xff]  }
 0x561   : > { %v1432_v1 = vadd.f32 %v1431_v63, %v859_v34  ;;  %v3072_v63 = vld [vmem:[%s3598_s12] sm:$0xff]  }
 0x562   : > { %v2943_v2 = vpop.f32.mrf.mxu1 }
 0x563   : > { %v1435_v3 = vsel %vm864_vm4, %v1432_v1, -inf }
 0x564   : > { %1436 = vmax.xlane.f32.xlu0 %v1435_v3 }
 0x571   : > { %1281 = vrot.lane.b32.xlu1 %v3320_v27, %s3143_s0  ;;  %s3642_s0 = sld [smem:[#allocation10_spill]] }
 0x577   : > { %v3067_v32 = vld [vmem:[%s3642_s0 + $0x8] sm:$0xff]   ;;  %v3068_v33 = vld [vmem:[%s3642_s0] sm:$0xff]   ;;  %s3645_s0 = smov 112  }
 0x578   : > { %2950 = vmatpush3.bf16.msra.mxu1 %v3067_v32 }
 0x579   : > { %2951 = vmatprep.subr.bf16.mxu1 %v3133_v8 }
 0x57c   : > { %2952 = vmatpush3.bf16.msra.mxu1 %v3068_v33 }
 0x57d   : > { %2965 = vmatprep.subr.bf16.mxu1 %v3133_v8 }
 0x5e5   : > { %v1107_v4 = vpop.xlane.xlu0 %1106 }
 0x5e6   : > { %v1108_v5 = vsub.f32 %v1102_v56, %v1107_v4 }
 0x5e8   : > { %v1109_v6 = vmul.f32 1.442695, %v1108_v5 }
 0x5e9   : > { %v1272_v7 = vpop.xlane.xlu1 %1271 }
 0x5ea   : > { %3089 = vpow2.f32 %v1109_v6  ;;  %v1273_v9 = vsub.f32 %v1267_v60, %v1272_v7  ;;  %v3071_v60 = vld [vmem:[%s3598_s12 + $0x8] sm:$0xff]  }
 0x5ec   : > { %v1274_v10 = vmul.f32 1.442695, %v1273_v9 }
 0x5ed   : > { %v1437_v11 = vpop.xlane.xlu0 %1436  ;;  %v1282_v21 = vpop.permute.xlu1 %1281 }
 0x5ee   : > { %3091 = vpow2.f32 %v1274_v10  ;;  %v1438_v12 = vsub.f32 %v1432_v1, %v1437_v11 }
 0x5f0   : > { %v1439_v13 = vmul.f32 1.442695, %v1438_v12  ;;  %v2806_v12 = vld [vmem:[%s3596_s10] ss:$0 sm:$0xff] }
 0x5f2   : > { %3093 = vpow2.f32 %v1439_v13 }
 0x5f7   : > { %v3090_v14 = vpop.eup %3089 }
 0x5f8   : > { %v1111_v15 = vsel %vm864_vm4, %v3090_v14, 0.0 }
 0x5f9   : > { %1112 = vadd.xlane.f32.xlu0 %v1111_v15 }
 0x5fb   : > { %v3092_v16 = vpop.eup %3091 }
 0x5fc   : > { %v1276_v17 = vsel %vm864_vm4, %v3092_v16, 0.0 }
 0x5fd   : > { %1277 = vadd.xlane.f32.xlu0 %v1276_v17 }
 0x5ff   : > { %v3094_v18 = vpop.eup %3093 }
 0x600   : > { %v1441_v19 = vsel %vm864_vm4, %v3094_v18, 0.0 }
 0x601   : > { %1442 = vadd.xlane.f32.xlu1 %v1441_v19 }
 0x612   : > { %1446 = vrot.lane.b32.xlu1 %v3320_v27, %s3144_s7  ;;  %s3643_s7 = sld [smem:[#allocation3_spill]] }
 0x613   : > { %1116 = vrot.lane.b32.xlu0 %v3320_v27, %s3145_s8  ;;  %s3653_s8 = smov 16  }
 0x682   : > { %v1113_v20 = vpop.xlane.xlu0 %1112 }
 0x683   : > { %3095 = vrcp.f32 %v1113_v20 }
 0x686   : > { %v1278_v22 = vpop.xlane.xlu0 %1277 }
 0x687   : > { %3097 = vrcp.f32 %v1278_v22 }
 0x68a   : > { %v1443_v23 = vpop.xlane.xlu1 %1442  ;;  %v1117_v24 = vpop.permute.xlu0 %1116 }
 0x68b   : > { %3099 = vrcp.f32 %v1443_v23  ;;  %2925 = vmatpush3.msra.mxu0 %v1117_v24 }
 0x68c   : > { %2934 = vmatprep.subr.mxu0 %v3133_v8 }
 0x68e   : > { %v1447_v29 = vpop.permute.xlu1 %1446 }
 0x690   : > { %v3096_v25 = vpop.eup %3095 }
 0x691   : > { %v1115_v26 = vmul.f32 %v3096_v25, %v3090_v14  ;;  %v2807_v14 = vld [vmem:[%s3597_s11] ss:$0 sm:$0xff] }
 0x692   : > { %v2808_v25 = vld [vmem:[%s3599_s13] ss:$0 sm:$0xff] }
 0x693   : > { %2927 = vmatmul.mubr.msk.f32.vlgmr.msra.gmra.mxu0 %vm864_vm4, %v1115_v26 }
 0x694   : > { %v3098_v28 = vpop.eup %3097  ;;  %2935 = vmatpush3.msra.mxu0 %v1282_v21  ;;  %2936 = vmatprep.mubr.msk.f32.mxu0 %vm3134_vm1, %v3133_v8 }
 0x695   : > { %2944 = vmatprep.subr.mxu0 %v3133_v8  ;;  %v1280_v27 = vmul.f32 %v3098_v28, %v3092_v16 }
 0x697   : > { %2937 = vmatmul.mubr.msk.f32.vlgmr.msra.gmra.mxu0 %vm864_vm4, %v1280_v27 }
 0x698   : > { %v3100_v30 = vpop.eup %3099  ;;  %2945 = vmatpush3.msra.mxu0 %v1447_v29  ;;  %2946 = vmatprep.mubr.msk.f32.mxu0 %vm3134_vm1, %v3133_v8 }
 0x699   : > { %v1445_v31 = vmul.f32 %v3100_v30, %v3094_v18  ;;  %2957 = vmatprep.subr.bf16.mxu0 %v3133_v8  ;;  %v2812_v18 = vld [vmem:[%s3601_s15] ss:$0 sm:$0xff] }
 0x69b   : > { %2947 = vmatmul.mubr.msk.f32.vlgmr.msra.gmra.mxu0 %vm864_vm4, %v1445_v31 }
 0x69c   : > { %2961 = vmatprep.mubr.msk.bf16.mxu0 %vm3134_vm1, %v3133_v8  ;;  %2958 = vmatpush3.bf16.msra.mxu0 %v3071_v60 }
 0x69d   : > { %2959 = vmatprep.subr.bf16.mxu0 %v3133_v8 }
 0x6a0   : > { %2960 = vmatpush3.bf16.msra.mxu0 %v3072_v63 }
 0x6a1   : > { %2973 = vmatprep.subr.mxu0 %v3133_v8 }
 0x753   : > { %v1188_v34 = vpop.f32.mrf.mxu0 }
 0x754   : > { %1523 = vrot.lane.b32.xlu1 %v1188_v34, %s3617_s2  ;;  %s3651_s2 = smov 72  }
 0x755   : > { %v2928_v35 = vpop.f32.mrf.mxu0 }
 0x757   : > { %v1353_v36 = vpop.f32.mrf.mxu0 }
 0x758   : > { %1527 = vrot.lane.b32.xlu0 %v1353_v36, %s3616_s3  ;;  %s3654_s3 = smov 24  }
 0x759   : > { %v2938_v37 = vpop.f32.mrf.mxu0 }
 0x75a   : > { %v1778_v37 = vld [vmem:[%s3647_s25] sm:$0xff]  ;;  %s749_s25 = scalar_lea.vmem %s3610_s24, %s3282_s27 }
 0x75b   : > { %v1518_v38 = vpop.f32.mrf.mxu0 }
 0x75c   : > { %1531 = vrot.lane.b32.xlu1 %v1518_v38, %s3615_s4  ;;  %s745_s4 = scalar_lea.vmem %s3643_s7, %s3282_s27 }
 0x75d   : > { %v2948_v39 = vpop.f32.mrf.mxu0  ;;  %v752_v61 = vld [vmem:[%s745_s4] sm:$0xff]  ;;  %s3646_s4 = smov 104  }
 0x75e   : > { %v1716_v1 = vpack.c.bf16 %v752_v61, %v752_v61 }
 0x7c6   : > { %v1524_v40 = vpop.permute.xlu1 %1523 }
 0x7c7   : > { %v1534_v42 = vsel %vm864_vm4, %v3364_v53, %v1524_v40 }
 0x7ca   : > { %v1528_v41 = vpop.permute.xlu0 %1527 }
 0x7cb   : > { %v1536_v43 = vsel %vm1535_vm5, %v1534_v42, %v1528_v41 }
 0x7ce   : > { %v1532_v44 = vpop.permute.xlu1 %1531 }
 0x7cf   : > { %v1538_v45 = vsel %vm1537_vm6, %v1536_v43, %v1532_v44 }
 0x7d0   : > { %v1544_v46 = vpack.c.bf16 %v1538_v45, %v1538_v45 }
 0x7d2   : > { %2954 = vmatmul.mubr.msk.bf16.vlgmr.msra.gmra.mxu1 %vm755_vm0, %v1544_v46 }
 0x7d3   : > { %2969 = vmatprep.mubr.msk.bf16.mxu1 %vm3134_vm1, %v3133_v8 }
 0x892   : > { %v1600_v48 = vpop.f32.mrf.mxu1 }
 0x893   : > { %v1601_v49 = vadd.f32 %v2802_v47, %v1600_v48 }
 0x894   : > { %v2955_v50 = vpop.f32.mrf.mxu1 }
 0x895   : > { %v3409_v51 = vadd.f32 %v1601_v49, %v3288_v0  ;;  %v3069_v0 = vld [vmem:[%s3600_s14 + $0x8] sm:$0xff]  }
 0x896   : > { %v1603_v52 = vpop.f32.mrf.mxu1  ;;  %2966 = vmatpush3.bf16.msra.mxu1 %v3069_v0 }
 0x897   : > { %v1609_v53 = vsel %vm755_vm0, %v3409_v51, 0.0  ;;  %2967 = vmatprep.subr.bf16.mxu1 %v3133_v8 }
 0x898   : > { %1610 = vadd.xlane.f32.xlu0 %v1609_v53  ;;  %v2956_v54 = vpop.f32.mrf.mxu1 }
 0x89a   : > { %2968 = vmatpush3.bf16.msra.mxu1 %v3070_v62 }
 0x89b   : > { %2983 = vmatprep.subr.mxu1 %v3133_v8 }
 0x89d   : > { %2970 = vmatmul.mubr.msk.bf16.vlgmr.msra.gmra.mxu1 %vm755_vm0, %v1716_v1 }
 0x89e   : > { %2985 = vmatprep.mubr.msk.f32.mxu1 %vm3134_vm1, %v3133_v8 }
 0x921   : > { %v1611_v55 = vpop.xlane.xlu0 %1610 }
 0x922   : > { %v1612_v56 = vmul.f32 0.03125, %v1611_v55 }
 0x924   : > { %v1613_v57 = vsub.f32 %v3409_v51, %v1612_v56 }
 0x926   : > { %v1614_v58 = vmul.f32 %v1613_v57, %v1613_v57 }
 0x928   : > { %v1615_v59 = vsel %vm755_vm0, %v1614_v58, 0.0 }
 0x929   : > { %1616 = vadd.xlane.f32.xlu1 %v1615_v59 }
 0x95d   : > { %v1772_v19 = vpop.f32.mrf.mxu1 }
 0x95e   : > { %v3450_v20 = vadd.f32 %v2812_v18, %v1772_v19 }
 0x95f   : > { %v2971_v21 = vpop.f32.mrf.mxu1 }
 0x960   : > { %1945 = vrot.lane.b32.xlu0 %v3450_v20, %s3644_s29 }
 0x961   : > { %v1775_v22 = vpop.f32.mrf.mxu1 }
 0x963   : > { %v2972_v23 = vpop.f32.mrf.mxu1 }
 0x964   : > { %2110 = vrot.lane.b32.xlu0 %v3450_v20, %s3645_s0 }
 0x968   : > { %2275 = vrot.lane.b32.xlu0 %v3450_v20, %s3646_s4 }
 0x9b2   : > { %v1617_v2 = vpop.xlane.xlu1 %1616 }
 0x9b3   : > { %v1618_v3 = vmul.f32 0.032258064, %v1617_v2 }
 0x9b5   : > { %3101 = vrsqrt.f32 %v1618_v3  ;;  %vm1621_vm7 = vcmp.eq.f32.partialorder %v1618_v3, inf  ;;  %v1624_v6 = vand.u32 2147483648, %v1618_v3  ;;  %vm1623_vm8 = vcmp.eq.f32.partialorder %v1618_v3, 0.0 }
 0x9c2   : > { %v3102_v4 = vpop.eup %3101 }
 0x9c3   : > { %v1620_v5 = vmul.f32 %v3102_v4, %v1618_v3 }
 0x9c5   : > { %v1622_v7 = vsel %vm1621_vm7, %v1618_v3, %v1620_v5 }
 0x9c6   : > { %v1625_v9 = vsel %vm1623_vm8, %v1624_v6, %v1622_v7 }
 0x9c7   : > { %v1626_v10 = vadd.f32 1e-06, %v1625_v9 }
 0x9c9   : > { %3103 = vrcp.f32 %v1626_v10 }
 0x9d2   : > { %v1946_v24 = vpop.permute.xlu0 %1945 }
 0x9d3   : > { %2984 = vmatpush3.xpose.msk.msra.mxu1 %vm864_vm4, %v1946_v24 }
 0x9d4   : > { %2993 = vmatprep.subr.mxu1 %v3133_v8 }
 0x9d6   : > { %v3104_v11 = vpop.eup %3103  ;;  %v2111_v32 = vpop.permute.xlu0 %2110 }
 0x9d7   : > { %v1629_v13 = vmul.f32 %v3104_v11, %v1613_v57 }
 0x9d9   : > { %v1636_v15 = vmul.f32 %v2806_v12, %v1629_v13 }
 0x9da   : > { %v2276_v35 = vpop.permute.xlu0 %2275 }
 0x9db   : > { %v1643_v16 = vadd.f32 %v2807_v14, %v1636_v15 }
 0x9dd   : > { %v1649_v17 = vpack.c.bf16 %v1643_v16, %v1643_v16 }
 0x9df   : > { %2962 = vmatmul.mubr.msk.bf16.vlgmr.msra.gmra.mxu0 %vm755_vm0, %v1649_v17 }
 0x9e0   : > { %2975 = vmatprep.mubr.msk.f32.mxu0 %vm3134_vm1, %v3133_v8  ;;  %2974 = vmatpush3.xpose.msk.msra.mxu0 %vm864_vm4, %v3450_v20 }
 0x9e1   : > { %2978 = vmatprep.subr.mxu0 %v3133_v8 }
 0xa9f   : > { %v1705_v26 = vpop.f32.mrf.mxu0 }
 0xaa0   : > { %v1706_v28 = vadd.f32 %v2808_v25, %v1705_v26 }
 0xaa1   : > { %v2963_v27 = vpop.f32.mrf.mxu0 }
 0xaa2   : > { %v1779_v29 = vmul.f32 0.35355338, %v1706_v28  ;;  %v3073_v27 = vld [vmem:[%s3602_s16 + $0x8] sm:$0xff]  }
 0xaa3   : > { %v1708_v30 = vpop.f32.mrf.mxu0 }
 0xaa4   : > { %1943 = vrot.lane.b32.xlu1 %v1779_v29, %s3644_s29  ;;  %2976 = vmatmul.mubr.msk.f32.vlgmr.msra.gmra.mxu0 %vm864_vm4, %v1779_v29 }
 0xaa5   : > { %v2964_v31 = vpop.f32.mrf.mxu0  ;;  %2980 = vmatprep.mubr.msk.f32.mxu0 %vm3134_vm1, %v3133_v8 }
 0xaa8   : > { %2108 = vrot.lane.b32.xlu1 %v1779_v29, %s3645_s0 }
 0xaac   : > { %2273 = vrot.lane.b32.xlu1 %v1779_v29, %s3646_s4  ;;  %s3652_s4 = smov 8  }
 0xb16   : > { %v1944_v33 = vpop.permute.xlu1 %1943 }
 0xb17   : > { %2986 = vmatmul.mubr.msk.f32.vlgmr.msra.gmra.mxu1 %vm864_vm4, %v1944_v33 }
 0xb18   : > { %2994 = vmatpush3.xpose.msk.msra.mxu1 %vm864_vm4, %v2111_v32  ;;  %2995 = vmatprep.mubr.msk.f32.mxu1 %vm3134_vm1, %v3133_v8 }
 0xb19   : > { %3003 = vmatprep.subr.mxu1 %v3133_v8 }
 0xb1a   : > { %v2109_v34 = vpop.permute.xlu1 %2108 }
 0xb1b   : > { %2996 = vmatmul.mubr.msk.f32.vlgmr.msra.gmra.mxu1 %vm864_vm4, %v2109_v34 }
 0xb1c   : > { %3004 = vmatpush3.xpose.msk.msra.mxu1 %vm864_vm4, %v2276_v35  ;;  %3005 = vmatprep.mubr.msk.f32.mxu1 %vm3134_vm1, %v3133_v8  ;;  %v3074_v35 = vld [vmem:[%s3602_s16] sm:$0xff]  }
 0xb1d   : > { %3013 = vmatprep.subr.bf16.mxu1 %v3133_v8 }
 0xb1e   : > { %v2274_v36 = vpop.permute.xlu1 %2273 }
 0xb1f   : > { %3006 = vmatmul.mubr.msk.f32.vlgmr.msra.gmra.mxu1 %vm864_vm4, %v2274_v36 }
 0xb20   : > { %3017 = vmatprep.mubr.msk.bf16.mxu1 %vm3134_vm1, %v3133_v8  ;;  %3014 = vmatpush3.bf16.msra.mxu1 %v3073_v27 }
 0xb21   : > { %3015 = vmatprep.subr.bf16.mxu1 %v3133_v8 }
 0xb24   : > { %3016 = vmatpush3.bf16.msra.mxu1 %v3074_v35 }
 0xb25   : > { %3029 = vmatprep.subr.bf16.mxu1 %v3133_v8 }
 0xb64   : > { %v1852_v38 = vpop.f32.mrf.mxu0 }
 0xb65   : > { %v1853_v39 = vadd.f32 %v1852_v38, %v1778_v37 }
 0xb66   : > { %v2977_v40 = vpop.f32.mrf.mxu0 }
 0xb67   : > { %v1856_v41 = vsel %vm864_vm4, %v1853_v39, -inf }
 0xb68   : > { %1857 = vmax.xlane.f32.xlu0 %v1856_v41 }
 0xbd7   : > { %v2017_v42 = vpop.f32.mrf.mxu1 }
 0xbd8   : > { %v2018_v43 = vadd.f32 %v2017_v42, %v1778_v37 }
 0xbd9   : > { %v2987_v44 = vpop.f32.mrf.mxu1 }
 0xbda   : > { %v2021_v45 = vsel %vm864_vm4, %v2018_v43, -inf }
 0xbdb   : > { %2022 = vmax.xlane.f32.xlu1 %v2021_v45  ;;  %v2182_v46 = vpop.f32.mrf.mxu1  ;;  %v2828_v45 = vld [vmem:[%s3603_s17] ss:$0 sm:$0xff] }
 0xbdc   : > { %v2183_v47 = vadd.f32 %v2182_v46, %v1778_v37 }
 0xbdd   : > { %v2997_v48 = vpop.f32.mrf.mxu1 }
 0xbde   : > { %v2186_v49 = vsel %vm864_vm4, %v2183_v47, -inf }
 0xbdf   : > { %v2347_v50 = vpop.f32.mrf.mxu1  ;;  %2187 = vmax.xlane.f32.xlu0 %v2186_v49 }
 0xbe0   : > { %v2348_v52 = vadd.f32 %v2347_v50, %v1778_v37 }
 0xbe1   : > { %v3007_v53 = vpop.f32.mrf.mxu1 }
 0xbe2   : > { %v2351_v54 = vsel %vm864_vm4, %v2348_v52, -inf }
 0xbe3   : > { %2352 = vmax.xlane.f32.xlu0 %v2351_v54 }
 0xbf1   : > { %v1858_v55 = vpop.xlane.xlu0 %1857 }
 0xbf2   : > { %v1859_v56 = vsub.f32 %v1853_v39, %v1858_v55 }
 0xbf4   : > { %v1860_v57 = vmul.f32 1.442695, %v1859_v56 }
 0xbf6   : > { %3105 = vpow2.f32 %v1860_v57 }
 0xc03   : > { %v3106_v58 = vpop.eup %3105 }
 0xc04   : > { %v1862_v59 = vsel %vm864_vm4, %v3106_v58, 0.0 }
 0xc05   : > { %1863 = vadd.xlane.f32.xlu0 %v1862_v59  ;;  %v3075_v59 = vld [vmem:[%s3606_s20 + $0x8] sm:$0xff]  }
 0xc64   : > { %v2023_v0 = vpop.xlane.xlu1 %2022 }
 0xc65   : > { %v2024_v60 = vsub.f32 %v2018_v43, %v2023_v0  ;;  %v3077_v0 = vld [vmem:[%s3608_s22 + $0x18] sm:$0xff]  }
 0xc67   : > { %v2025_v61 = vmul.f32 1.442695, %v2024_v60  ;;  %v3078_v60 = vld [vmem:[%s3608_s22 + $0x10] sm:$0xff]  }
 0xc68   : > { %v2188_v62 = vpop.xlane.xlu0 %2187 }
 0xc69   : > { %3107 = vpow2.f32 %v2025_v61  ;;  %v2189_v63 = vsub.f32 %v2183_v47, %v2188_v62  ;;  %v3079_v61 = vld [vmem:[%s3608_s22 + $0x8] sm:$0xff]  }
 0xc6b   : > { %v2190_v1 = vmul.f32 1.442695, %v2189_v63 }
 0xc6c   : > { %v2353_v6 = vpop.xlane.xlu0 %2352 }
 0xc6d   : > { %3109 = vpow2.f32 %v2190_v1  ;;  %v2354_v7 = vsub.f32 %v2348_v52, %v2353_v6 }
 0xc6f   : > { %v2355_v9 = vmul.f32 1.442695, %v2354_v7 }
 0xc71   : > { %3111 = vpow2.f32 %v2355_v9  ;;  %v2832_v9 = vld [vmem:[%s3604_s18] ss:$0 sm:$0xff] }
 0xc76   : > { %v3108_v2 = vpop.eup %3107 }
 0xc77   : > { %v2027_v3 = vsel %vm864_vm4, %v3108_v2, 0.0 }
 0xc78   : > { %2028 = vadd.xlane.f32.xlu1 %v2027_v3 }
 0xc7a   : > { %v3110_v4 = vpop.eup %3109 }
 0xc7b   : > { %v2192_v5 = vsel %vm864_vm4, %v3110_v4, 0.0 }
 0xc7c   : > { %2193 = vadd.xlane.f32.xlu0 %v2192_v5 }
 0xc7e   : > { %v3112_v10 = vpop.eup %3111 }
 0xc7f   : > { %v2357_v11 = vsel %vm864_vm4, %v3112_v10, 0.0 }
 0xc89   : > { %2032 = vrot.lane.b32.xlu1 %v3450_v20, %s3648_s26 }
 0xc8d   : > { %2197 = vrot.lane.b32.xlu1 %v3450_v20, %s3649_s28 }
 0xc8e   : > { %v1864_v12 = vpop.xlane.xlu0 %1863 }
 0xc8f   : > { %3113 = vrcp.f32 %v1864_v12 }
 0xc92   : > { %1867 = vrot.lane.b32.xlu0 %v3450_v20, %s3650_s6 }
 0xc9c   : > { %v3114_v15 = vpop.eup %3113 }
 0xc9d   : > { %v1866_v17 = vmul.f32 %v3114_v15, %v3106_v58  ;;  %v2834_v15 = vld [vmem:[%s3607_s21] ss:$0 sm:$0xff] }
 0xcb1   : > { %2358 = vadd.xlane.f32.xlu1 %v2357_v11 }
 0xcc2   : > { %2362 = vrot.lane.b32.xlu1 %v3450_v20, %s3651_s2 }
 0xd01   : > { %v2029_v13 = vpop.xlane.xlu1 %2028 }
 0xd02   : > { %3115 = vrcp.f32 %v2029_v13 }
 0xd05   : > { %v2194_v14 = vpop.xlane.xlu0 %2193  ;;  %v2033_v18 = vpop.permute.xlu1 %2032 }
 0xd06   : > { %3117 = vrcp.f32 %v2194_v14  ;;  %v3080_v14 = vld [vmem:[%s3608_s22] sm:$0xff]  }
 0xd09   : > { %v1868_v16 = vpop.permute.xlu0 %1867  ;;  %v2198_v21 = vpop.permute.xlu1 %2197 }
 0xd0a   : > { %2979 = vmatpush3.msra.mxu0 %v1868_v16 }
 0xd0b   : > { %2981 = vmatmul.mubr.msk.f32.vlgmr.msra.gmra.mxu0 %vm864_vm4, %v1866_v17  ;;  %2988 = vmatprep.subr.mxu0 %v3133_v8 }
 0xd0c   : > { %2989 = vmatpush3.msra.mxu0 %v2033_v18  ;;  %2990 = vmatprep.mubr.msk.f32.mxu0 %vm3134_vm1, %v3133_v8 }
 0xd0d   : > { %2998 = vmatprep.subr.mxu0 %v3133_v8 }
 0xd0f   : > { %v3116_v19 = vpop.eup %3115 }
 0xd10   : > { %v2031_v20 = vmul.f32 %v3116_v19, %v3108_v2 }
 0xd12   : > { %2991 = vmatmul.mubr.msk.f32.vlgmr.msra.gmra.mxu0 %vm864_vm4, %v2031_v20 }
 0xd13   : > { %v3118_v22 = vpop.eup %3117  ;;  %2999 = vmatpush3.msra.mxu0 %v2198_v21  ;;  %3000 = vmatprep.mubr.msk.f32.mxu0 %vm3134_vm1, %v3133_v8 }
 0xd14   : > { %v2196_v23 = vmul.f32 %v3118_v22, %v3110_v4  ;;  %3008 = vmatprep.subr.mxu0 %v3133_v8  ;;  %v2838_v22 = vld [vmem:[%s3609_s23] ss:$0 sm:$0xff] }
 0xd16   : > { %3001 = vmatmul.mubr.msk.f32.vlgmr.msra.gmra.mxu0 %vm864_vm4, %v2196_v23 }
 0xd17   : > { %3010 = vmatprep.mubr.msk.f32.mxu0 %vm3134_vm1, %v3133_v8 }
 0xd3a   : > { %v2359_v24 = vpop.xlane.xlu1 %2358 }
 0xd3b   : > { %3119 = vrcp.f32 %v2359_v24 }
 0xd3e   : > { %v2363_v25 = vpop.permute.xlu1 %2362 }
 0xd3f   : > { %3009 = vmatpush3.msra.mxu0 %v2363_v25 }
 0xd40   : > { %3021 = vmatprep.subr.bf16.mxu0 %v3133_v8 }
 0xd48   : > { %v3120_v26 = vpop.eup %3119 }
 0xd49   : > { %v2361_v28 = vmul.f32 %v3120_v26, %v3112_v10 }
 0xd4b   : > { %3011 = vmatmul.mubr.msk.f32.vlgmr.msra.gmra.mxu0 %vm864_vm4, %v2361_v28 }
 0xd4c   : > { %3025 = vmatprep.mubr.msk.bf16.mxu0 %vm3134_vm1, %v3133_v8  ;;  %3022 = vmatpush3.bf16.msra.mxu0 %v3075_v59 }
 0xd4d   : > { %3023 = vmatprep.subr.bf16.mxu0 %v3133_v8 }
 0xdcb   : > { %v1939_v29 = vpop.f32.mrf.mxu0 }
 0xdcd   : > { %v2982_v30 = vpop.f32.mrf.mxu0 }
 0xdd2   : > { %v2104_v31 = vpop.f32.mrf.mxu0 }
 0xdd3   : > { %2439 = vrot.lane.b32.xlu0 %v2104_v31, %s3652_s4 }
 0xdd4   : > { %v2992_v32 = vpop.f32.mrf.mxu0 }
 0xdd6   : > { %v2269_v33 = vpop.f32.mrf.mxu0 }
 0xdd7   : > { %2443 = vrot.lane.b32.xlu1 %v2269_v33, %s3653_s8 }
 0xdd8   : > { %v3002_v34 = vpop.f32.mrf.mxu0 }
 0xe0b   : > { %v2434_v36 = vpop.f32.mrf.mxu0 }
 0xe0c   : > { %2447 = vrot.lane.b32.xlu0 %v2434_v36, %s3654_s3 }
 0xe0d   : > { %v3012_v37 = vpop.f32.mrf.mxu0 }
 0xe45   : > { %v2440_v38 = vpop.permute.xlu0 %2439 }
 0xe46   : > { %v2450_v40 = vsel %vm864_vm4, %v1939_v29, %v2440_v38 }
 0xe49   : > { %v2444_v39 = vpop.permute.xlu1 %2443 }
 0xe4a   : > { %v2451_v41 = vsel %vm1535_vm5, %v2450_v40, %v2444_v39 }
 0xe7e   : > { %v2448_v42 = vpop.permute.xlu0 %2447 }
 0xe7f   : > { %v2452_v43 = vsel %vm1537_vm6, %v2451_v41, %v2448_v42 }
 0xe80   : > { %v2458_v44 = vpack.c.bf16 %v2452_v43, %v2452_v43 }
 0xe82   : > { %3018 = vmatmul.mubr.msk.bf16.vlgmr.msra.gmra.mxu1 %vm755_vm0, %v2458_v44 }
 0xe83   : > { %3037 = vmatprep.mubr.msk.bf16.mxu1 %vm3134_vm1, %v3133_v8  ;;  %3030 = vmatpush3.bf16.msra.mxu1 %v3077_v0 }
 0xe84   : > { %3031 = vmatprep.subr.bf16.mxu1 %v3133_v8 }
 0xe87   : > { %3032 = vmatpush3.bf16.msra.mxu1 %v3078_v60 }
 0xe88   : > { %3033 = vmatprep.subr.bf16.mxu1 %v3133_v8 }
 0xe8b   : > { %3034 = vmatpush3.bf16.msra.mxu1 %v3079_v61 }
 0xe8c   : > { %3035 = vmatprep.subr.bf16.mxu1 %v3133_v8  ;;  %v2833_v8 = vld [vmem:[%s3605_s19] ss:$0 sm:$0xff] }
 0xe8f   : > { %3036 = vmatpush3.bf16.msra.mxu1 %v3080_v14 }
 0xf42   : > { %v2514_v46 = vpop.f32.mrf.mxu1 }
 0xf43   : > { %v2515_v47 = vadd.f32 %v2828_v45, %v2514_v46 }
 0xf44   : > { %v3019_v48 = vpop.f32.mrf.mxu1 }
 0xf45   : > { %v2520_v49 = vadd.f32 %v2515_v47, %v3409_v51  ;;  %v3076_v51 = vld [vmem:[%s3606_s20] sm:$0xff]  }
 0xf46   : > { %v2517_v50 = vpop.f32.mrf.mxu1  ;;  %3024 = vmatpush3.bf16.msra.mxu0 %v3076_v51 }
 0xf47   : > { %v2523_v52 = vsel %vm755_vm0, %v2520_v49, 0.0 }
 0xf48   : > { %2524 = vadd.xlane.f32.xlu1 %v2523_v52  ;;  %v3020_v53 = vpop.f32.mrf.mxu1 }
 0xfd1   : > { %v2525_v54 = vpop.xlane.xlu1 %2524 }
 0xfd2   : > { %v2526_v55 = vmul.f32 0.03125, %v2525_v54 }
 0xfd4   : > { %v2527_v56 = vsub.f32 %v2520_v49, %v2526_v55 }
 0xfd6   : > { %v2528_v57 = vmul.f32 %v2527_v56, %v2527_v56 }
 0xfd8   : > { %v2529_v58 = vsel %vm755_vm0, %v2528_v57, 0.0 }
 0xfd9   : > { %2530 = vadd.xlane.f32.xlu0 %v2529_v58 }
0x1062   : > { %v2531_v62 = vpop.xlane.xlu0 %2530 }
0x1063   : > { %v2532_v63 = vmul.f32 0.032258064, %v2531_v62 }
0x1065   : > { %3121 = vrsqrt.f32 %v2532_v63  ;;  %vm2535_vm9 = vcmp.eq.f32.partialorder %v2532_v63, inf  ;;  %v2538_v3 = vand.u32 2147483648, %v2532_v63  ;;  %vm2537_vm10 = vcmp.eq.f32.partialorder %v2532_v63, 0.0 }
0x1072   : > { %v3122_v1 = vpop.eup %3121 }
0x1073   : > { %v2534_v2 = vmul.f32 %v3122_v1, %v2532_v63 }
0x1075   : > { %v2536_v4 = vsel %vm2535_vm9, %v2532_v63, %v2534_v2 }
0x1076   : > { %v2539_v5 = vsel %vm2537_vm10, %v2538_v3, %v2536_v4 }
0x1077   : > { %v2540_v6 = vadd.f32 1e-06, %v2539_v5 }
0x1079   : > { %3123 = vrcp.f32 %v2540_v6 }
0x1086   : > { %v3124_v7 = vpop.eup %3123 }
0x1087   : > { %v2543_v10 = vmul.f32 %v3124_v7, %v2527_v56 }
0x1089   : > { %v2550_v11 = vmul.f32 %v2832_v9, %v2543_v10 }
0x108b   : > { %v2557_v12 = vadd.f32 %v2833_v8, %v2550_v11 }
0x108d   : > { %v2563_v13 = vpack.c.bf16 %v2557_v12, %v2557_v12 }
0x108f   : > { %3026 = vmatmul.mubr.msk.bf16.vlgmr.msra.gmra.mxu0 %vm755_vm0, %v2563_v13 }
0x114f   : > { %v2619_v16 = vpop.f32.mrf.mxu0 }
0x1150   : > { %v2620_v17 = vadd.f32 %v2834_v15, %v2619_v16 }
0x1151   : > { %v3027_v18 = vpop.f32.mrf.mxu0 }
0x1152   : > { %v2634_v19 = vpack.c.bf16 %v2620_v17, %v2620_v17 }
0x1153   : > { %v2622_v20 = vpop.f32.mrf.mxu0 }
0x1154   : > { %3038 = vmatmul.mubr.msk.bf16.vlgmr.msra.gmra.mxu1 %vm2665_vm11, %v2634_v19 }
0x1155   : > { %v3028_v21 = vpop.f32.mrf.mxu0 }
0x1214   : > { %v2703_v23 = vpop.f32.mrf.mxu1 }
0x1215   : > { %v2704_v24 = vadd.f32 %v2838_v22, %v2703_v23 }
0x1216   : > { %v3039_v25 = vpop.f32.mrf.mxu1 }
0x1217   : > { %v2709_v26 = vadd.f32 %v2704_v24, %v2520_v49 }
0x1218   : > { %v2706_v28 = vpop.f32.mrf.mxu1 }
0x1219   : > { %2710 = vst.msk [vmem:[%s749_s25] sm:$0xff] %vm755_vm0, %v2709_v26 }
0x121a   : > { %v3040_v27 = vpop.f32.mrf.mxu1 }
0x121b PF: > { %s34_s5 = sadd.s32 1, %s3131_s5  }
0x121c   : > { %p31_p4 = scmp.ge.s32.totalorder %s34_s5, 4  }
0x121e   :  { %33 = sbr.rel (!%p31_p4) target bundleno = 10 (0xa), region = 149 }

</bundles_post_ra>
